<compile_context>
chip_gen: v6e
topology: v6e:2x2x1
jax: 0.10.0
libtpu: 0.0.40
codegen_flags: <defaults>
</compile_context>

<pallas_src>
import functools
import math
from typing import NamedTuple

import jax
import jax.numpy as jnp
from jax import lax
from jax.experimental import pallas as pl
from jax.experimental.pallas import tpu as pltpu

BN_EPS = 1e-5
KS = (39, 19, 9)        # tsai InceptionModule kernel sizes (ks=40 -> odd [39,19,9])
DEPTH = 6               # InceptionBlock depth; residual every 3 modules
PADMAX = KS[0] // 2     # 19
NEG = -3e38             # finite "minus infinity" for the maxpool pad fill


class _Cfg(NamedTuple):
    B: int; BP: int; T: int; L: int; H: int; NF: int; F4: int
    NI0: int; N: int; LP: int; F39: int; NI: int; PR: int; W1C: int


def _ceil_to(v, m):
    return -(-v // m) * m


# ----------------------------- fused kernel -----------------------------

def _fused_forward_kernel(data_ref, w1_ref, wbr_ref, wsm_ref, out_ref,
                          patch_ref, *, cfg):
    BP, T, H, NF, F4 = cfg.BP, cfg.T, cfg.H, cfg.NF, cfg.F4
    NI0, N, F39, NI, PR = cfg.NI0, cfg.N, cfg.F39, cfg.NI, cfg.PR
    f32 = jnp.float32

    def roll(a, s):
        s = int(s) % N
        return pltpu.roll(a, s, axis=1) if s else a

    # ---- masks: hoisted once (JAX does not CSE broadcast_in_dim) ----
    valid = data_ref[NI0 - 1:NI0, :]                       # (1, N) 1.0 at valid cols
    validb = valid != 0.0
    validb_ni0 = jnp.broadcast_to(validb, (NI0, N))
    validb_f4 = jnp.broadcast_to(validb, (F4, N))

    # ---- LSTM (shuffle=True: sequence length = c_in, features = seq_len) ----
    x_rnn = data_ref[NI0:NI0 + T * BP, :]                  # (T*BP, N); cols >= L are 0
    w_ih = w1_ref[0:N, :]                                  # (N, W1C);  rows >= L are 0
    w_hh = w1_ref[N:N + H, :]                              # (H, W1C)
    b_g = w1_ref[N + H:N + H + 1, :]                       # (1, W1C)
    gx = jnp.dot(x_rnn, w_ih, preferred_element_type=f32) + b_g    # all-timestep proj
    h = jnp.zeros((BP, H), f32)
    c = jnp.zeros((BP, H), f32)
    for t in range(T):                                     # static unroll, T = c_in
        g = gx[t * BP:(t + 1) * BP, :] + jnp.dot(h, w_hh,
                                                 preferred_element_type=f32)
        sg = jax.nn.sigmoid(g)                             # gates packed [i, f, o, g]
        tg = jnp.tanh(g)
        c = sg[:, H:2 * H] * c + sg[:, 0:H] * tg[:, 3 * H:4 * H]
        h = sg[:, 2 * H:3 * H] * jnp.tanh(c)
    # rnn_dropout: identity in eval mode

    # ---- one-time init of the constant scratch-patch rows ----
    patch_ref[F39 + NI0:PR, :] = jnp.zeros((PR - F39 - NI0, N), f32)
    patch_ref[F39 + NI:F39 + NI + 1, :] = valid            # BN-shift "bias" row

    # ---- InceptionBlock on the padded, batch-folded (C, B*LP) slab ----
    WSB = DEPTH * NF                                       # shortcut row offset in wsm
    x = data_ref[0:NI0, :]                                 # block input (valid row incl.)
    res = x
    for d in range(DEPTH):
        first = d == 0
        ni = NI0 if first else NI
        vmask = validb_ni0 if first else validb_f4

        # bottleneck 1x1 conv (no BN / act); pad columns stay zero
        w_bot = wsm_ref[d * NF:(d + 1) * NF, 0:ni]
        bt = jnp.dot(w_bot, x, preferred_element_type=f32)          # (NF, N)

        # write the 39 lane-rolled taps straight into the scratch patch
        for tap in range(2 * PADMAX + 1):
            patch_ref[tap * NF:(tap + 1) * NF, :] = roll(bt, PADMAX - tap)

        # MaxPool1d(3, stride=1, padding=1) branch input -> patch tail rows
        xm = jnp.where(vmask, x, NEG)
        xm = jnp.maximum(jnp.maximum(roll(xm, 1), xm), roll(xm, -1))
        xm = jnp.where(vmask, xm, 0.0)
        patch_ref[F39:F39 + ni, :] = xm

        # merged conv39 | conv19 | conv9 | maxconv | BN-shift matmul,
        # chunked over the 128-aligned contraction axis (bounded vreg pressure)
        w_row = d * F4
        y = jnp.zeros((F4, N), f32)
        for kb in range(0, PR, 128):
            y = y + jnp.dot(wbr_ref[w_row:w_row + F4, kb:kb + 128],
                            patch_ref[kb:kb + 128, :],
                            preferred_element_type=f32)
        y = jnp.maximum(y, 0.0)                            # module BN(+shift) + ReLU

        if d % 3 == 2:                                     # residual stage
            if d == 2:                                     # ConvBlock(c_in -> 4nf, ks=1)
                w_s0 = wsm_ref[WSB:WSB + F4, 0:NI0]        # shift folded via valid row
                sc = jnp.dot(w_s0, res, preferred_element_type=f32)
            else:                                          # BN1d(4nf)
                s1_scale = wsm_ref[WSB:WSB + F4, NI0:NI0 + 1]
                s1_shift = wsm_ref[WSB:WSB + F4, NI0 + 1:NI0 + 2]
                sc = res * s1_scale + s1_shift
            y = jnp.maximum(y + sc, 0.0)

        x = jnp.where(validb_f4, y, 0.0)                   # keep pad columns zero
        if d % 3 == 2:
            res = x

    # ---- GAP1d + concat + Linear head ----
    avg_sel = data_ref[NI0 + T * BP:NI0 + T * BP + BP, :]  # (BP, N) per-batch averager
    gap = lax.dot_general(avg_sel, x, (((1,), (1,)), ((), ())),
                          preferred_element_type=f32)      # (BP, F4)
    r_fc = N + H + 8
    w_rnn = w1_ref[r_fc:r_fc + H, :]
    w_inc = w1_ref[r_fc + H:r_fc + H + F4, :]
    fc_b = w1_ref[r_fc + H + F4:r_fc + H + F4 + 1, :]
    out = (jnp.dot(h, w_rnn, preferred_element_type=f32)
           + jnp.dot(gap, w_inc, preferred_element_type=f32) + fc_b)
    out_ref[...] = out.astype(out_ref.dtype)               # lane-dense (BP, W1C) store


# ----------------------------- host-side prep -----------------------------

def _prepare_inputs(params, x, x_pos):
    f32 = jnp.float32
    B, c_in, L = x.shape
    H = params['lstm']['w_hh'].shape[1]
    c_out = params['fc']['b'].shape[0]
    nf = params['modules'][0]['bottleneck_w'].shape[0]
    assert all(k % 2 == 1 for k in KS), "'same' padding assumes odd kernel sizes"
    assert c_in != 4 * nf, "shortcut0 assumed to be ConvBlock (c_in != nf*4)"

    NF, F4 = nf, 4 * nf
    F39 = KS[0] * nf
    NI = F4
    NI0 = _ceil_to(c_in + 1, 8)                 # data rows + valid row, 8-padded
    assert NI0 <= NI
    BP = _ceil_to(max(B, 8), 8)                 # padded batch for lane-dense head
    T = c_in
    unit = 128 // math.gcd(B, 128)
    LP = _ceil_to(L + 2 * PADMAX, unit)         # per-batch segment width
    N = B * LP                                  # lane-dense slab width (mult of 128)
    PR = _ceil_to(F39 + NI + 1, 128)            # patch rows / merged weight cols
    W1C = _ceil_to(max(4 * H, c_out), 128)
    cfg = _Cfg(B, BP, T, L, H, NF, F4, NI0, N, LP, F39, NI, PR, W1C)

    col = jnp.arange(N)
    in_seg = col % LP
    valid = ((in_seg >= PADMAX) & (in_seg < PADMAX + L)).astype(f32)    # (N,)

    # --- slab 1: data = [x0 (+valid row) ; x_rnn ; avg_sel] ---
    xp = jnp.pad(x.astype(f32), ((0, 0), (0, 0), (PADMAX, LP - PADMAX - L)))
    x_slab = jnp.transpose(xp, (1, 0, 2)).reshape(c_in, N)
    x0 = jnp.concatenate(
        [x_slab, jnp.zeros((NI0 - 1 - c_in, N), f32), valid[None, :]], axis=0)
    xr = jnp.transpose(x_pos.astype(f32), (1, 0, 2))                    # (T, B, L)
    xr = jnp.pad(xr, ((0, 0), (0, BP - B), (0, N - L))).reshape(T * BP, N)
    seg = col // LP
    avg = ((seg[None, :] == jnp.arange(B)[:, None]).astype(f32)
           * (valid / L)[None, :])
    avg = jnp.pad(avg, ((0, BP - B), (0, 0)))
    data = jnp.concatenate([x0, xr, avg], axis=0)

    # --- slab 2: LSTM weights (gates reordered torch [i,f,g,o] -> [i,f,o,g]) + FC ---
    def reorder_gates(w):
        i, f, g, o = jnp.split(w, 4, axis=0)
        return jnp.concatenate([i, f, o, g], axis=0)

    lp = params['lstm']
    w_ih = reorder_gates(lp['w_ih'].astype(f32))                        # (4H, L)
    w_hh = reorder_gates(lp['w_hh'].astype(f32))                        # (4H, H)
    b_lstm = reorder_gates((lp['b_ih'] + lp['b_hh']).astype(f32))       # (4H,)
    fp = params['fc']
    w1 = jnp.concatenate([
        jnp.pad(w_ih.T, ((0, N - L), (0, W1C - 4 * H))),                # rows 0..N-1
        jnp.pad(w_hh.T, ((0, 0), (0, W1C - 4 * H))),                    # rows N..N+H-1
        jnp.pad(b_lstm[None, :], ((0, 0), (0, W1C - 4 * H))),           # row N+H
        jnp.zeros((7, W1C), f32),
        jnp.pad(fp['w'].astype(f32).T, ((0, 0), (0, W1C - c_out))),     # fc weight
        jnp.pad(fp['b'].astype(f32)[None, :], ((0, 0), (0, W1C - c_out))),
    ], axis=0)
    w1 = jnp.pad(w1, ((0, (-w1.shape[0]) % 8), (0, 0)))

    # --- slab 3: merged branch weights, (DEPTH*4nf, PR) ---
    def branch_weight(p, ni):
        sc = p['bn_scale'].astype(f32)
        sh = p['bn_shift'].astype(f32)
        blocks = []
        for j, k in enumerate(KS):
            w = jnp.transpose(p['conv_ws'][j].astype(f32), (0, 2, 1)).reshape(nf, k * nf)
            w = w * sc[j * nf:(j + 1) * nf, None]
            off = (KS[0] - k) // 2                          # embed into the 39-tap frame
            w = jnp.pad(w, ((0, 0), (off * nf, F39 - (off + k) * nf)))
            blocks.append(jnp.concatenate(
                [w, jnp.zeros((nf, NI), f32), sh[j * nf:(j + 1) * nf, None]], axis=1))
        wm = p['maxconv_w'][:, :, 0].astype(f32) * sc[3 * nf:4 * nf, None]   # (nf, ni)
        wm = jnp.pad(wm, ((0, 0), (0, NI - ni)))
        blocks.append(jnp.concatenate(
            [jnp.zeros((nf, F39), f32), wm, sh[3 * nf:4 * nf, None]], axis=1))
        W = jnp.concatenate(blocks, axis=0)                 # (4nf, F39+NI+1)
        return jnp.pad(W, ((0, 0), (0, PR - W.shape[1])))

    wbr = jnp.concatenate(
        [branch_weight(params['modules'][d], c_in if d == 0 else F4)
         for d in range(DEPTH)], axis=0)

    # --- slab 4: bottleneck weights + shortcut0 (augmented) + shortcut1 ---
    ws_cols = max(NI, NI0 + 2)
    bots = []
    for d in range(DEPTH):
        wb = params['modules'][d]['bottleneck_w'][:, :, 0].astype(f32)
        bots.append(jnp.pad(wb, ((0, 0), (0, ws_cols - wb.shape[1]))))
    s0 = params['shortcut0']
    s1 = params['shortcut1']
    s0_blk = jnp.concatenate([
        s0['w'][:, :, 0].astype(f32) * s0['scale'].astype(f32)[:, None],
        jnp.zeros((F4, NI0 - 1 - c_in), f32),
        s0['shift'].astype(f32)[:, None],                   # col NI0-1 (hits valid row)
        s1['scale'].astype(f32)[:, None],                   # col NI0
        s1['shift'].astype(f32)[:, None],                   # col NI0+1
        jnp.zeros((F4, ws_cols - NI0 - 2), f32)], axis=1)
    wsm = jnp.concatenate(bots + [s0_blk], axis=0)
    wsm = jnp.pad(wsm, ((0, (-wsm.shape[0]) % 8), (0, 0)))

    return (data, w1, wbr, wsm), cfg


def forward(params, x, x_pos):
    B, _, _ = x.shape
    c_out = params['fc']['b'].shape[0]
    slabs, cfg = _prepare_inputs(params, x, x_pos)
    kernel = functools.partial(_fused_forward_kernel, cfg=cfg)
    out = pl.pallas_call(
        kernel,
        out_shape=jax.ShapeDtypeStruct((cfg.BP, cfg.W1C), jnp.float32),
        scratch_shapes=[pltpu.VMEM((cfg.PR, cfg.N), jnp.float32)],
    )(*slabs)
    return out[:B, :c_out].astype(x.dtype)


# ----------------------------- parameter init -----------------------------

def init_params(key, c_in, c_out, seq_len, hidden_size, nf):
    keys = jax.random.split(key, 64)
    kit = iter(keys)

    def rnd(shape, scale=0.1):
        return jax.random.normal(next(kit), shape, jnp.float32) * scale

    # eval-mode BatchNorm, default init: gamma=1, beta=0, mean=0, var=1
    bn_scale = jnp.full((4 * nf,), 1.0 / math.sqrt(1.0 + BN_EPS), jnp.float32)
    bn_shift = jnp.zeros((4 * nf,), jnp.float32)

    modules = []
    for d in range(DEPTH):
        ni = c_in if d == 0 else 4 * nf
        modules.append(dict(
            bottleneck_w=rnd((nf, ni, 1)),
            conv_ws=[rnd((nf, nf, k)) for k in KS],
            maxconv_w=rnd((nf, ni, 1)),
            bn_scale=bn_scale,
            bn_shift=bn_shift))

    assert c_in != 4 * nf
    shortcut0 = dict(w=rnd((4 * nf, c_in, 1)), scale=bn_scale, shift=bn_shift)
    shortcut1 = dict(scale=bn_scale, shift=bn_shift)

    H = hidden_size
    lstm = dict(
        w_ih=rnd((4 * H, seq_len)),        # torch layout: gate rows [i; f; g; o]
        w_hh=rnd((4 * H, H)),
        b_ih=rnd((4 * H,)),
        b_hh=rnd((4 * H,)))
    fc = dict(w=rnd((c_out, H + 4 * nf)), b=rnd((c_out,)))

    return dict(modules=modules, shortcut0=shortcut0, shortcut1=shortcut1,
                lstm=lstm, fc=fc)


# ----------------------------- main -----------------------------

if __name__ == "__main__":
    B, c_in, c_out, seq_len, hidden, nf = 2, 4, 6, 16, 32, 8
    key = jax.random.PRNGKey(0)
    kp, kx, kpos = jax.random.split(key, 3)
    params = init_params(kp, c_in, c_out, seq_len, hidden, nf)
    x = jax.random.normal(kx, (B, c_in, seq_len), jnp.float32)
    x_pos = jax.random.normal(kpos, (B, c_in, seq_len), jnp.float32)

    fwd = jax.jit(forward)
    out = fwd(params, x, x_pos)
    jax.block_until_ready(out)

    assert out.shape == (B, c_out)
    assert bool(jnp.all(jnp.isfinite(out)))
    print("KERNEL_OK")
</pallas_src>

<mosaic_0001>
module attributes {stable_mosaic.version = 11 : i64} {
  func.func @_fused_forward_kernel(%arg0: memref<48x128xf32, #tpu.memory_space<vmem>>, %arg1: memref<240x128xf32, #tpu.memory_space<vmem>>, %arg2: memref<192x384xf32, #tpu.memory_space<vmem>>, %arg3: memref<80x32xf32, #tpu.memory_space<vmem>>, %arg4: memref<8x128xf32, #tpu.memory_space<vmem>>, %arg5: memref<384x128xf32, #tpu.memory_space<vmem>>) attributes {dimension_semantics = [], scalar_prefetch = 0 : i64, scratch_operands = 1 : i64, tpu.core_type = #tpu.core_type<tc>} {
    %c7 = arith.constant 7 : index
    %c0 = arith.constant 0 : index
    %0 = vector.load %arg0[%c7, %c0] : memref<48x128xf32, #tpu.memory_space<vmem>>, vector<1x128xf32>
    %cst = arith.constant 0.000000e+00 : f32
    %1 = vector.broadcast %cst : f32 to vector<1x128xf32>
    %2 = arith.cmpf one, %0, %1 : vector<1x128xf32>
    %3 = vector.shape_cast %2 : vector<1x128xi1> to vector<1x128xi1>
    %4 = vector.broadcast %3 : vector<1x128xi1> to vector<8x128xi1>
    %5 = vector.shape_cast %2 : vector<1x128xi1> to vector<1x128xi1>
    %6 = vector.broadcast %5 : vector<1x128xi1> to vector<32x128xi1>
    %c8 = arith.constant 8 : index
    %c0_0 = arith.constant 0 : index
    %7 = vector.load %arg0[%c8, %c0_0] : memref<48x128xf32, #tpu.memory_space<vmem>>, vector<32x128xf32>
    %c0_1 = arith.constant 0 : index
    %c0_2 = arith.constant 0 : index
    %8 = vector.load %arg1[%c0_1, %c0_2] : memref<240x128xf32, #tpu.memory_space<vmem>>, vector<128x128xf32>
    %c128 = arith.constant 128 : index
    %c0_3 = arith.constant 0 : index
    %9 = vector.load %arg1[%c128, %c0_3] : memref<240x128xf32, #tpu.memory_space<vmem>>, vector<32x128xf32>
    %c160 = arith.constant 160 : index
    %c0_4 = arith.constant 0 : index
    %10 = vector.load %arg1[%c160, %c0_4] : memref<240x128xf32, #tpu.memory_space<vmem>>, vector<1x128xf32>
    %cst_5 = arith.constant dense<0.000000e+00> : vector<32x128xf32>
    %11 = tpu.matmul %7, %8, %cst_5 {dimension_numbers = #tpu.dot_dimension_numbers<[1], [0], [0], [1], [0, 0, 1, 1], [], []>} : vector<32x128xf32>, vector<128x128xf32>, vector<32x128xf32> -> vector<32x128xf32>
    %12 = vector.broadcast %10 : vector<1x128xf32> to vector<32x128xf32>
    %13 = arith.addf %11, %12 : vector<32x128xf32>
    %cst_6 = arith.constant 0.000000e+00 : f32
    %14 = vector.broadcast %cst_6 : f32 to vector<8x32xf32>
    %cst_7 = arith.constant 0.000000e+00 : f32
    %15 = vector.broadcast %cst_7 : f32 to vector<8x32xf32>
    %16 = vector.extract_strided_slice %13 {offsets = [0, 0], sizes = [8, 128], strides = [1, 1]} : vector<32x128xf32> to vector<8x128xf32>
    %cst_8 = arith.constant dense<0.000000e+00> : vector<8x128xf32>
    %17 = tpu.matmul %14, %9, %cst_8 {dimension_numbers = #tpu.dot_dimension_numbers<[1], [0], [0], [1], [0, 0, 1, 1], [], []>} : vector<8x32xf32>, vector<32x128xf32>, vector<8x128xf32> -> vector<8x128xf32>
    %18 = arith.addf %16, %17 : vector<8x128xf32>
    %19 = arith.negf %18 : vector<8x128xf32>
    %20 = math.exp %19 : vector<8x128xf32>
    %cst_9 = arith.constant 1.000000e+00 : f32
    %21 = vector.broadcast %cst_9 : f32 to vector<8x128xf32>
    %22 = arith.addf %21, %20 : vector<8x128xf32>
    %23 = arith.divf %21, %22 : vector<8x128xf32>
    %24 = math.tanh %18 : vector<8x128xf32>
    %25 = vector.extract_strided_slice %23 {offsets = [0, 32], sizes = [8, 32], strides = [1, 1]} : vector<8x128xf32> to vector<8x32xf32>
    %26 = arith.mulf %25, %15 : vector<8x32xf32>
    %27 = vector.extract_strided_slice %23 {offsets = [0, 0], sizes = [8, 32], strides = [1, 1]} : vector<8x128xf32> to vector<8x32xf32>
    %28 = vector.extract_strided_slice %24 {offsets = [0, 96], sizes = [8, 32], strides = [1, 1]} : vector<8x128xf32> to vector<8x32xf32>
    %29 = arith.mulf %27, %28 : vector<8x32xf32>
    %30 = arith.addf %26, %29 : vector<8x32xf32>
    %31 = vector.extract_strided_slice %23 {offsets = [0, 64], sizes = [8, 32], strides = [1, 1]} : vector<8x128xf32> to vector<8x32xf32>
    %32 = math.tanh %30 : vector<8x32xf32>
    %33 = arith.mulf %31, %32 : vector<8x32xf32>
    %34 = vector.extract_strided_slice %13 {offsets = [8, 0], sizes = [8, 128], strides = [1, 1]} : vector<32x128xf32> to vector<8x128xf32>
    %cst_10 = arith.constant dense<0.000000e+00> : vector<8x128xf32>
    %35 = tpu.matmul %33, %9, %cst_10 {dimension_numbers = #tpu.dot_dimension_numbers<[1], [0], [0], [1], [0, 0, 1, 1], [], []>} : vector<8x32xf32>, vector<32x128xf32>, vector<8x128xf32> -> vector<8x128xf32>
    %36 = arith.addf %34, %35 : vector<8x128xf32>
    %37 = arith.negf %36 : vector<8x128xf32>
    %38 = math.exp %37 : vector<8x128xf32>
    %cst_11 = arith.constant 1.000000e+00 : f32
    %39 = vector.broadcast %cst_11 : f32 to vector<8x128xf32>
    %40 = arith.addf %39, %38 : vector<8x128xf32>
    %41 = arith.divf %39, %40 : vector<8x128xf32>
    %42 = math.tanh %36 : vector<8x128xf32>
    %43 = vector.extract_strided_slice %41 {offsets = [0, 32], sizes = [8, 32], strides = [1, 1]} : vector<8x128xf32> to vector<8x32xf32>
    %44 = arith.mulf %43, %30 : vector<8x32xf32>
    %45 = vector.extract_strided_slice %41 {offsets = [0, 0], sizes = [8, 32], strides = [1, 1]} : vector<8x128xf32> to vector<8x32xf32>
    %46 = vector.extract_strided_slice %42 {offsets = [0, 96], sizes = [8, 32], strides = [1, 1]} : vector<8x128xf32> to vector<8x32xf32>
    %47 = arith.mulf %45, %46 : vector<8x32xf32>
    %48 = arith.addf %44, %47 : vector<8x32xf32>
    %49 = vector.extract_strided_slice %41 {offsets = [0, 64], sizes = [8, 32], strides = [1, 1]} : vector<8x128xf32> to vector<8x32xf32>
    %50 = math.tanh %48 : vector<8x32xf32>
    %51 = arith.mulf %49, %50 : vector<8x32xf32>
    %52 = vector.extract_strided_slice %13 {offsets = [16, 0], sizes = [8, 128], strides = [1, 1]} : vector<32x128xf32> to vector<8x128xf32>
    %cst_12 = arith.constant dense<0.000000e+00> : vector<8x128xf32>
    %53 = tpu.matmul %51, %9, %cst_12 {dimension_numbers = #tpu.dot_dimension_numbers<[1], [0], [0], [1], [0, 0, 1, 1], [], []>} : vector<8x32xf32>, vector<32x128xf32>, vector<8x128xf32> -> vector<8x128xf32>
    %54 = arith.addf %52, %53 : vector<8x128xf32>
    %55 = arith.negf %54 : vector<8x128xf32>
    %56 = math.exp %55 : vector<8x128xf32>
    %cst_13 = arith.constant 1.000000e+00 : f32
    %57 = vector.broadcast %cst_13 : f32 to vector<8x128xf32>
    %58 = arith.addf %57, %56 : vector<8x128xf32>
    %59 = arith.divf %57, %58 : vector<8x128xf32>
    %60 = math.tanh %54 : vector<8x128xf32>
    %61 = vector.extract_strided_slice %59 {offsets = [0, 32], sizes = [8, 32], strides = [1, 1]} : vector<8x128xf32> to vector<8x32xf32>
    %62 = arith.mulf %61, %48 : vector<8x32xf32>
    %63 = vector.extract_strided_slice %59 {offsets = [0, 0], sizes = [8, 32], strides = [1, 1]} : vector<8x128xf32> to vector<8x32xf32>
    %64 = vector.extract_strided_slice %60 {offsets = [0, 96], sizes = [8, 32], strides = [1, 1]} : vector<8x128xf32> to vector<8x32xf32>
    %65 = arith.mulf %63, %64 : vector<8x32xf32>
    %66 = arith.addf %62, %65 : vector<8x32xf32>
    %67 = vector.extract_strided_slice %59 {offsets = [0, 64], sizes = [8, 32], strides = [1, 1]} : vector<8x128xf32> to vector<8x32xf32>
    %68 = math.tanh %66 : vector<8x32xf32>
    %69 = arith.mulf %67, %68 : vector<8x32xf32>
    %70 = vector.extract_strided_slice %13 {offsets = [24, 0], sizes = [8, 128], strides = [1, 1]} : vector<32x128xf32> to vector<8x128xf32>
    %cst_14 = arith.constant dense<0.000000e+00> : vector<8x128xf32>
    %71 = tpu.matmul %69, %9, %cst_14 {dimension_numbers = #tpu.dot_dimension_numbers<[1], [0], [0], [1], [0, 0, 1, 1], [], []>} : vector<8x32xf32>, vector<32x128xf32>, vector<8x128xf32> -> vector<8x128xf32>
    %72 = arith.addf %70, %71 : vector<8x128xf32>
    %73 = arith.negf %72 : vector<8x128xf32>
    %74 = math.exp %73 : vector<8x128xf32>
    %cst_15 = arith.constant 1.000000e+00 : f32
    %75 = vector.broadcast %cst_15 : f32 to vector<8x128xf32>
    %76 = arith.addf %75, %74 : vector<8x128xf32>
    %77 = arith.divf %75, %76 : vector<8x128xf32>
    %78 = math.tanh %72 : vector<8x128xf32>
    %79 = vector.extract_strided_slice %77 {offsets = [0, 32], sizes = [8, 32], strides = [1, 1]} : vector<8x128xf32> to vector<8x32xf32>
    %80 = arith.mulf %79, %66 : vector<8x32xf32>
    %81 = vector.extract_strided_slice %77 {offsets = [0, 0], sizes = [8, 32], strides = [1, 1]} : vector<8x128xf32> to vector<8x32xf32>
    %82 = vector.extract_strided_slice %78 {offsets = [0, 96], sizes = [8, 32], strides = [1, 1]} : vector<8x128xf32> to vector<8x32xf32>
    %83 = arith.mulf %81, %82 : vector<8x32xf32>
    %84 = arith.addf %80, %83 : vector<8x32xf32>
    %85 = vector.extract_strided_slice %77 {offsets = [0, 64], sizes = [8, 32], strides = [1, 1]} : vector<8x128xf32> to vector<8x32xf32>
    %86 = math.tanh %84 : vector<8x32xf32>
    %87 = arith.mulf %85, %86 : vector<8x32xf32>
    %cst_16 = arith.constant 0.000000e+00 : f32
    %88 = vector.broadcast %cst_16 : f32 to vector<64x128xf32>
    %c320 = arith.constant 320 : index
    %c0_17 = arith.constant 0 : index
    %89 = vector.load %arg5[%c320, %c0_17] : memref<384x128xf32, #tpu.memory_space<vmem>>, vector<64x128xf32>
    tpu.vector_store %arg5[%c320, %c0_17], %88 {strides = array<i32>} : memref<384x128xf32, #tpu.memory_space<vmem>>, vector<64x128xf32>,
    %c344 = arith.constant 344 : index
    %c0_18 = arith.constant 0 : index
    %90 = vector.load %arg5[%c344, %c0_18] : memref<384x128xf32, #tpu.memory_space<vmem>>, vector<1x128xf32>
    tpu.vector_store %arg5[%c344, %c0_18], %0 {strides = array<i32>} : memref<384x128xf32, #tpu.memory_space<vmem>>, vector<1x128xf32>,
    %c0_19 = arith.constant 0 : index
    %c0_20 = arith.constant 0 : index
    %91 = vector.load %arg0[%c0_19, %c0_20] : memref<48x128xf32, #tpu.memory_space<vmem>>, vector<8x128xf32>
    %c0_21 = arith.constant 0 : index
    %c0_22 = arith.constant 0 : index
    %92 = vector.load %arg3[%c0_21, %c0_22] : memref<80x32xf32, #tpu.memory_space<vmem>>, vector<8x8xf32>
    %cst_23 = arith.constant dense<0.000000e+00> : vector<8x128xf32>
    %93 = tpu.matmul %92, %91, %cst_23 {dimension_numbers = #tpu.dot_dimension_numbers<[1], [0], [0], [1], [0, 0, 1, 1], [], []>} : vector<8x8xf32>, vector<8x128xf32>, vector<8x128xf32> -> vector<8x128xf32>
    %c19_i32 = arith.constant 19 : i32
    %94 = tpu.dynamic_rotate %93 by %c19_i32 dim 1 : vector<8x128xf32>, i32 -> vector<8x128xf32>
    %c0_24 = arith.constant 0 : index
    %c0_25 = arith.constant 0 : index
    %95 = vector.load %arg5[%c0_24, %c0_25] : memref<384x128xf32, #tpu.memory_space<vmem>>, vector<8x128xf32>
    tpu.vector_store %arg5[%c0_24, %c0_25], %94 {strides = array<i32>} : memref<384x128xf32, #tpu.memory_space<vmem>>, vector<8x128xf32>,
    %c18_i32 = arith.constant 18 : i32
    %96 = tpu.dynamic_rotate %93 by %c18_i32 dim 1 : vector<8x128xf32>, i32 -> vector<8x128xf32>
    %c8_26 = arith.constant 8 : index
    %c0_27 = arith.constant 0 : index
    %97 = vector.load %arg5[%c8_26, %c0_27] : memref<384x128xf32, #tpu.memory_space<vmem>>, vector<8x128xf32>
    tpu.vector_store %arg5[%c8_26, %c0_27], %96 {strides = array<i32>} : memref<384x128xf32, #tpu.memory_space<vmem>>, vector<8x128xf32>,
    %c17_i32 = arith.constant 17 : i32
    %98 = tpu.dynamic_rotate %93 by %c17_i32 dim 1 : vector<8x128xf32>, i32 -> vector<8x128xf32>
    %c16 = arith.constant 16 : index
    %c0_28 = arith.constant 0 : index
    %99 = vector.load %arg5[%c16, %c0_28] : memref<384x128xf32, #tpu.memory_space<vmem>>, vector<8x128xf32>
    tpu.vector_store %arg5[%c16, %c0_28], %98 {strides = array<i32>} : memref<384x128xf32, #tpu.memory_space<vmem>>, vector<8x128xf32>,
    %c16_i32 = arith.constant 16 : i32
    %100 = tpu.dynamic_rotate %93 by %c16_i32 dim 1 : vector<8x128xf32>, i32 -> vector<8x128xf32>
    %c24 = arith.constant 24 : index
    %c0_29 = arith.constant 0 : index
    %101 = vector.load %arg5[%c24, %c0_29] : memref<384x128xf32, #tpu.memory_space<vmem>>, vector<8x128xf32>
    tpu.vector_store %arg5[%c24, %c0_29], %100 {strides = array<i32>} : memref<384x128xf32, #tpu.memory_space<vmem>>, vector<8x128xf32>,
    %c15_i32 = arith.constant 15 : i32
    %102 = tpu.dynamic_rotate %93 by %c15_i32 dim 1 : vector<8x128xf32>, i32 -> vector<8x128xf32>
    %c32 = arith.constant 32 : index
    %c0_30 = arith.constant 0 : index
    %103 = vector.load %arg5[%c32, %c0_30] : memref<384x128xf32, #tpu.memory_space<vmem>>, vector<8x128xf32>
    tpu.vector_store %arg5[%c32, %c0_30], %102 {strides = array<i32>} : memref<384x128xf32, #tpu.memory_space<vmem>>, vector<8x128xf32>,
    %c14_i32 = arith.constant 14 : i32
    %104 = tpu.dynamic_rotate %93 by %c14_i32 dim 1 : vector<8x128xf32>, i32 -> vector<8x128xf32>
    %c40 = arith.constant 40 : index
    %c0_31 = arith.constant 0 : index
    %105 = vector.load %arg5[%c40, %c0_31] : memref<384x128xf32, #tpu.memory_space<vmem>>, vector<8x128xf32>
    tpu.vector_store %arg5[%c40, %c0_31], %104 {strides = array<i32>} : memref<384x128xf32, #tpu.memory_space<vmem>>, vector<8x128xf32>,
    %c13_i32 = arith.constant 13 : i32
    %106 = tpu.dynamic_rotate %93 by %c13_i32 dim 1 : vector<8x128xf32>, i32 -> vector<8x128xf32>
    %c48 = arith.constant 48 : index
    %c0_32 = arith.constant 0 : index
    %107 = vector.load %arg5[%c48, %c0_32] : memref<384x128xf32, #tpu.memory_space<vmem>>, vector<8x128xf32>
    tpu.vector_store %arg5[%c48, %c0_32], %106 {strides = array<i32>} : memref<384x128xf32, #tpu.memory_space<vmem>>, vector<8x128xf32>,
    %c12_i32 = arith.constant 12 : i32
    %108 = tpu.dynamic_rotate %93 by %c12_i32 dim 1 : vector<8x128xf32>, i32 -> vector<8x128xf32>
    %c56 = arith.constant 56 : index
    %c0_33 = arith.constant 0 : index
    %109 = vector.load %arg5[%c56, %c0_33] : memref<384x128xf32, #tpu.memory_space<vmem>>, vector<8x128xf32>
    tpu.vector_store %arg5[%c56, %c0_33], %108 {strides = array<i32>} : memref<384x128xf32, #tpu.memory_space<vmem>>, vector<8x128xf32>,
    %c11_i32 = arith.constant 11 : i32
    %110 = tpu.dynamic_rotate %93 by %c11_i32 dim 1 : vector<8x128xf32>, i32 -> vector<8x128xf32>
    %c64 = arith.constant 64 : index
    %c0_34 = arith.constant 0 : index
    %111 = vector.load %arg5[%c64, %c0_34] : memref<384x128xf32, #tpu.memory_space<vmem>>, vector<8x128xf32>
    tpu.vector_store %arg5[%c64, %c0_34], %110 {strides = array<i32>} : memref<384x128xf32, #tpu.memory_space<vmem>>, vector<8x128xf32>,
    %c10_i32 = arith.constant 10 : i32
    %112 = tpu.dynamic_rotate %93 by %c10_i32 dim 1 : vector<8x128xf32>, i32 -> vector<8x128xf32>
    %c72 = arith.constant 72 : index
    %c0_35 = arith.constant 0 : index
    %113 = vector.load %arg5[%c72, %c0_35] : memref<384x128xf32, #tpu.memory_space<vmem>>, vector<8x128xf32>
    tpu.vector_store %arg5[%c72, %c0_35], %112 {strides = array<i32>} : memref<384x128xf32, #tpu.memory_space<vmem>>, vector<8x128xf32>,
    %c9_i32 = arith.constant 9 : i32
    %114 = tpu.dynamic_rotate %93 by %c9_i32 dim 1 : vector<8x128xf32>, i32 -> vector<8x128xf32>
    %c80 = arith.constant 80 : index
    %c0_36 = arith.constant 0 : index
    %115 = vector.load %arg5[%c80, %c0_36] : memref<384x128xf32, #tpu.memory_space<vmem>>, vector<8x128xf32>
    tpu.vector_store %arg5[%c80, %c0_36], %114 {strides = array<i32>} : memref<384x128xf32, #tpu.memory_space<vmem>>, vector<8x128xf32>,
    %c8_i32 = arith.constant 8 : i32
    %116 = tpu.dynamic_rotate %93 by %c8_i32 dim 1 : vector<8x128xf32>, i32 -> vector<8x128xf32>
    %c88 = arith.constant 88 : index
    %c0_37 = arith.constant 0 : index
    %117 = vector.load %arg5[%c88, %c0_37] : memref<384x128xf32, #tpu.memory_space<vmem>>, vector<8x128xf32>
    tpu.vector_store %arg5[%c88, %c0_37], %116 {strides = array<i32>} : memref<384x128xf32, #tpu.memory_space<vmem>>, vector<8x128xf32>,
    %c7_i32 = arith.constant 7 : i32
    %118 = tpu.dynamic_rotate %93 by %c7_i32 dim 1 : vector<8x128xf32>, i32 -> vector<8x128xf32>
    %c96 = arith.constant 96 : index
    %c0_38 = arith.constant 0 : index
    %119 = vector.load %arg5[%c96, %c0_38] : memref<384x128xf32, #tpu.memory_space<vmem>>, vector<8x128xf32>
    tpu.vector_store %arg5[%c96, %c0_38], %118 {strides = array<i32>} : memref<384x128xf32, #tpu.memory_space<vmem>>, vector<8x128xf32>,
    %c6_i32 = arith.constant 6 : i32
    %120 = tpu.dynamic_rotate %93 by %c6_i32 dim 1 : vector<8x128xf32>, i32 -> vector<8x128xf32>
    %c104 = arith.constant 104 : index
    %c0_39 = arith.constant 0 : index
    %121 = vector.load %arg5[%c104, %c0_39] : memref<384x128xf32, #tpu.memory_space<vmem>>, vector<8x128xf32>
    tpu.vector_store %arg5[%c104, %c0_39], %120 {strides = array<i32>} : memref<384x128xf32, #tpu.memory_space<vmem>>, vector<8x128xf32>,
    %c5_i32 = arith.constant 5 : i32
    %122 = tpu.dynamic_rotate %93 by %c5_i32 dim 1 : vector<8x128xf32>, i32 -> vector<8x128xf32>
    %c112 = arith.constant 112 : index
    %c0_40 = arith.constant 0 : index
    %123 = vector.load %arg5[%c112, %c0_40] : memref<384x128xf32, #tpu.memory_space<vmem>>, vector<8x128xf32>
    tpu.vector_store %arg5[%c112, %c0_40], %122 {strides = array<i32>} : memref<384x128xf32, #tpu.memory_space<vmem>>, vector<8x128xf32>,
    %c4_i32 = arith.constant 4 : i32
    %124 = tpu.dynamic_rotate %93 by %c4_i32 dim 1 : vector<8x128xf32>, i32 -> vector<8x128xf32>
    %c120 = arith.constant 120 : index
    %c0_41 = arith.constant 0 : index
    %125 = vector.load %arg5[%c120, %c0_41] : memref<384x128xf32, #tpu.memory_space<vmem>>, vector<8x128xf32>
    tpu.vector_store %arg5[%c120, %c0_41], %124 {strides = array<i32>} : memref<384x128xf32, #tpu.memory_space<vmem>>, vector<8x128xf32>,
    %c3_i32 = arith.constant 3 : i32
    %126 = tpu.dynamic_rotate %93 by %c3_i32 dim 1 : vector<8x128xf32>, i32 -> vector<8x128xf32>
    %c128_42 = arith.constant 128 : index
    %c0_43 = arith.constant 0 : index
    %127 = vector.load %arg5[%c128_42, %c0_43] : memref<384x128xf32, #tpu.memory_space<vmem>>, vector<8x128xf32>
    tpu.vector_store %arg5[%c128_42, %c0_43], %126 {strides = array<i32>} : memref<384x128xf32, #tpu.memory_space<vmem>>, vector<8x128xf32>,
    %c2_i32 = arith.constant 2 : i32
    %128 = tpu.dynamic_rotate %93 by %c2_i32 dim 1 : vector<8x128xf32>, i32 -> vector<8x128xf32>
    %c136 = arith.constant 136 : index
    %c0_44 = arith.constant 0 : index
    %129 = vector.load %arg5[%c136, %c0_44] : memref<384x128xf32, #tpu.memory_space<vmem>>, vector<8x128xf32>
    tpu.vector_store %arg5[%c136, %c0_44], %128 {strides = array<i32>} : memref<384x128xf32, #tpu.memory_space<vmem>>, vector<8x128xf32>,
    %c1_i32 = arith.constant 1 : i32
    %130 = tpu.dynamic_rotate %93 by %c1_i32 dim 1 : vector<8x128xf32>, i32 -> vector<8x128xf32>
    %c144 = arith.constant 144 : index
    %c0_45 = arith.constant 0 : index
    %131 = vector.load %arg5[%c144, %c0_45] : memref<384x128xf32, #tpu.memory_space<vmem>>, vector<8x128xf32>
    tpu.vector_store %arg5[%c144, %c0_45], %130 {strides = array<i32>} : memref<384x128xf32, #tpu.memory_space<vmem>>, vector<8x128xf32>,
    %c152 = arith.constant 152 : index
    %c0_46 = arith.constant 0 : index
    %132 = vector.load %arg5[%c152, %c0_46] : memref<384x128xf32, #tpu.memory_space<vmem>>, vector<8x128xf32>
    tpu.vector_store %arg5[%c152, %c0_46], %93 {strides = array<i32>} : memref<384x128xf32, #tpu.memory_space<vmem>>, vector<8x128xf32>,
    %c127_i32 = arith.constant 127 : i32
    %133 = tpu.dynamic_rotate %93 by %c127_i32 dim 1 : vector<8x128xf32>, i32 -> vector<8x128xf32>
    %c160_47 = arith.constant 160 : index
    %c0_48 = arith.constant 0 : index
    %134 = vector.load %arg5[%c160_47, %c0_48] : memref<384x128xf32, #tpu.memory_space<vmem>>, vector<8x128xf32>
    tpu.vector_store %arg5[%c160_47, %c0_48], %133 {strides = array<i32>} : memref<384x128xf32, #tpu.memory_space<vmem>>, vector<8x128xf32>,
    %c126_i32 = arith.constant 126 : i32
    %135 = tpu.dynamic_rotate %93 by %c126_i32 dim 1 : vector<8x128xf32>, i32 -> vector<8x128xf32>
    %c168 = arith.constant 168 : index
    %c0_49 = arith.constant 0 : index
    %136 = vector.load %arg5[%c168, %c0_49] : memref<384x128xf32, #tpu.memory_space<vmem>>, vector<8x128xf32>
    tpu.vector_store %arg5[%c168, %c0_49], %135 {strides = array<i32>} : memref<384x128xf32, #tpu.memory_space<vmem>>, vector<8x128xf32>,
    %c125_i32 = arith.constant 125 : i32
    %137 = tpu.dynamic_rotate %93 by %c125_i32 dim 1 : vector<8x128xf32>, i32 -> vector<8x128xf32>
    %c176 = arith.constant 176 : index
    %c0_50 = arith.constant 0 : index
    %138 = vector.load %arg5[%c176, %c0_50] : memref<384x128xf32, #tpu.memory_space<vmem>>, vector<8x128xf32>
    tpu.vector_store %arg5[%c176, %c0_50], %137 {strides = array<i32>} : memref<384x128xf32, #tpu.memory_space<vmem>>, vector<8x128xf32>,
    %c124_i32 = arith.constant 124 : i32
    %139 = tpu.dynamic_rotate %93 by %c124_i32 dim 1 : vector<8x128xf32>, i32 -> vector<8x128xf32>
    %c184 = arith.constant 184 : index
    %c0_51 = arith.constant 0 : index
    %140 = vector.load %arg5[%c184, %c0_51] : memref<384x128xf32, #tpu.memory_space<vmem>>, vector<8x128xf32>
    tpu.vector_store %arg5[%c184, %c0_51], %139 {strides = array<i32>} : memref<384x128xf32, #tpu.memory_space<vmem>>, vector<8x128xf32>,
    %c123_i32 = arith.constant 123 : i32
    %141 = tpu.dynamic_rotate %93 by %c123_i32 dim 1 : vector<8x128xf32>, i32 -> vector<8x128xf32>
    %c192 = arith.constant 192 : index
    %c0_52 = arith.constant 0 : index
    %142 = vector.load %arg5[%c192, %c0_52] : memref<384x128xf32, #tpu.memory_space<vmem>>, vector<8x128xf32>
    tpu.vector_store %arg5[%c192, %c0_52], %141 {strides = array<i32>} : memref<384x128xf32, #tpu.memory_space<vmem>>, vector<8x128xf32>,
    %c122_i32 = arith.constant 122 : i32
    %143 = tpu.dynamic_rotate %93 by %c122_i32 dim 1 : vector<8x128xf32>, i32 -> vector<8x128xf32>
    %c200 = arith.constant 200 : index
    %c0_53 = arith.constant 0 : index
    %144 = vector.load %arg5[%c200, %c0_53] : memref<384x128xf32, #tpu.memory_space<vmem>>, vector<8x128xf32>
    tpu.vector_store %arg5[%c200, %c0_53], %143 {strides = array<i32>} : memref<384x128xf32, #tpu.memory_space<vmem>>, vector<8x128xf32>,
    %c121_i32 = arith.constant 121 : i32
    %145 = tpu.dynamic_rotate %93 by %c121_i32 dim 1 : vector<8x128xf32>, i32 -> vector<8x128xf32>
    %c208 = arith.constant 208 : index
    %c0_54 = arith.constant 0 : index
    %146 = vector.load %arg5[%c208, %c0_54] : memref<384x128xf32, #tpu.memory_space<vmem>>, vector<8x128xf32>
    tpu.vector_store %arg5[%c208, %c0_54], %145 {strides = array<i32>} : memref<384x128xf32, #tpu.memory_space<vmem>>, vector<8x128xf32>,
    %c120_i32 = arith.constant 120 : i32
    %147 = tpu.dynamic_rotate %93 by %c120_i32 dim 1 : vector<8x128xf32>, i32 -> vector<8x128xf32>
    %c216 = arith.constant 216 : index
    %c0_55 = arith.constant 0 : index
    %148 = vector.load %arg5[%c216, %c0_55] : memref<384x128xf32, #tpu.memory_space<vmem>>, vector<8x128xf32>
    tpu.vector_store %arg5[%c216, %c0_55], %147 {strides = array<i32>} : memref<384x128xf32, #tpu.memory_space<vmem>>, vector<8x128xf32>,
    %c119_i32 = arith.constant 119 : i32
    %149 = tpu.dynamic_rotate %93 by %c119_i32 dim 1 : vector<8x128xf32>, i32 -> vector<8x128xf32>
    %c224 = arith.constant 224 : index
    %c0_56 = arith.constant 0 : index
    %150 = vector.load %arg5[%c224, %c0_56] : memref<384x128xf32, #tpu.memory_space<vmem>>, vector<8x128xf32>
    tpu.vector_store %arg5[%c224, %c0_56], %149 {strides = array<i32>} : memref<384x128xf32, #tpu.memory_space<vmem>>, vector<8x128xf32>,
    %c118_i32 = arith.constant 118 : i32
    %151 = tpu.dynamic_rotate %93 by %c118_i32 dim 1 : vector<8x128xf32>, i32 -> vector<8x128xf32>
    %c232 = arith.constant 232 : index
    %c0_57 = arith.constant 0 : index
    %152 = vector.load %arg5[%c232, %c0_57] : memref<384x128xf32, #tpu.memory_space<vmem>>, vector<8x128xf32>
    tpu.vector_store %arg5[%c232, %c0_57], %151 {strides = array<i32>} : memref<384x128xf32, #tpu.memory_space<vmem>>, vector<8x128xf32>,
    %c117_i32 = arith.constant 117 : i32
    %153 = tpu.dynamic_rotate %93 by %c117_i32 dim 1 : vector<8x128xf32>, i32 -> vector<8x128xf32>
    %c240 = arith.constant 240 : index
    %c0_58 = arith.constant 0 : index
    %154 = vector.load %arg5[%c240, %c0_58] : memref<384x128xf32, #tpu.memory_space<vmem>>, vector<8x128xf32>
    tpu.vector_store %arg5[%c240, %c0_58], %153 {strides = array<i32>} : memref<384x128xf32, #tpu.memory_space<vmem>>, vector<8x128xf32>,
    %c116_i32 = arith.constant 116 : i32
    %155 = tpu.dynamic_rotate %93 by %c116_i32 dim 1 : vector<8x128xf32>, i32 -> vector<8x128xf32>
    %c248 = arith.constant 248 : index
    %c0_59 = arith.constant 0 : index
    %156 = vector.load %arg5[%c248, %c0_59] : memref<384x128xf32, #tpu.memory_space<vmem>>, vector<8x128xf32>
    tpu.vector_store %arg5[%c248, %c0_59], %155 {strides = array<i32>} : memref<384x128xf32, #tpu.memory_space<vmem>>, vector<8x128xf32>,
    %c115_i32 = arith.constant 115 : i32
    %157 = tpu.dynamic_rotate %93 by %c115_i32 dim 1 : vector<8x128xf32>, i32 -> vector<8x128xf32>
    %c256 = arith.constant 256 : index
    %c0_60 = arith.constant 0 : index
    %158 = vector.load %arg5[%c256, %c0_60] : memref<384x128xf32, #tpu.memory_space<vmem>>, vector<8x128xf32>
    tpu.vector_store %arg5[%c256, %c0_60], %157 {strides = array<i32>} : memref<384x128xf32, #tpu.memory_space<vmem>>, vector<8x128xf32>,
    %c114_i32 = arith.constant 114 : i32
    %159 = tpu.dynamic_rotate %93 by %c114_i32 dim 1 : vector<8x128xf32>, i32 -> vector<8x128xf32>
    %c264 = arith.constant 264 : index
    %c0_61 = arith.constant 0 : index
    %160 = vector.load %arg5[%c264, %c0_61] : memref<384x128xf32, #tpu.memory_space<vmem>>, vector<8x128xf32>
    tpu.vector_store %arg5[%c264, %c0_61], %159 {strides = array<i32>} : memref<384x128xf32, #tpu.memory_space<vmem>>, vector<8x128xf32>,
    %c113_i32 = arith.constant 113 : i32
    %161 = tpu.dynamic_rotate %93 by %c113_i32 dim 1 : vector<8x128xf32>, i32 -> vector<8x128xf32>
    %c272 = arith.constant 272 : index
    %c0_62 = arith.constant 0 : index
    %162 = vector.load %arg5[%c272, %c0_62] : memref<384x128xf32, #tpu.memory_space<vmem>>, vector<8x128xf32>
    tpu.vector_store %arg5[%c272, %c0_62], %161 {strides = array<i32>} : memref<384x128xf32, #tpu.memory_space<vmem>>, vector<8x128xf32>,
    %c112_i32 = arith.constant 112 : i32
    %163 = tpu.dynamic_rotate %93 by %c112_i32 dim 1 : vector<8x128xf32>, i32 -> vector<8x128xf32>
    %c280 = arith.constant 280 : index
    %c0_63 = arith.constant 0 : index
    %164 = vector.load %arg5[%c280, %c0_63] : memref<384x128xf32, #tpu.memory_space<vmem>>, vector<8x128xf32>
    tpu.vector_store %arg5[%c280, %c0_63], %163 {strides = array<i32>} : memref<384x128xf32, #tpu.memory_space<vmem>>, vector<8x128xf32>,
    %c111_i32 = arith.constant 111 : i32
    %165 = tpu.dynamic_rotate %93 by %c111_i32 dim 1 : vector<8x128xf32>, i32 -> vector<8x128xf32>
    %c288 = arith.constant 288 : index
    %c0_64 = arith.constant 0 : index
    %166 = vector.load %arg5[%c288, %c0_64] : memref<384x128xf32, #tpu.memory_space<vmem>>, vector<8x128xf32>
    tpu.vector_store %arg5[%c288, %c0_64], %165 {strides = array<i32>} : memref<384x128xf32, #tpu.memory_space<vmem>>, vector<8x128xf32>,
    %c110_i32 = arith.constant 110 : i32
    %167 = tpu.dynamic_rotate %93 by %c110_i32 dim 1 : vector<8x128xf32>, i32 -> vector<8x128xf32>
    %c296 = arith.constant 296 : index
    %c0_65 = arith.constant 0 : index
    %168 = vector.load %arg5[%c296, %c0_65] : memref<384x128xf32, #tpu.memory_space<vmem>>, vector<8x128xf32>
    tpu.vector_store %arg5[%c296, %c0_65], %167 {strides = array<i32>} : memref<384x128xf32, #tpu.memory_space<vmem>>, vector<8x128xf32>,
    %c109_i32 = arith.constant 109 : i32
    %169 = tpu.dynamic_rotate %93 by %c109_i32 dim 1 : vector<8x128xf32>, i32 -> vector<8x128xf32>
    %c304 = arith.constant 304 : index
    %c0_66 = arith.constant 0 : index
    %170 = vector.load %arg5[%c304, %c0_66] : memref<384x128xf32, #tpu.memory_space<vmem>>, vector<8x128xf32>
    tpu.vector_store %arg5[%c304, %c0_66], %169 {strides = array<i32>} : memref<384x128xf32, #tpu.memory_space<vmem>>, vector<8x128xf32>,
    %cst_67 = arith.constant -3.000000e+38 : f32
    %171 = vector.broadcast %cst_67 : f32 to vector<8x128xf32>
    %172 = arith.select %4, %91, %171 : vector<8x128xi1>, vector<8x128xf32>
    %c1_i32_68 = arith.constant 1 : i32
    %173 = tpu.dynamic_rotate %172 by %c1_i32_68 dim 1 : vector<8x128xf32>, i32 -> vector<8x128xf32>
    %174 = arith.maximumf %173, %172 : vector<8x128xf32>
    %c127_i32_69 = arith.constant 127 : i32
    %175 = tpu.dynamic_rotate %172 by %c127_i32_69 dim 1 : vector<8x128xf32>, i32 -> vector<8x128xf32>
    %176 = arith.maximumf %174, %175 : vector<8x128xf32>
    %cst_70 = arith.constant 0.000000e+00 : f32
    %177 = vector.broadcast %cst_70 : f32 to vector<8x128xf32>
    %178 = arith.select %4, %176, %177 : vector<8x128xi1>, vector<8x128xf32>
    %c312 = arith.constant 312 : index
    %c0_71 = arith.constant 0 : index
    %179 = vector.load %arg5[%c312, %c0_71] : memref<384x128xf32, #tpu.memory_space<vmem>>, vector<8x128xf32>
    tpu.vector_store %arg5[%c312, %c0_71], %178 {strides = array<i32>} : memref<384x128xf32, #tpu.memory_space<vmem>>, vector<8x128xf32>,
    %cst_72 = arith.constant 0.000000e+00 : f32
    %180 = vector.broadcast %cst_72 : f32 to vector<32x128xf32>
    %c0_73 = arith.constant 0 : index
    %c0_74 = arith.constant 0 : index
    %181 = vector.load %arg2[%c0_73, %c0_74] : memref<192x384xf32, #tpu.memory_space<vmem>>, vector<32x128xf32>
    %c0_75 = arith.constant 0 : index
    %c0_76 = arith.constant 0 : index
    %182 = vector.load %arg5[%c0_75, %c0_76] : memref<384x128xf32, #tpu.memory_space<vmem>>, vector<128x128xf32>
    %cst_77 = arith.constant dense<0.000000e+00> : vector<32x128xf32>
    %183 = tpu.matmul %181, %182, %cst_77 {dimension_numbers = #tpu.dot_dimension_numbers<[1], [0], [0], [1], [0, 0, 1, 1], [], []>} : vector<32x128xf32>, vector<128x128xf32>, vector<32x128xf32> -> vector<32x128xf32>
    %184 = arith.addf %180, %183 : vector<32x128xf32>
    %c0_78 = arith.constant 0 : index
    %c128_79 = arith.constant 128 : index
    %185 = vector.load %arg2[%c0_78, %c128_79] : memref<192x384xf32, #tpu.memory_space<vmem>>, vector<32x128xf32>
    %c128_80 = arith.constant 128 : index
    %c0_81 = arith.constant 0 : index
    %186 = vector.load %arg5[%c128_80, %c0_81] : memref<384x128xf32, #tpu.memory_space<vmem>>, vector<128x128xf32>
    %cst_82 = arith.constant dense<0.000000e+00> : vector<32x128xf32>
    %187 = tpu.matmul %185, %186, %cst_82 {dimension_numbers = #tpu.dot_dimension_numbers<[1], [0], [0], [1], [0, 0, 1, 1], [], []>} : vector<32x128xf32>, vector<128x128xf32>, vector<32x128xf32> -> vector<32x128xf32>
    %188 = arith.addf %184, %187 : vector<32x128xf32>
    %c0_83 = arith.constant 0 : index
    %c256_84 = arith.constant 256 : index
    %189 = vector.load %arg2[%c0_83, %c256_84] : memref<192x384xf32, #tpu.memory_space<vmem>>, vector<32x128xf32>
    %c256_85 = arith.constant 256 : index
    %c0_86 = arith.constant 0 : index
    %190 = vector.load %arg5[%c256_85, %c0_86] : memref<384x128xf32, #tpu.memory_space<vmem>>, vector<128x128xf32>
    %cst_87 = arith.constant dense<0.000000e+00> : vector<32x128xf32>
    %191 = tpu.matmul %189, %190, %cst_87 {dimension_numbers = #tpu.dot_dimension_numbers<[1], [0], [0], [1], [0, 0, 1, 1], [], []>} : vector<32x128xf32>, vector<128x128xf32>, vector<32x128xf32> -> vector<32x128xf32>
    %192 = arith.addf %188, %191 : vector<32x128xf32>
    %cst_88 = arith.constant 0.000000e+00 : f32
    %193 = vector.broadcast %cst_88 : f32 to vector<32x128xf32>
    %194 = arith.maximumf %192, %193 : vector<32x128xf32>
    %cst_89 = arith.constant 0.000000e+00 : f32
    %195 = vector.broadcast %cst_89 : f32 to vector<32x128xf32>
    %196 = arith.select %6, %194, %195 : vector<32x128xi1>, vector<32x128xf32>
    %c8_90 = arith.constant 8 : index
    %c0_91 = arith.constant 0 : index
    %197 = vector.load %arg3[%c8_90, %c0_91] : memref<80x32xf32, #tpu.memory_space<vmem>>, vector<8x32xf32>
    %cst_92 = arith.constant dense<0.000000e+00> : vector<8x128xf32>
    %198 = tpu.matmul %197, %196, %cst_92 {dimension_numbers = #tpu.dot_dimension_numbers<[1], [0], [0], [1], [0, 0, 1, 1], [], []>} : vector<8x32xf32>, vector<32x128xf32>, vector<8x128xf32> -> vector<8x128xf32>
    %c19_i32_93 = arith.constant 19 : i32
    %199 = tpu.dynamic_rotate %198 by %c19_i32_93 dim 1 : vector<8x128xf32>, i32 -> vector<8x128xf32>
    %c0_94 = arith.constant 0 : index
    %c0_95 = arith.constant 0 : index
    %200 = vector.load %arg5[%c0_94, %c0_95] : memref<384x128xf32, #tpu.memory_space<vmem>>, vector<8x128xf32>
    tpu.vector_store %arg5[%c0_94, %c0_95], %199 {strides = array<i32>} : memref<384x128xf32, #tpu.memory_space<vmem>>, vector<8x128xf32>,
    %c18_i32_96 = arith.constant 18 : i32
    %201 = tpu.dynamic_rotate %198 by %c18_i32_96 dim 1 : vector<8x128xf32>, i32 -> vector<8x128xf32>
    %c8_97 = arith.constant 8 : index
    %c0_98 = arith.constant 0 : index
    %202 = vector.load %arg5[%c8_97, %c0_98] : memref<384x128xf32, #tpu.memory_space<vmem>>, vector<8x128xf32>
    tpu.vector_store %arg5[%c8_97, %c0_98], %201 {strides = array<i32>} : memref<384x128xf32, #tpu.memory_space<vmem>>, vector<8x128xf32>,
    %c17_i32_99 = arith.constant 17 : i32
    %203 = tpu.dynamic_rotate %198 by %c17_i32_99 dim 1 : vector<8x128xf32>, i32 -> vector<8x128xf32>
    %c16_100 = arith.constant 16 : index
    %c0_101 = arith.constant 0 : index
    %204 = vector.load %arg5[%c16_100, %c0_101] : memref<384x128xf32, #tpu.memory_space<vmem>>, vector<8x128xf32>
    tpu.vector_store %arg5[%c16_100, %c0_101], %203 {strides = array<i32>} : memref<384x128xf32, #tpu.memory_space<vmem>>, vector<8x128xf32>,
    %c16_i32_102 = arith.constant 16 : i32
    %205 = tpu.dynamic_rotate %198 by %c16_i32_102 dim 1 : vector<8x128xf32>, i32 -> vector<8x128xf32>
    %c24_103 = arith.constant 24 : index
    %c0_104 = arith.constant 0 : index
    %206 = vector.load %arg5[%c24_103, %c0_104] : memref<384x128xf32, #tpu.memory_space<vmem>>, vector<8x128xf32>
    tpu.vector_store %arg5[%c24_103, %c0_104], %205 {strides = array<i32>} : memref<384x128xf32, #tpu.memory_space<vmem>>, vector<8x128xf32>,
    %c15_i32_105 = arith.constant 15 : i32
    %207 = tpu.dynamic_rotate %198 by %c15_i32_105 dim 1 : vector<8x128xf32>, i32 -> vector<8x128xf32>
    %c32_106 = arith.constant 32 : index
    %c0_107 = arith.constant 0 : index
    %208 = vector.load %arg5[%c32_106, %c0_107] : memref<384x128xf32, #tpu.memory_space<vmem>>, vector<8x128xf32>
    tpu.vector_store %arg5[%c32_106, %c0_107], %207 {strides = array<i32>} : memref<384x128xf32, #tpu.memory_space<vmem>>, vector<8x128xf32>,
    %c14_i32_108 = arith.constant 14 : i32
    %209 = tpu.dynamic_rotate %198 by %c14_i32_108 dim 1 : vector<8x128xf32>, i32 -> vector<8x128xf32>
    %c40_109 = arith.constant 40 : index
    %c0_110 = arith.constant 0 : index
    %210 = vector.load %arg5[%c40_109, %c0_110] : memref<384x128xf32, #tpu.memory_space<vmem>>, vector<8x128xf32>
    tpu.vector_store %arg5[%c40_109, %c0_110], %209 {strides = array<i32>} : memref<384x128xf32, #tpu.memory_space<vmem>>, vector<8x128xf32>,
    %c13_i32_111 = arith.constant 13 : i32
    %211 = tpu.dynamic_rotate %198 by %c13_i32_111 dim 1 : vector<8x128xf32>, i32 -> vector<8x128xf32>
    %c48_112 = arith.constant 48 : index
    %c0_113 = arith.constant 0 : index
    %212 = vector.load %arg5[%c48_112, %c0_113] : memref<384x128xf32, #tpu.memory_space<vmem>>, vector<8x128xf32>
    tpu.vector_store %arg5[%c48_112, %c0_113], %211 {strides = array<i32>} : memref<384x128xf32, #tpu.memory_space<vmem>>, vector<8x128xf32>,
    %c12_i32_114 = arith.constant 12 : i32
    %213 = tpu.dynamic_rotate %198 by %c12_i32_114 dim 1 : vector<8x128xf32>, i32 -> vector<8x128xf32>
    %c56_115 = arith.constant 56 : index
    %c0_116 = arith.constant 0 : index
    %214 = vector.load %arg5[%c56_115, %c0_116] : memref<384x128xf32, #tpu.memory_space<vmem>>, vector<8x128xf32>
    tpu.vector_store %arg5[%c56_115, %c0_116], %213 {strides = array<i32>} : memref<384x128xf32, #tpu.memory_space<vmem>>, vector<8x128xf32>,
    %c11_i32_117 = arith.constant 11 : i32
    %215 = tpu.dynamic_rotate %198 by %c11_i32_117 dim 1 : vector<8x128xf32>, i32 -> vector<8x128xf32>
    %c64_118 = arith.constant 64 : index
    %c0_119 = arith.constant 0 : index
    %216 = vector.load %arg5[%c64_118, %c0_119] : memref<384x128xf32, #tpu.memory_space<vmem>>, vector<8x128xf32>
    tpu.vector_store %arg5[%c64_118, %c0_119], %215 {strides = array<i32>} : memref<384x128xf32, #tpu.memory_space<vmem>>, vector<8x128xf32>,
    %c10_i32_120 = arith.constant 10 : i32
    %217 = tpu.dynamic_rotate %198 by %c10_i32_120 dim 1 : vector<8x128xf32>, i32 -> vector<8x128xf32>
    %c72_121 = arith.constant 72 : index
    %c0_122 = arith.constant 0 : index
    %218 = vector.load %arg5[%c72_121, %c0_122] : memref<384x128xf32, #tpu.memory_space<vmem>>, vector<8x128xf32>
    tpu.vector_store %arg5[%c72_121, %c0_122], %217 {strides = array<i32>} : memref<384x128xf32, #tpu.memory_space<vmem>>, vector<8x128xf32>,
    %c9_i32_123 = arith.constant 9 : i32
    %219 = tpu.dynamic_rotate %198 by %c9_i32_123 dim 1 : vector<8x128xf32>, i32 -> vector<8x128xf32>
    %c80_124 = arith.constant 80 : index
    %c0_125 = arith.constant 0 : index
    %220 = vector.load %arg5[%c80_124, %c0_125] : memref<384x128xf32, #tpu.memory_space<vmem>>, vector<8x128xf32>
    tpu.vector_store %arg5[%c80_124, %c0_125], %219 {strides = array<i32>} : memref<384x128xf32, #tpu.memory_space<vmem>>, vector<8x128xf32>,
    %c8_i32_126 = arith.constant 8 : i32
    %221 = tpu.dynamic_rotate %198 by %c8_i32_126 dim 1 : vector<8x128xf32>, i32 -> vector<8x128xf32>
    %c88_127 = arith.constant 88 : index
    %c0_128 = arith.constant 0 : index
    %222 = vector.load %arg5[%c88_127, %c0_128] : memref<384x128xf32, #tpu.memory_space<vmem>>, vector<8x128xf32>
    tpu.vector_store %arg5[%c88_127, %c0_128], %221 {strides = array<i32>} : memref<384x128xf32, #tpu.memory_space<vmem>>, vector<8x128xf32>,
    %c7_i32_129 = arith.constant 7 : i32
    %223 = tpu.dynamic_rotate %198 by %c7_i32_129 dim 1 : vector<8x128xf32>, i32 -> vector<8x128xf32>
    %c96_130 = arith.constant 96 : index
    %c0_131 = arith.constant 0 : index
    %224 = vector.load %arg5[%c96_130, %c0_131] : memref<384x128xf32, #tpu.memory_space<vmem>>, vector<8x128xf32>
    tpu.vector_store %arg5[%c96_130, %c0_131], %223 {strides = array<i32>} : memref<384x128xf32, #tpu.memory_space<vmem>>, vector<8x128xf32>,
    %c6_i32_132 = arith.constant 6 : i32
    %225 = tpu.dynamic_rotate %198 by %c6_i32_132 dim 1 : vector<8x128xf32>, i32 -> vector<8x128xf32>
    %c104_133 = arith.constant 104 : index
    %c0_134 = arith.constant 0 : index
    %226 = vector.load %arg5[%c104_133, %c0_134] : memref<384x128xf32, #tpu.memory_space<vmem>>, vector<8x128xf32>
    tpu.vector_store %arg5[%c104_133, %c0_134], %225 {strides = array<i32>} : memref<384x128xf32, #tpu.memory_space<vmem>>, vector<8x128xf32>,
    %c5_i32_135 = arith.constant 5 : i32
    %227 = tpu.dynamic_rotate %198 by %c5_i32_135 dim 1 : vector<8x128xf32>, i32 -> vector<8x128xf32>
    %c112_136 = arith.constant 112 : index
    %c0_137 = arith.constant 0 : index
    %228 = vector.load %arg5[%c112_136, %c0_137] : memref<384x128xf32, #tpu.memory_space<vmem>>, vector<8x128xf32>
    tpu.vector_store %arg5[%c112_136, %c0_137], %227 {strides = array<i32>} : memref<384x128xf32, #tpu.memory_space<vmem>>, vector<8x128xf32>,
    %c4_i32_138 = arith.constant 4 : i32
    %229 = tpu.dynamic_rotate %198 by %c4_i32_138 dim 1 : vector<8x128xf32>, i32 -> vector<8x128xf32>
    %c120_139 = arith.constant 120 : index
    %c0_140 = arith.constant 0 : index
    %230 = vector.load %arg5[%c120_139, %c0_140] : memref<384x128xf32, #tpu.memory_space<vmem>>, vector<8x128xf32>
    tpu.vector_store %arg5[%c120_139, %c0_140], %229 {strides = array<i32>} : memref<384x128xf32, #tpu.memory_space<vmem>>, vector<8x128xf32>,
    %c3_i32_141 = arith.constant 3 : i32
    %231 = tpu.dynamic_rotate %198 by %c3_i32_141 dim 1 : vector<8x128xf32>, i32 -> vector<8x128xf32>
    %c128_142 = arith.constant 128 : index
    %c0_143 = arith.constant 0 : index
    %232 = vector.load %arg5[%c128_142, %c0_143] : memref<384x128xf32, #tpu.memory_space<vmem>>, vector<8x128xf32>
    tpu.vector_store %arg5[%c128_142, %c0_143], %231 {strides = array<i32>} : memref<384x128xf32, #tpu.memory_space<vmem>>, vector<8x128xf32>,
    %c2_i32_144 = arith.constant 2 : i32
    %233 = tpu.dynamic_rotate %198 by %c2_i32_144 dim 1 : vector<8x128xf32>, i32 -> vector<8x128xf32>
    %c136_145 = arith.constant 136 : index
    %c0_146 = arith.constant 0 : index
    %234 = vector.load %arg5[%c136_145, %c0_146] : memref<384x128xf32, #tpu.memory_space<vmem>>, vector<8x128xf32>
    tpu.vector_store %arg5[%c136_145, %c0_146], %233 {strides = array<i32>} : memref<384x128xf32, #tpu.memory_space<vmem>>, vector<8x128xf32>,
    %c1_i32_147 = arith.constant 1 : i32
    %235 = tpu.dynamic_rotate %198 by %c1_i32_147 dim 1 : vector<8x128xf32>, i32 -> vector<8x128xf32>
    %c144_148 = arith.constant 144 : index
    %c0_149 = arith.constant 0 : index
    %236 = vector.load %arg5[%c144_148, %c0_149] : memref<384x128xf32, #tpu.memory_space<vmem>>, vector<8x128xf32>
    tpu.vector_store %arg5[%c144_148, %c0_149], %235 {strides = array<i32>} : memref<384x128xf32, #tpu.memory_space<vmem>>, vector<8x128xf32>,
    %c152_150 = arith.constant 152 : index
    %c0_151 = arith.constant 0 : index
    %237 = vector.load %arg5[%c152_150, %c0_151] : memref<384x128xf32, #tpu.memory_space<vmem>>, vector<8x128xf32>
    tpu.vector_store %arg5[%c152_150, %c0_151], %198 {strides = array<i32>} : memref<384x128xf32, #tpu.memory_space<vmem>>, vector<8x128xf32>,
    %c127_i32_152 = arith.constant 127 : i32
    %238 = tpu.dynamic_rotate %198 by %c127_i32_152 dim 1 : vector<8x128xf32>, i32 -> vector<8x128xf32>
    %c160_153 = arith.constant 160 : index
    %c0_154 = arith.constant 0 : index
    %239 = vector.load %arg5[%c160_153, %c0_154] : memref<384x128xf32, #tpu.memory_space<vmem>>, vector<8x128xf32>
    tpu.vector_store %arg5[%c160_153, %c0_154], %238 {strides = array<i32>} : memref<384x128xf32, #tpu.memory_space<vmem>>, vector<8x128xf32>,
    %c126_i32_155 = arith.constant 126 : i32
    %240 = tpu.dynamic_rotate %198 by %c126_i32_155 dim 1 : vector<8x128xf32>, i32 -> vector<8x128xf32>
    %c168_156 = arith.constant 168 : index
    %c0_157 = arith.constant 0 : index
    %241 = vector.load %arg5[%c168_156, %c0_157] : memref<384x128xf32, #tpu.memory_space<vmem>>, vector<8x128xf32>
    tpu.vector_store %arg5[%c168_156, %c0_157], %240 {strides = array<i32>} : memref<384x128xf32, #tpu.memory_space<vmem>>, vector<8x128xf32>,
    %c125_i32_158 = arith.constant 125 : i32
    %242 = tpu.dynamic_rotate %198 by %c125_i32_158 dim 1 : vector<8x128xf32>, i32 -> vector<8x128xf32>
    %c176_159 = arith.constant 176 : index
    %c0_160 = arith.constant 0 : index
    %243 = vector.load %arg5[%c176_159, %c0_160] : memref<384x128xf32, #tpu.memory_space<vmem>>, vector<8x128xf32>
    tpu.vector_store %arg5[%c176_159, %c0_160], %242 {strides = array<i32>} : memref<384x128xf32, #tpu.memory_space<vmem>>, vector<8x128xf32>,
    %c124_i32_161 = arith.constant 124 : i32
    %244 = tpu.dynamic_rotate %198 by %c124_i32_161 dim 1 : vector<8x128xf32>, i32 -> vector<8x128xf32>
    %c184_162 = arith.constant 184 : index
    %c0_163 = arith.constant 0 : index
    %245 = vector.load %arg5[%c184_162, %c0_163] : memref<384x128xf32, #tpu.memory_space<vmem>>, vector<8x128xf32>
    tpu.vector_store %arg5[%c184_162, %c0_163], %244 {strides = array<i32>} : memref<384x128xf32, #tpu.memory_space<vmem>>, vector<8x128xf32>,
    %c123_i32_164 = arith.constant 123 : i32
    %246 = tpu.dynamic_rotate %198 by %c123_i32_164 dim 1 : vector<8x128xf32>, i32 -> vector<8x128xf32>
    %c192_165 = arith.constant 192 : index
    %c0_166 = arith.constant 0 : index
    %247 = vector.load %arg5[%c192_165, %c0_166] : memref<384x128xf32, #tpu.memory_space<vmem>>, vector<8x128xf32>
    tpu.vector_store %arg5[%c192_165, %c0_166], %246 {strides = array<i32>} : memref<384x128xf32, #tpu.memory_space<vmem>>, vector<8x128xf32>,
    %c122_i32_167 = arith.constant 122 : i32
    %248 = tpu.dynamic_rotate %198 by %c122_i32_167 dim 1 : vector<8x128xf32>, i32 -> vector<8x128xf32>
    %c200_168 = arith.constant 200 : index
    %c0_169 = arith.constant 0 : index
    %249 = vector.load %arg5[%c200_168, %c0_169] : memref<384x128xf32, #tpu.memory_space<vmem>>, vector<8x128xf32>
    tpu.vector_store %arg5[%c200_168, %c0_169], %248 {strides = array<i32>} : memref<384x128xf32, #tpu.memory_space<vmem>>, vector<8x128xf32>,
    %c121_i32_170 = arith.constant 121 : i32
    %250 = tpu.dynamic_rotate %198 by %c121_i32_170 dim 1 : vector<8x128xf32>, i32 -> vector<8x128xf32>
    %c208_171 = arith.constant 208 : index
    %c0_172 = arith.constant 0 : index
    %251 = vector.load %arg5[%c208_171, %c0_172] : memref<384x128xf32, #tpu.memory_space<vmem>>, vector<8x128xf32>
    tpu.vector_store %arg5[%c208_171, %c0_172], %250 {strides = array<i32>} : memref<384x128xf32, #tpu.memory_space<vmem>>, vector<8x128xf32>,
    %c120_i32_173 = arith.constant 120 : i32
    %252 = tpu.dynamic_rotate %198 by %c120_i32_173 dim 1 : vector<8x128xf32>, i32 -> vector<8x128xf32>
    %c216_174 = arith.constant 216 : index
    %c0_175 = arith.constant 0 : index
    %253 = vector.load %arg5[%c216_174, %c0_175] : memref<384x128xf32, #tpu.memory_space<vmem>>, vector<8x128xf32>
    tpu.vector_store %arg5[%c216_174, %c0_175], %252 {strides = array<i32>} : memref<384x128xf32, #tpu.memory_space<vmem>>, vector<8x128xf32>,
    %c119_i32_176 = arith.constant 119 : i32
    %254 = tpu.dynamic_rotate %198 by %c119_i32_176 dim 1 : vector<8x128xf32>, i32 -> vector<8x128xf32>
    %c224_177 = arith.constant 224 : index
    %c0_178 = arith.constant 0 : index
    %255 = vector.load %arg5[%c224_177, %c0_178] : memref<384x128xf32, #tpu.memory_space<vmem>>, vector<8x128xf32>
    tpu.vector_store %arg5[%c224_177, %c0_178], %254 {strides = array<i32>} : memref<384x128xf32, #tpu.memory_space<vmem>>, vector<8x128xf32>,
    %c118_i32_179 = arith.constant 118 : i32
    %256 = tpu.dynamic_rotate %198 by %c118_i32_179 dim 1 : vector<8x128xf32>, i32 -> vector<8x128xf32>
    %c232_180 = arith.constant 232 : index
    %c0_181 = arith.constant 0 : index
    %257 = vector.load %arg5[%c232_180, %c0_181] : memref<384x128xf32, #tpu.memory_space<vmem>>, vector<8x128xf32>
    tpu.vector_store %arg5[%c232_180, %c0_181], %256 {strides = array<i32>} : memref<384x128xf32, #tpu.memory_space<vmem>>, vector<8x128xf32>,
    %c117_i32_182 = arith.constant 117 : i32
    %258 = tpu.dynamic_rotate %198 by %c117_i32_182 dim 1 : vector<8x128xf32>, i32 -> vector<8x128xf32>
    %c240_183 = arith.constant 240 : index
    %c0_184 = arith.constant 0 : index
    %259 = vector.load %arg5[%c240_183, %c0_184] : memref<384x128xf32, #tpu.memory_space<vmem>>, vector<8x128xf32>
    tpu.vector_store %arg5[%c240_183, %c0_184], %258 {strides = array<i32>} : memref<384x128xf32, #tpu.memory_space<vmem>>, vector<8x128xf32>,
    %c116_i32_185 = arith.constant 116 : i32
    %260 = tpu.dynamic_rotate %198 by %c116_i32_185 dim 1 : vector<8x128xf32>, i32 -> vector<8x128xf32>
    %c248_186 = arith.constant 248 : index
    %c0_187 = arith.constant 0 : index
    %261 = vector.load %arg5[%c248_186, %c0_187] : memref<384x128xf32, #tpu.memory_space<vmem>>, vector<8x128xf32>
    tpu.vector_store %arg5[%c248_186, %c0_187], %260 {strides = array<i32>} : memref<384x128xf32, #tpu.memory_space<vmem>>, vector<8x128xf32>,
    %c115_i32_188 = arith.constant 115 : i32
    %262 = tpu.dynamic_rotate %198 by %c115_i32_188 dim 1 : vector<8x128xf32>, i32 -> vector<8x128xf32>
    %c256_189 = arith.constant 256 : index
    %c0_190 = arith.constant 0 : index
    %263 = vector.load %arg5[%c256_189, %c0_190] : memref<384x128xf32, #tpu.memory_space<vmem>>, vector<8x128xf32>
    tpu.vector_store %arg5[%c256_189, %c0_190], %262 {strides = array<i32>} : memref<384x128xf32, #tpu.memory_space<vmem>>, vector<8x128xf32>,
    %c114_i32_191 = arith.constant 114 : i32
    %264 = tpu.dynamic_rotate %198 by %c114_i32_191 dim 1 : vector<8x128xf32>, i32 -> vector<8x128xf32>
    %c264_192 = arith.constant 264 : index
    %c0_193 = arith.constant 0 : index
    %265 = vector.load %arg5[%c264_192, %c0_193] : memref<384x128xf32, #tpu.memory_space<vmem>>, vector<8x128xf32>
    tpu.vector_store %arg5[%c264_192, %c0_193], %264 {strides = array<i32>} : memref<384x128xf32, #tpu.memory_space<vmem>>, vector<8x128xf32>,
    %c113_i32_194 = arith.constant 113 : i32
    %266 = tpu.dynamic_rotate %198 by %c113_i32_194 dim 1 : vector<8x128xf32>, i32 -> vector<8x128xf32>
    %c272_195 = arith.constant 272 : index
    %c0_196 = arith.constant 0 : index
    %267 = vector.load %arg5[%c272_195, %c0_196] : memref<384x128xf32, #tpu.memory_space<vmem>>, vector<8x128xf32>
    tpu.vector_store %arg5[%c272_195, %c0_196], %266 {strides = array<i32>} : memref<384x128xf32, #tpu.memory_space<vmem>>, vector<8x128xf32>,
    %c112_i32_197 = arith.constant 112 : i32
    %268 = tpu.dynamic_rotate %198 by %c112_i32_197 dim 1 : vector<8x128xf32>, i32 -> vector<8x128xf32>
    %c280_198 = arith.constant 280 : index
    %c0_199 = arith.constant 0 : index
    %269 = vector.load %arg5[%c280_198, %c0_199] : memref<384x128xf32, #tpu.memory_space<vmem>>, vector<8x128xf32>
    tpu.vector_store %arg5[%c280_198, %c0_199], %268 {strides = array<i32>} : memref<384x128xf32, #tpu.memory_space<vmem>>, vector<8x128xf32>,
    %c111_i32_200 = arith.constant 111 : i32
    %270 = tpu.dynamic_rotate %198 by %c111_i32_200 dim 1 : vector<8x128xf32>, i32 -> vector<8x128xf32>
    %c288_201 = arith.constant 288 : index
    %c0_202 = arith.constant 0 : index
    %271 = vector.load %arg5[%c288_201, %c0_202] : memref<384x128xf32, #tpu.memory_space<vmem>>, vector<8x128xf32>
    tpu.vector_store %arg5[%c288_201, %c0_202], %270 {strides = array<i32>} : memref<384x128xf32, #tpu.memory_space<vmem>>, vector<8x128xf32>,
    %c110_i32_203 = arith.constant 110 : i32
    %272 = tpu.dynamic_rotate %198 by %c110_i32_203 dim 1 : vector<8x128xf32>, i32 -> vector<8x128xf32>
    %c296_204 = arith.constant 296 : index
    %c0_205 = arith.constant 0 : index
    %273 = vector.load %arg5[%c296_204, %c0_205] : memref<384x128xf32, #tpu.memory_space<vmem>>, vector<8x128xf32>
    tpu.vector_store %arg5[%c296_204, %c0_205], %272 {strides = array<i32>} : memref<384x128xf32, #tpu.memory_space<vmem>>, vector<8x128xf32>,
    %c109_i32_206 = arith.constant 109 : i32
    %274 = tpu.dynamic_rotate %198 by %c109_i32_206 dim 1 : vector<8x128xf32>, i32 -> vector<8x128xf32>
    %c304_207 = arith.constant 304 : index
    %c0_208 = arith.constant 0 : index
    %275 = vector.load %arg5[%c304_207, %c0_208] : memref<384x128xf32, #tpu.memory_space<vmem>>, vector<8x128xf32>
    tpu.vector_store %arg5[%c304_207, %c0_208], %274 {strides = array<i32>} : memref<384x128xf32, #tpu.memory_space<vmem>>, vector<8x128xf32>,
    %cst_209 = arith.constant -3.000000e+38 : f32
    %276 = vector.broadcast %cst_209 : f32 to vector<32x128xf32>
    %277 = arith.select %6, %196, %276 : vector<32x128xi1>, vector<32x128xf32>
    %c1_i32_210 = arith.constant 1 : i32
    %278 = tpu.dynamic_rotate %277 by %c1_i32_210 dim 1 : vector<32x128xf32>, i32 -> vector<32x128xf32>
    %279 = arith.maximumf %278, %277 : vector<32x128xf32>
    %c127_i32_211 = arith.constant 127 : i32
    %280 = tpu.dynamic_rotate %277 by %c127_i32_211 dim 1 : vector<32x128xf32>, i32 -> vector<32x128xf32>
    %281 = arith.maximumf %279, %280 : vector<32x128xf32>
    %cst_212 = arith.constant 0.000000e+00 : f32
    %282 = vector.broadcast %cst_212 : f32 to vector<32x128xf32>
    %283 = arith.select %6, %281, %282 : vector<32x128xi1>, vector<32x128xf32>
    %c312_213 = arith.constant 312 : index
    %c0_214 = arith.constant 0 : index
    %284 = vector.load %arg5[%c312_213, %c0_214] : memref<384x128xf32, #tpu.memory_space<vmem>>, vector<32x128xf32>
    tpu.vector_store %arg5[%c312_213, %c0_214], %283 {strides = array<i32>} : memref<384x128xf32, #tpu.memory_space<vmem>>, vector<32x128xf32>,
    %cst_215 = arith.constant 0.000000e+00 : f32
    %285 = vector.broadcast %cst_215 : f32 to vector<32x128xf32>
    %c32_216 = arith.constant 32 : index
    %c0_217 = arith.constant 0 : index
    %286 = vector.load %arg2[%c32_216, %c0_217] : memref<192x384xf32, #tpu.memory_space<vmem>>, vector<32x128xf32>
    %c0_218 = arith.constant 0 : index
    %c0_219 = arith.constant 0 : index
    %287 = vector.load %arg5[%c0_218, %c0_219] : memref<384x128xf32, #tpu.memory_space<vmem>>, vector<128x128xf32>
    %cst_220 = arith.constant dense<0.000000e+00> : vector<32x128xf32>
    %288 = tpu.matmul %286, %287, %cst_220 {dimension_numbers = #tpu.dot_dimension_numbers<[1], [0], [0], [1], [0, 0, 1, 1], [], []>} : vector<32x128xf32>, vector<128x128xf32>, vector<32x128xf32> -> vector<32x128xf32>
    %289 = arith.addf %285, %288 : vector<32x128xf32>
    %c32_221 = arith.constant 32 : index
    %c128_222 = arith.constant 128 : index
    %290 = vector.load %arg2[%c32_221, %c128_222] : memref<192x384xf32, #tpu.memory_space<vmem>>, vector<32x128xf32>
    %c128_223 = arith.constant 128 : index
    %c0_224 = arith.constant 0 : index
    %291 = vector.load %arg5[%c128_223, %c0_224] : memref<384x128xf32, #tpu.memory_space<vmem>>, vector<128x128xf32>
    %cst_225 = arith.constant dense<0.000000e+00> : vector<32x128xf32>
    %292 = tpu.matmul %290, %291, %cst_225 {dimension_numbers = #tpu.dot_dimension_numbers<[1], [0], [0], [1], [0, 0, 1, 1], [], []>} : vector<32x128xf32>, vector<128x128xf32>, vector<32x128xf32> -> vector<32x128xf32>
    %293 = arith.addf %289, %292 : vector<32x128xf32>
    %c32_226 = arith.constant 32 : index
    %c256_227 = arith.constant 256 : index
    %294 = vector.load %arg2[%c32_226, %c256_227] : memref<192x384xf32, #tpu.memory_space<vmem>>, vector<32x128xf32>
    %c256_228 = arith.constant 256 : index
    %c0_229 = arith.constant 0 : index
    %295 = vector.load %arg5[%c256_228, %c0_229] : memref<384x128xf32, #tpu.memory_space<vmem>>, vector<128x128xf32>
    %cst_230 = arith.constant dense<0.000000e+00> : vector<32x128xf32>
    %296 = tpu.matmul %294, %295, %cst_230 {dimension_numbers = #tpu.dot_dimension_numbers<[1], [0], [0], [1], [0, 0, 1, 1], [], []>} : vector<32x128xf32>, vector<128x128xf32>, vector<32x128xf32> -> vector<32x128xf32>
    %297 = arith.addf %293, %296 : vector<32x128xf32>
    %cst_231 = arith.constant 0.000000e+00 : f32
    %298 = vector.broadcast %cst_231 : f32 to vector<32x128xf32>
    %299 = arith.maximumf %297, %298 : vector<32x128xf32>
    %cst_232 = arith.constant 0.000000e+00 : f32
    %300 = vector.broadcast %cst_232 : f32 to vector<32x128xf32>
    %301 = arith.select %6, %299, %300 : vector<32x128xi1>, vector<32x128xf32>
    %c16_233 = arith.constant 16 : index
    %c0_234 = arith.constant 0 : index
    %302 = vector.load %arg3[%c16_233, %c0_234] : memref<80x32xf32, #tpu.memory_space<vmem>>, vector<8x32xf32>
    %cst_235 = arith.constant dense<0.000000e+00> : vector<8x128xf32>
    %303 = tpu.matmul %302, %301, %cst_235 {dimension_numbers = #tpu.dot_dimension_numbers<[1], [0], [0], [1], [0, 0, 1, 1], [], []>} : vector<8x32xf32>, vector<32x128xf32>, vector<8x128xf32> -> vector<8x128xf32>
    %c19_i32_236 = arith.constant 19 : i32
    %304 = tpu.dynamic_rotate %303 by %c19_i32_236 dim 1 : vector<8x128xf32>, i32 -> vector<8x128xf32>
    %c0_237 = arith.constant 0 : index
    %c0_238 = arith.constant 0 : index
    %305 = vector.load %arg5[%c0_237, %c0_238] : memref<384x128xf32, #tpu.memory_space<vmem>>, vector<8x128xf32>
    tpu.vector_store %arg5[%c0_237, %c0_238], %304 {strides = array<i32>} : memref<384x128xf32, #tpu.memory_space<vmem>>, vector<8x128xf32>,
    %c18_i32_239 = arith.constant 18 : i32
    %306 = tpu.dynamic_rotate %303 by %c18_i32_239 dim 1 : vector<8x128xf32>, i32 -> vector<8x128xf32>
    %c8_240 = arith.constant 8 : index
    %c0_241 = arith.constant 0 : index
    %307 = vector.load %arg5[%c8_240, %c0_241] : memref<384x128xf32, #tpu.memory_space<vmem>>, vector<8x128xf32>
    tpu.vector_store %arg5[%c8_240, %c0_241], %306 {strides = array<i32>} : memref<384x128xf32, #tpu.memory_space<vmem>>, vector<8x128xf32>,
    %c17_i32_242 = arith.constant 17 : i32
    %308 = tpu.dynamic_rotate %303 by %c17_i32_242 dim 1 : vector<8x128xf32>, i32 -> vector<8x128xf32>
    %c16_243 = arith.constant 16 : index
    %c0_244 = arith.constant 0 : index
    %309 = vector.load %arg5[%c16_243, %c0_244] : memref<384x128xf32, #tpu.memory_space<vmem>>, vector<8x128xf32>
    tpu.vector_store %arg5[%c16_243, %c0_244], %308 {strides = array<i32>} : memref<384x128xf32, #tpu.memory_space<vmem>>, vector<8x128xf32>,
    %c16_i32_245 = arith.constant 16 : i32
    %310 = tpu.dynamic_rotate %303 by %c16_i32_245 dim 1 : vector<8x128xf32>, i32 -> vector<8x128xf32>
    %c24_246 = arith.constant 24 : index
    %c0_247 = arith.constant 0 : index
    %311 = vector.load %arg5[%c24_246, %c0_247] : memref<384x128xf32, #tpu.memory_space<vmem>>, vector<8x128xf32>
    tpu.vector_store %arg5[%c24_246, %c0_247], %310 {strides = array<i32>} : memref<384x128xf32, #tpu.memory_space<vmem>>, vector<8x128xf32>,
    %c15_i32_248 = arith.constant 15 : i32
    %312 = tpu.dynamic_rotate %303 by %c15_i32_248 dim 1 : vector<8x128xf32>, i32 -> vector<8x128xf32>
    %c32_249 = arith.constant 32 : index
    %c0_250 = arith.constant 0 : index
    %313 = vector.load %arg5[%c32_249, %c0_250] : memref<384x128xf32, #tpu.memory_space<vmem>>, vector<8x128xf32>
    tpu.vector_store %arg5[%c32_249, %c0_250], %312 {strides = array<i32>} : memref<384x128xf32, #tpu.memory_space<vmem>>, vector<8x128xf32>,
    %c14_i32_251 = arith.constant 14 : i32
    %314 = tpu.dynamic_rotate %303 by %c14_i32_251 dim 1 : vector<8x128xf32>, i32 -> vector<8x128xf32>
    %c40_252 = arith.constant 40 : index
    %c0_253 = arith.constant 0 : index
    %315 = vector.load %arg5[%c40_252, %c0_253] : memref<384x128xf32, #tpu.memory_space<vmem>>, vector<8x128xf32>
    tpu.vector_store %arg5[%c40_252, %c0_253], %314 {strides = array<i32>} : memref<384x128xf32, #tpu.memory_space<vmem>>, vector<8x128xf32>,
    %c13_i32_254 = arith.constant 13 : i32
    %316 = tpu.dynamic_rotate %303 by %c13_i32_254 dim 1 : vector<8x128xf32>, i32 -> vector<8x128xf32>
    %c48_255 = arith.constant 48 : index
    %c0_256 = arith.constant 0 : index
    %317 = vector.load %arg5[%c48_255, %c0_256] : memref<384x128xf32, #tpu.memory_space<vmem>>, vector<8x128xf32>
    tpu.vector_store %arg5[%c48_255, %c0_256], %316 {strides = array<i32>} : memref<384x128xf32, #tpu.memory_space<vmem>>, vector<8x128xf32>,
    %c12_i32_257 = arith.constant 12 : i32
    %318 = tpu.dynamic_rotate %303 by %c12_i32_257 dim 1 : vector<8x128xf32>, i32 -> vector<8x128xf32>
    %c56_258 = arith.constant 56 : index
    %c0_259 = arith.constant 0 : index
    %319 = vector.load %arg5[%c56_258, %c0_259] : memref<384x128xf32, #tpu.memory_space<vmem>>, vector<8x128xf32>
    tpu.vector_store %arg5[%c56_258, %c0_259], %318 {strides = array<i32>} : memref<384x128xf32, #tpu.memory_space<vmem>>, vector<8x128xf32>,
    %c11_i32_260 = arith.constant 11 : i32
    %320 = tpu.dynamic_rotate %303 by %c11_i32_260 dim 1 : vector<8x128xf32>, i32 -> vector<8x128xf32>
    %c64_261 = arith.constant 64 : index
    %c0_262 = arith.constant 0 : index
    %321 = vector.load %arg5[%c64_261, %c0_262] : memref<384x128xf32, #tpu.memory_space<vmem>>, vector<8x128xf32>
    tpu.vector_store %arg5[%c64_261, %c0_262], %320 {strides = array<i32>} : memref<384x128xf32, #tpu.memory_space<vmem>>, vector<8x128xf32>,
    %c10_i32_263 = arith.constant 10 : i32
    %322 = tpu.dynamic_rotate %303 by %c10_i32_263 dim 1 : vector<8x128xf32>, i32 -> vector<8x128xf32>
    %c72_264 = arith.constant 72 : index
    %c0_265 = arith.constant 0 : index
    %323 = vector.load %arg5[%c72_264, %c0_265] : memref<384x128xf32, #tpu.memory_space<vmem>>, vector<8x128xf32>
    tpu.vector_store %arg5[%c72_264, %c0_265], %322 {strides = array<i32>} : memref<384x128xf32, #tpu.memory_space<vmem>>, vector<8x128xf32>,
    %c9_i32_266 = arith.constant 9 : i32
    %324 = tpu.dynamic_rotate %303 by %c9_i32_266 dim 1 : vector<8x128xf32>, i32 -> vector<8x128xf32>
    %c80_267 = arith.constant 80 : index
    %c0_268 = arith.constant 0 : index
    %325 = vector.load %arg5[%c80_267, %c0_268] : memref<384x128xf32, #tpu.memory_space<vmem>>, vector<8x128xf32>
    tpu.vector_store %arg5[%c80_267, %c0_268], %324 {strides = array<i32>} : memref<384x128xf32, #tpu.memory_space<vmem>>, vector<8x128xf32>,
    %c8_i32_269 = arith.constant 8 : i32
    %326 = tpu.dynamic_rotate %303 by %c8_i32_269 dim 1 : vector<8x128xf32>, i32 -> vector<8x128xf32>
    %c88_270 = arith.constant 88 : index
    %c0_271 = arith.constant 0 : index
    %327 = vector.load %arg5[%c88_270, %c0_271] : memref<384x128xf32, #tpu.memory_space<vmem>>, vector<8x128xf32>
    tpu.vector_store %arg5[%c88_270, %c0_271], %326 {strides = array<i32>} : memref<384x128xf32, #tpu.memory_space<vmem>>, vector<8x128xf32>,
    %c7_i32_272 = arith.constant 7 : i32
    %328 = tpu.dynamic_rotate %303 by %c7_i32_272 dim 1 : vector<8x128xf32>, i32 -> vector<8x128xf32>
    %c96_273 = arith.constant 96 : index
    %c0_274 = arith.constant 0 : index
    %329 = vector.load %arg5[%c96_273, %c0_274] : memref<384x128xf32, #tpu.memory_space<vmem>>, vector<8x128xf32>
    tpu.vector_store %arg5[%c96_273, %c0_274], %328 {strides = array<i32>} : memref<384x128xf32, #tpu.memory_space<vmem>>, vector<8x128xf32>,
    %c6_i32_275 = arith.constant 6 : i32
    %330 = tpu.dynamic_rotate %303 by %c6_i32_275 dim 1 : vector<8x128xf32>, i32 -> vector<8x128xf32>
    %c104_276 = arith.constant 104 : index
    %c0_277 = arith.constant 0 : index
    %331 = vector.load %arg5[%c104_276, %c0_277] : memref<384x128xf32, #tpu.memory_space<vmem>>, vector<8x128xf32>
    tpu.vector_store %arg5[%c104_276, %c0_277], %330 {strides = array<i32>} : memref<384x128xf32, #tpu.memory_space<vmem>>, vector<8x128xf32>,
    %c5_i32_278 = arith.constant 5 : i32
    %332 = tpu.dynamic_rotate %303 by %c5_i32_278 dim 1 : vector<8x128xf32>, i32 -> vector<8x128xf32>
    %c112_279 = arith.constant 112 : index
    %c0_280 = arith.constant 0 : index
    %333 = vector.load %arg5[%c112_279, %c0_280] : memref<384x128xf32, #tpu.memory_space<vmem>>, vector<8x128xf32>
    tpu.vector_store %arg5[%c112_279, %c0_280], %332 {strides = array<i32>} : memref<384x128xf32, #tpu.memory_space<vmem>>, vector<8x128xf32>,
    %c4_i32_281 = arith.constant 4 : i32
    %334 = tpu.dynamic_rotate %303 by %c4_i32_281 dim 1 : vector<8x128xf32>, i32 -> vector<8x128xf32>
    %c120_282 = arith.constant 120 : index
    %c0_283 = arith.constant 0 : index
    %335 = vector.load %arg5[%c120_282, %c0_283] : memref<384x128xf32, #tpu.memory_space<vmem>>, vector<8x128xf32>
    tpu.vector_store %arg5[%c120_282, %c0_283], %334 {strides = array<i32>} : memref<384x128xf32, #tpu.memory_space<vmem>>, vector<8x128xf32>,
    %c3_i32_284 = arith.constant 3 : i32
    %336 = tpu.dynamic_rotate %303 by %c3_i32_284 dim 1 : vector<8x128xf32>, i32 -> vector<8x128xf32>
    %c128_285 = arith.constant 128 : index
    %c0_286 = arith.constant 0 : index
    %337 = vector.load %arg5[%c128_285, %c0_286] : memref<384x128xf32, #tpu.memory_space<vmem>>, vector<8x128xf32>
    tpu.vector_store %arg5[%c128_285, %c0_286], %336 {strides = array<i32>} : memref<384x128xf32, #tpu.memory_space<vmem>>, vector<8x128xf32>,
    %c2_i32_287 = arith.constant 2 : i32
    %338 = tpu.dynamic_rotate %303 by %c2_i32_287 dim 1 : vector<8x128xf32>, i32 -> vector<8x128xf32>
    %c136_288 = arith.constant 136 : index
    %c0_289 = arith.constant 0 : index
    %339 = vector.load %arg5[%c136_288, %c0_289] : memref<384x128xf32, #tpu.memory_space<vmem>>, vector<8x128xf32>
    tpu.vector_store %arg5[%c136_288, %c0_289], %338 {strides = array<i32>} : memref<384x128xf32, #tpu.memory_space<vmem>>, vector<8x128xf32>,
    %c1_i32_290 = arith.constant 1 : i32
    %340 = tpu.dynamic_rotate %303 by %c1_i32_290 dim 1 : vector<8x128xf32>, i32 -> vector<8x128xf32>
    %c144_291 = arith.constant 144 : index
    %c0_292 = arith.constant 0 : index
    %341 = vector.load %arg5[%c144_291, %c0_292] : memref<384x128xf32, #tpu.memory_space<vmem>>, vector<8x128xf32>
    tpu.vector_store %arg5[%c144_291, %c0_292], %340 {strides = array<i32>} : memref<384x128xf32, #tpu.memory_space<vmem>>, vector<8x128xf32>,
    %c152_293 = arith.constant 152 : index
    %c0_294 = arith.constant 0 : index
    %342 = vector.load %arg5[%c152_293, %c0_294] : memref<384x128xf32, #tpu.memory_space<vmem>>, vector<8x128xf32>
    tpu.vector_store %arg5[%c152_293, %c0_294], %303 {strides = array<i32>} : memref<384x128xf32, #tpu.memory_space<vmem>>, vector<8x128xf32>,
    %c127_i32_295 = arith.constant 127 : i32
    %343 = tpu.dynamic_rotate %303 by %c127_i32_295 dim 1 : vector<8x128xf32>, i32 -> vector<8x128xf32>
    %c160_296 = arith.constant 160 : index
    %c0_297 = arith.constant 0 : index
    %344 = vector.load %arg5[%c160_296, %c0_297] : memref<384x128xf32, #tpu.memory_space<vmem>>, vector<8x128xf32>
    tpu.vector_store %arg5[%c160_296, %c0_297], %343 {strides = array<i32>} : memref<384x128xf32, #tpu.memory_space<vmem>>, vector<8x128xf32>,
    %c126_i32_298 = arith.constant 126 : i32
    %345 = tpu.dynamic_rotate %303 by %c126_i32_298 dim 1 : vector<8x128xf32>, i32 -> vector<8x128xf32>
    %c168_299 = arith.constant 168 : index
    %c0_300 = arith.constant 0 : index
    %346 = vector.load %arg5[%c168_299, %c0_300] : memref<384x128xf32, #tpu.memory_space<vmem>>, vector<8x128xf32>
    tpu.vector_store %arg5[%c168_299, %c0_300], %345 {strides = array<i32>} : memref<384x128xf32, #tpu.memory_space<vmem>>, vector<8x128xf32>,
    %c125_i32_301 = arith.constant 125 : i32
    %347 = tpu.dynamic_rotate %303 by %c125_i32_301 dim 1 : vector<8x128xf32>, i32 -> vector<8x128xf32>
    %c176_302 = arith.constant 176 : index
    %c0_303 = arith.constant 0 : index
    %348 = vector.load %arg5[%c176_302, %c0_303] : memref<384x128xf32, #tpu.memory_space<vmem>>, vector<8x128xf32>
    tpu.vector_store %arg5[%c176_302, %c0_303], %347 {strides = array<i32>} : memref<384x128xf32, #tpu.memory_space<vmem>>, vector<8x128xf32>,
    %c124_i32_304 = arith.constant 124 : i32
    %349 = tpu.dynamic_rotate %303 by %c124_i32_304 dim 1 : vector<8x128xf32>, i32 -> vector<8x128xf32>
    %c184_305 = arith.constant 184 : index
    %c0_306 = arith.constant 0 : index
    %350 = vector.load %arg5[%c184_305, %c0_306] : memref<384x128xf32, #tpu.memory_space<vmem>>, vector<8x128xf32>
    tpu.vector_store %arg5[%c184_305, %c0_306], %349 {strides = array<i32>} : memref<384x128xf32, #tpu.memory_space<vmem>>, vector<8x128xf32>,
    %c123_i32_307 = arith.constant 123 : i32
    %351 = tpu.dynamic_rotate %303 by %c123_i32_307 dim 1 : vector<8x128xf32>, i32 -> vector<8x128xf32>
    %c192_308 = arith.constant 192 : index
    %c0_309 = arith.constant 0 : index
    %352 = vector.load %arg5[%c192_308, %c0_309] : memref<384x128xf32, #tpu.memory_space<vmem>>, vector<8x128xf32>
    tpu.vector_store %arg5[%c192_308, %c0_309], %351 {strides = array<i32>} : memref<384x128xf32, #tpu.memory_space<vmem>>, vector<8x128xf32>,
    %c122_i32_310 = arith.constant 122 : i32
    %353 = tpu.dynamic_rotate %303 by %c122_i32_310 dim 1 : vector<8x128xf32>, i32 -> vector<8x128xf32>
    %c200_311 = arith.constant 200 : index
    %c0_312 = arith.constant 0 : index
    %354 = vector.load %arg5[%c200_311, %c0_312] : memref<384x128xf32, #tpu.memory_space<vmem>>, vector<8x128xf32>
    tpu.vector_store %arg5[%c200_311, %c0_312], %353 {strides = array<i32>} : memref<384x128xf32, #tpu.memory_space<vmem>>, vector<8x128xf32>,
    %c121_i32_313 = arith.constant 121 : i32
    %355 = tpu.dynamic_rotate %303 by %c121_i32_313 dim 1 : vector<8x128xf32>, i32 -> vector<8x128xf32>
    %c208_314 = arith.constant 208 : index
    %c0_315 = arith.constant 0 : index
    %356 = vector.load %arg5[%c208_314, %c0_315] : memref<384x128xf32, #tpu.memory_space<vmem>>, vector<8x128xf32>
    tpu.vector_store %arg5[%c208_314, %c0_315], %355 {strides = array<i32>} : memref<384x128xf32, #tpu.memory_space<vmem>>, vector<8x128xf32>,
    %c120_i32_316 = arith.constant 120 : i32
    %357 = tpu.dynamic_rotate %303 by %c120_i32_316 dim 1 : vector<8x128xf32>, i32 -> vector<8x128xf32>
    %c216_317 = arith.constant 216 : index
    %c0_318 = arith.constant 0 : index
    %358 = vector.load %arg5[%c216_317, %c0_318] : memref<384x128xf32, #tpu.memory_space<vmem>>, vector<8x128xf32>
    tpu.vector_store %arg5[%c216_317, %c0_318], %357 {strides = array<i32>} : memref<384x128xf32, #tpu.memory_space<vmem>>, vector<8x128xf32>,
    %c119_i32_319 = arith.constant 119 : i32
    %359 = tpu.dynamic_rotate %303 by %c119_i32_319 dim 1 : vector<8x128xf32>, i32 -> vector<8x128xf32>
    %c224_320 = arith.constant 224 : index
    %c0_321 = arith.constant 0 : index
    %360 = vector.load %arg5[%c224_320, %c0_321] : memref<384x128xf32, #tpu.memory_space<vmem>>, vector<8x128xf32>
    tpu.vector_store %arg5[%c224_320, %c0_321], %359 {strides = array<i32>} : memref<384x128xf32, #tpu.memory_space<vmem>>, vector<8x128xf32>,
    %c118_i32_322 = arith.constant 118 : i32
    %361 = tpu.dynamic_rotate %303 by %c118_i32_322 dim 1 : vector<8x128xf32>, i32 -> vector<8x128xf32>
    %c232_323 = arith.constant 232 : index
    %c0_324 = arith.constant 0 : index
    %362 = vector.load %arg5[%c232_323, %c0_324] : memref<384x128xf32, #tpu.memory_space<vmem>>, vector<8x128xf32>
    tpu.vector_store %arg5[%c232_323, %c0_324], %361 {strides = array<i32>} : memref<384x128xf32, #tpu.memory_space<vmem>>, vector<8x128xf32>,
    %c117_i32_325 = arith.constant 117 : i32
    %363 = tpu.dynamic_rotate %303 by %c117_i32_325 dim 1 : vector<8x128xf32>, i32 -> vector<8x128xf32>
    %c240_326 = arith.constant 240 : index
    %c0_327 = arith.constant 0 : index
    %364 = vector.load %arg5[%c240_326, %c0_327] : memref<384x128xf32, #tpu.memory_space<vmem>>, vector<8x128xf32>
    tpu.vector_store %arg5[%c240_326, %c0_327], %363 {strides = array<i32>} : memref<384x128xf32, #tpu.memory_space<vmem>>, vector<8x128xf32>,
    %c116_i32_328 = arith.constant 116 : i32
    %365 = tpu.dynamic_rotate %303 by %c116_i32_328 dim 1 : vector<8x128xf32>, i32 -> vector<8x128xf32>
    %c248_329 = arith.constant 248 : index
    %c0_330 = arith.constant 0 : index
    %366 = vector.load %arg5[%c248_329, %c0_330] : memref<384x128xf32, #tpu.memory_space<vmem>>, vector<8x128xf32>
    tpu.vector_store %arg5[%c248_329, %c0_330], %365 {strides = array<i32>} : memref<384x128xf32, #tpu.memory_space<vmem>>, vector<8x128xf32>,
    %c115_i32_331 = arith.constant 115 : i32
    %367 = tpu.dynamic_rotate %303 by %c115_i32_331 dim 1 : vector<8x128xf32>, i32 -> vector<8x128xf32>
    %c256_332 = arith.constant 256 : index
    %c0_333 = arith.constant 0 : index
    %368 = vector.load %arg5[%c256_332, %c0_333] : memref<384x128xf32, #tpu.memory_space<vmem>>, vector<8x128xf32>
    tpu.vector_store %arg5[%c256_332, %c0_333], %367 {strides = array<i32>} : memref<384x128xf32, #tpu.memory_space<vmem>>, vector<8x128xf32>,
    %c114_i32_334 = arith.constant 114 : i32
    %369 = tpu.dynamic_rotate %303 by %c114_i32_334 dim 1 : vector<8x128xf32>, i32 -> vector<8x128xf32>
    %c264_335 = arith.constant 264 : index
    %c0_336 = arith.constant 0 : index
    %370 = vector.load %arg5[%c264_335, %c0_336] : memref<384x128xf32, #tpu.memory_space<vmem>>, vector<8x128xf32>
    tpu.vector_store %arg5[%c264_335, %c0_336], %369 {strides = array<i32>} : memref<384x128xf32, #tpu.memory_space<vmem>>, vector<8x128xf32>,
    %c113_i32_337 = arith.constant 113 : i32
    %371 = tpu.dynamic_rotate %303 by %c113_i32_337 dim 1 : vector<8x128xf32>, i32 -> vector<8x128xf32>
    %c272_338 = arith.constant 272 : index
    %c0_339 = arith.constant 0 : index
    %372 = vector.load %arg5[%c272_338, %c0_339] : memref<384x128xf32, #tpu.memory_space<vmem>>, vector<8x128xf32>
    tpu.vector_store %arg5[%c272_338, %c0_339], %371 {strides = array<i32>} : memref<384x128xf32, #tpu.memory_space<vmem>>, vector<8x128xf32>,
    %c112_i32_340 = arith.constant 112 : i32
    %373 = tpu.dynamic_rotate %303 by %c112_i32_340 dim 1 : vector<8x128xf32>, i32 -> vector<8x128xf32>
    %c280_341 = arith.constant 280 : index
    %c0_342 = arith.constant 0 : index
    %374 = vector.load %arg5[%c280_341, %c0_342] : memref<384x128xf32, #tpu.memory_space<vmem>>, vector<8x128xf32>
    tpu.vector_store %arg5[%c280_341, %c0_342], %373 {strides = array<i32>} : memref<384x128xf32, #tpu.memory_space<vmem>>, vector<8x128xf32>,
    %c111_i32_343 = arith.constant 111 : i32
    %375 = tpu.dynamic_rotate %303 by %c111_i32_343 dim 1 : vector<8x128xf32>, i32 -> vector<8x128xf32>
    %c288_344 = arith.constant 288 : index
    %c0_345 = arith.constant 0 : index
    %376 = vector.load %arg5[%c288_344, %c0_345] : memref<384x128xf32, #tpu.memory_space<vmem>>, vector<8x128xf32>
    tpu.vector_store %arg5[%c288_344, %c0_345], %375 {strides = array<i32>} : memref<384x128xf32, #tpu.memory_space<vmem>>, vector<8x128xf32>,
    %c110_i32_346 = arith.constant 110 : i32
    %377 = tpu.dynamic_rotate %303 by %c110_i32_346 dim 1 : vector<8x128xf32>, i32 -> vector<8x128xf32>
    %c296_347 = arith.constant 296 : index
    %c0_348 = arith.constant 0 : index
    %378 = vector.load %arg5[%c296_347, %c0_348] : memref<384x128xf32, #tpu.memory_space<vmem>>, vector<8x128xf32>
    tpu.vector_store %arg5[%c296_347, %c0_348], %377 {strides = array<i32>} : memref<384x128xf32, #tpu.memory_space<vmem>>, vector<8x128xf32>,
    %c109_i32_349 = arith.constant 109 : i32
    %379 = tpu.dynamic_rotate %303 by %c109_i32_349 dim 1 : vector<8x128xf32>, i32 -> vector<8x128xf32>
    %c304_350 = arith.constant 304 : index
    %c0_351 = arith.constant 0 : index
    %380 = vector.load %arg5[%c304_350, %c0_351] : memref<384x128xf32, #tpu.memory_space<vmem>>, vector<8x128xf32>
    tpu.vector_store %arg5[%c304_350, %c0_351], %379 {strides = array<i32>} : memref<384x128xf32, #tpu.memory_space<vmem>>, vector<8x128xf32>,
    %cst_352 = arith.constant -3.000000e+38 : f32
    %381 = vector.broadcast %cst_352 : f32 to vector<32x128xf32>
    %382 = arith.select %6, %301, %381 : vector<32x128xi1>, vector<32x128xf32>
    %c1_i32_353 = arith.constant 1 : i32
    %383 = tpu.dynamic_rotate %382 by %c1_i32_353 dim 1 : vector<32x128xf32>, i32 -> vector<32x128xf32>
    %384 = arith.maximumf %383, %382 : vector<32x128xf32>
    %c127_i32_354 = arith.constant 127 : i32
    %385 = tpu.dynamic_rotate %382 by %c127_i32_354 dim 1 : vector<32x128xf32>, i32 -> vector<32x128xf32>
    %386 = arith.maximumf %384, %385 : vector<32x128xf32>
    %cst_355 = arith.constant 0.000000e+00 : f32
    %387 = vector.broadcast %cst_355 : f32 to vector<32x128xf32>
    %388 = arith.select %6, %386, %387 : vector<32x128xi1>, vector<32x128xf32>
    %c312_356 = arith.constant 312 : index
    %c0_357 = arith.constant 0 : index
    %389 = vector.load %arg5[%c312_356, %c0_357] : memref<384x128xf32, #tpu.memory_space<vmem>>, vector<32x128xf32>
    tpu.vector_store %arg5[%c312_356, %c0_357], %388 {strides = array<i32>} : memref<384x128xf32, #tpu.memory_space<vmem>>, vector<32x128xf32>,
    %cst_358 = arith.constant 0.000000e+00 : f32
    %390 = vector.broadcast %cst_358 : f32 to vector<32x128xf32>
    %c64_359 = arith.constant 64 : index
    %c0_360 = arith.constant 0 : index
    %391 = vector.load %arg2[%c64_359, %c0_360] : memref<192x384xf32, #tpu.memory_space<vmem>>, vector<32x128xf32>
    %c0_361 = arith.constant 0 : index
    %c0_362 = arith.constant 0 : index
    %392 = vector.load %arg5[%c0_361, %c0_362] : memref<384x128xf32, #tpu.memory_space<vmem>>, vector<128x128xf32>
    %cst_363 = arith.constant dense<0.000000e+00> : vector<32x128xf32>
    %393 = tpu.matmul %391, %392, %cst_363 {dimension_numbers = #tpu.dot_dimension_numbers<[1], [0], [0], [1], [0, 0, 1, 1], [], []>} : vector<32x128xf32>, vector<128x128xf32>, vector<32x128xf32> -> vector<32x128xf32>
    %394 = arith.addf %390, %393 : vector<32x128xf32>
    %c64_364 = arith.constant 64 : index
    %c128_365 = arith.constant 128 : index
    %395 = vector.load %arg2[%c64_364, %c128_365] : memref<192x384xf32, #tpu.memory_space<vmem>>, vector<32x128xf32>
    %c128_366 = arith.constant 128 : index
    %c0_367 = arith.constant 0 : index
    %396 = vector.load %arg5[%c128_366, %c0_367] : memref<384x128xf32, #tpu.memory_space<vmem>>, vector<128x128xf32>
    %cst_368 = arith.constant dense<0.000000e+00> : vector<32x128xf32>
    %397 = tpu.matmul %395, %396, %cst_368 {dimension_numbers = #tpu.dot_dimension_numbers<[1], [0], [0], [1], [0, 0, 1, 1], [], []>} : vector<32x128xf32>, vector<128x128xf32>, vector<32x128xf32> -> vector<32x128xf32>
    %398 = arith.addf %394, %397 : vector<32x128xf32>
    %c64_369 = arith.constant 64 : index
    %c256_370 = arith.constant 256 : index
    %399 = vector.load %arg2[%c64_369, %c256_370] : memref<192x384xf32, #tpu.memory_space<vmem>>, vector<32x128xf32>
    %c256_371 = arith.constant 256 : index
    %c0_372 = arith.constant 0 : index
    %400 = vector.load %arg5[%c256_371, %c0_372] : memref<384x128xf32, #tpu.memory_space<vmem>>, vector<128x128xf32>
    %cst_373 = arith.constant dense<0.000000e+00> : vector<32x128xf32>
    %401 = tpu.matmul %399, %400, %cst_373 {dimension_numbers = #tpu.dot_dimension_numbers<[1], [0], [0], [1], [0, 0, 1, 1], [], []>} : vector<32x128xf32>, vector<128x128xf32>, vector<32x128xf32> -> vector<32x128xf32>
    %402 = arith.addf %398, %401 : vector<32x128xf32>
    %cst_374 = arith.constant 0.000000e+00 : f32
    %403 = vector.broadcast %cst_374 : f32 to vector<32x128xf32>
    %404 = arith.maximumf %402, %403 : vector<32x128xf32>
    %c48_375 = arith.constant 48 : index
    %c0_376 = arith.constant 0 : index
    %405 = vector.load %arg3[%c48_375, %c0_376] : memref<80x32xf32, #tpu.memory_space<vmem>>, vector<32x8xf32>
    %cst_377 = arith.constant dense<0.000000e+00> : vector<32x128xf32>
    %406 = tpu.matmul %405, %91, %cst_377 {dimension_numbers = #tpu.dot_dimension_numbers<[1], [0], [0], [1], [0, 0, 1, 1], [], []>} : vector<32x8xf32>, vector<8x128xf32>, vector<32x128xf32> -> vector<32x128xf32>
    %407 = arith.addf %404, %406 : vector<32x128xf32>
    %cst_378 = arith.constant 0.000000e+00 : f32
    %408 = vector.broadcast %cst_378 : f32 to vector<32x128xf32>
    %409 = arith.maximumf %407, %408 : vector<32x128xf32>
    %cst_379 = arith.constant 0.000000e+00 : f32
    %410 = vector.broadcast %cst_379 : f32 to vector<32x128xf32>
    %411 = arith.select %6, %409, %410 : vector<32x128xi1>, vector<32x128xf32>
    %c24_380 = arith.constant 24 : index
    %c0_381 = arith.constant 0 : index
    %412 = vector.load %arg3[%c24_380, %c0_381] : memref<80x32xf32, #tpu.memory_space<vmem>>, vector<8x32xf32>
    %cst_382 = arith.constant dense<0.000000e+00> : vector<8x128xf32>
    %413 = tpu.matmul %412, %411, %cst_382 {dimension_numbers = #tpu.dot_dimension_numbers<[1], [0], [0], [1], [0, 0, 1, 1], [], []>} : vector<8x32xf32>, vector<32x128xf32>, vector<8x128xf32> -> vector<8x128xf32>
    %c19_i32_383 = arith.constant 19 : i32
    %414 = tpu.dynamic_rotate %413 by %c19_i32_383 dim 1 : vector<8x128xf32>, i32 -> vector<8x128xf32>
    %c0_384 = arith.constant 0 : index
    %c0_385 = arith.constant 0 : index
    %415 = vector.load %arg5[%c0_384, %c0_385] : memref<384x128xf32, #tpu.memory_space<vmem>>, vector<8x128xf32>
    tpu.vector_store %arg5[%c0_384, %c0_385], %414 {strides = array<i32>} : memref<384x128xf32, #tpu.memory_space<vmem>>, vector<8x128xf32>,
    %c18_i32_386 = arith.constant 18 : i32
    %416 = tpu.dynamic_rotate %413 by %c18_i32_386 dim 1 : vector<8x128xf32>, i32 -> vector<8x128xf32>
    %c8_387 = arith.constant 8 : index
    %c0_388 = arith.constant 0 : index
    %417 = vector.load %arg5[%c8_387, %c0_388] : memref<384x128xf32, #tpu.memory_space<vmem>>, vector<8x128xf32>
    tpu.vector_store %arg5[%c8_387, %c0_388], %416 {strides = array<i32>} : memref<384x128xf32, #tpu.memory_space<vmem>>, vector<8x128xf32>,
    %c17_i32_389 = arith.constant 17 : i32
    %418 = tpu.dynamic_rotate %413 by %c17_i32_389 dim 1 : vector<8x128xf32>, i32 -> vector<8x128xf32>
    %c16_390 = arith.constant 16 : index
    %c0_391 = arith.constant 0 : index
    %419 = vector.load %arg5[%c16_390, %c0_391] : memref<384x128xf32, #tpu.memory_space<vmem>>, vector<8x128xf32>
    tpu.vector_store %arg5[%c16_390, %c0_391], %418 {strides = array<i32>} : memref<384x128xf32, #tpu.memory_space<vmem>>, vector<8x128xf32>,
    %c16_i32_392 = arith.constant 16 : i32
    %420 = tpu.dynamic_rotate %413 by %c16_i32_392 dim 1 : vector<8x128xf32>, i32 -> vector<8x128xf32>
    %c24_393 = arith.constant 24 : index
    %c0_394 = arith.constant 0 : index
    %421 = vector.load %arg5[%c24_393, %c0_394] : memref<384x128xf32, #tpu.memory_space<vmem>>, vector<8x128xf32>
    tpu.vector_store %arg5[%c24_393, %c0_394], %420 {strides = array<i32>} : memref<384x128xf32, #tpu.memory_space<vmem>>, vector<8x128xf32>,
    %c15_i32_395 = arith.constant 15 : i32
    %422 = tpu.dynamic_rotate %413 by %c15_i32_395 dim 1 : vector<8x128xf32>, i32 -> vector<8x128xf32>
    %c32_396 = arith.constant 32 : index
    %c0_397 = arith.constant 0 : index
    %423 = vector.load %arg5[%c32_396, %c0_397] : memref<384x128xf32, #tpu.memory_space<vmem>>, vector<8x128xf32>
    tpu.vector_store %arg5[%c32_396, %c0_397], %422 {strides = array<i32>} : memref<384x128xf32, #tpu.memory_space<vmem>>, vector<8x128xf32>,
    %c14_i32_398 = arith.constant 14 : i32
    %424 = tpu.dynamic_rotate %413 by %c14_i32_398 dim 1 : vector<8x128xf32>, i32 -> vector<8x128xf32>
    %c40_399 = arith.constant 40 : index
    %c0_400 = arith.constant 0 : index
    %425 = vector.load %arg5[%c40_399, %c0_400] : memref<384x128xf32, #tpu.memory_space<vmem>>, vector<8x128xf32>
    tpu.vector_store %arg5[%c40_399, %c0_400], %424 {strides = array<i32>} : memref<384x128xf32, #tpu.memory_space<vmem>>, vector<8x128xf32>,
    %c13_i32_401 = arith.constant 13 : i32
    %426 = tpu.dynamic_rotate %413 by %c13_i32_401 dim 1 : vector<8x128xf32>, i32 -> vector<8x128xf32>
    %c48_402 = arith.constant 48 : index
    %c0_403 = arith.constant 0 : index
    %427 = vector.load %arg5[%c48_402, %c0_403] : memref<384x128xf32, #tpu.memory_space<vmem>>, vector<8x128xf32>
    tpu.vector_store %arg5[%c48_402, %c0_403], %426 {strides = array<i32>} : memref<384x128xf32, #tpu.memory_space<vmem>>, vector<8x128xf32>,
    %c12_i32_404 = arith.constant 12 : i32
    %428 = tpu.dynamic_rotate %413 by %c12_i32_404 dim 1 : vector<8x128xf32>, i32 -> vector<8x128xf32>
    %c56_405 = arith.constant 56 : index
    %c0_406 = arith.constant 0 : index
    %429 = vector.load %arg5[%c56_405, %c0_406] : memref<384x128xf32, #tpu.memory_space<vmem>>, vector<8x128xf32>
    tpu.vector_store %arg5[%c56_405, %c0_406], %428 {strides = array<i32>} : memref<384x128xf32, #tpu.memory_space<vmem>>, vector<8x128xf32>,
    %c11_i32_407 = arith.constant 11 : i32
    %430 = tpu.dynamic_rotate %413 by %c11_i32_407 dim 1 : vector<8x128xf32>, i32 -> vector<8x128xf32>
    %c64_408 = arith.constant 64 : index
    %c0_409 = arith.constant 0 : index
    %431 = vector.load %arg5[%c64_408, %c0_409] : memref<384x128xf32, #tpu.memory_space<vmem>>, vector<8x128xf32>
    tpu.vector_store %arg5[%c64_408, %c0_409], %430 {strides = array<i32>} : memref<384x128xf32, #tpu.memory_space<vmem>>, vector<8x128xf32>,
    %c10_i32_410 = arith.constant 10 : i32
    %432 = tpu.dynamic_rotate %413 by %c10_i32_410 dim 1 : vector<8x128xf32>, i32 -> vector<8x128xf32>
    %c72_411 = arith.constant 72 : index
    %c0_412 = arith.constant 0 : index
    %433 = vector.load %arg5[%c72_411, %c0_412] : memref<384x128xf32, #tpu.memory_space<vmem>>, vector<8x128xf32>
    tpu.vector_store %arg5[%c72_411, %c0_412], %432 {strides = array<i32>} : memref<384x128xf32, #tpu.memory_space<vmem>>, vector<8x128xf32>,
    %c9_i32_413 = arith.constant 9 : i32
    %434 = tpu.dynamic_rotate %413 by %c9_i32_413 dim 1 : vector<8x128xf32>, i32 -> vector<8x128xf32>
    %c80_414 = arith.constant 80 : index
    %c0_415 = arith.constant 0 : index
    %435 = vector.load %arg5[%c80_414, %c0_415] : memref<384x128xf32, #tpu.memory_space<vmem>>, vector<8x128xf32>
    tpu.vector_store %arg5[%c80_414, %c0_415], %434 {strides = array<i32>} : memref<384x128xf32, #tpu.memory_space<vmem>>, vector<8x128xf32>,
    %c8_i32_416 = arith.constant 8 : i32
    %436 = tpu.dynamic_rotate %413 by %c8_i32_416 dim 1 : vector<8x128xf32>, i32 -> vector<8x128xf32>
    %c88_417 = arith.constant 88 : index
    %c0_418 = arith.constant 0 : index
    %437 = vector.load %arg5[%c88_417, %c0_418] : memref<384x128xf32, #tpu.memory_space<vmem>>, vector<8x128xf32>
    tpu.vector_store %arg5[%c88_417, %c0_418], %436 {strides = array<i32>} : memref<384x128xf32, #tpu.memory_space<vmem>>, vector<8x128xf32>,
    %c7_i32_419 = arith.constant 7 : i32
    %438 = tpu.dynamic_rotate %413 by %c7_i32_419 dim 1 : vector<8x128xf32>, i32 -> vector<8x128xf32>
    %c96_420 = arith.constant 96 : index
    %c0_421 = arith.constant 0 : index
    %439 = vector.load %arg5[%c96_420, %c0_421] : memref<384x128xf32, #tpu.memory_space<vmem>>, vector<8x128xf32>
    tpu.vector_store %arg5[%c96_420, %c0_421], %438 {strides = array<i32>} : memref<384x128xf32, #tpu.memory_space<vmem>>, vector<8x128xf32>,
    %c6_i32_422 = arith.constant 6 : i32
    %440 = tpu.dynamic_rotate %413 by %c6_i32_422 dim 1 : vector<8x128xf32>, i32 -> vector<8x128xf32>
    %c104_423 = arith.constant 104 : index
    %c0_424 = arith.constant 0 : index
    %441 = vector.load %arg5[%c104_423, %c0_424] : memref<384x128xf32, #tpu.memory_space<vmem>>, vector<8x128xf32>
    tpu.vector_store %arg5[%c104_423, %c0_424], %440 {strides = array<i32>} : memref<384x128xf32, #tpu.memory_space<vmem>>, vector<8x128xf32>,
    %c5_i32_425 = arith.constant 5 : i32
    %442 = tpu.dynamic_rotate %413 by %c5_i32_425 dim 1 : vector<8x128xf32>, i32 -> vector<8x128xf32>
    %c112_426 = arith.constant 112 : index
    %c0_427 = arith.constant 0 : index
    %443 = vector.load %arg5[%c112_426, %c0_427] : memref<384x128xf32, #tpu.memory_space<vmem>>, vector<8x128xf32>
    tpu.vector_store %arg5[%c112_426, %c0_427], %442 {strides = array<i32>} : memref<384x128xf32, #tpu.memory_space<vmem>>, vector<8x128xf32>,
    %c4_i32_428 = arith.constant 4 : i32
    %444 = tpu.dynamic_rotate %413 by %c4_i32_428 dim 1 : vector<8x128xf32>, i32 -> vector<8x128xf32>
    %c120_429 = arith.constant 120 : index
    %c0_430 = arith.constant 0 : index
    %445 = vector.load %arg5[%c120_429, %c0_430] : memref<384x128xf32, #tpu.memory_space<vmem>>, vector<8x128xf32>
    tpu.vector_store %arg5[%c120_429, %c0_430], %444 {strides = array<i32>} : memref<384x128xf32, #tpu.memory_space<vmem>>, vector<8x128xf32>,
    %c3_i32_431 = arith.constant 3 : i32
    %446 = tpu.dynamic_rotate %413 by %c3_i32_431 dim 1 : vector<8x128xf32>, i32 -> vector<8x128xf32>
    %c128_432 = arith.constant 128 : index
    %c0_433 = arith.constant 0 : index
    %447 = vector.load %arg5[%c128_432, %c0_433] : memref<384x128xf32, #tpu.memory_space<vmem>>, vector<8x128xf32>
    tpu.vector_store %arg5[%c128_432, %c0_433], %446 {strides = array<i32>} : memref<384x128xf32, #tpu.memory_space<vmem>>, vector<8x128xf32>,
    %c2_i32_434 = arith.constant 2 : i32
    %448 = tpu.dynamic_rotate %413 by %c2_i32_434 dim 1 : vector<8x128xf32>, i32 -> vector<8x128xf32>
    %c136_435 = arith.constant 136 : index
    %c0_436 = arith.constant 0 : index
    %449 = vector.load %arg5[%c136_435, %c0_436] : memref<384x128xf32, #tpu.memory_space<vmem>>, vector<8x128xf32>
    tpu.vector_store %arg5[%c136_435, %c0_436], %448 {strides = array<i32>} : memref<384x128xf32, #tpu.memory_space<vmem>>, vector<8x128xf32>,
    %c1_i32_437 = arith.constant 1 : i32
    %450 = tpu.dynamic_rotate %413 by %c1_i32_437 dim 1 : vector<8x128xf32>, i32 -> vector<8x128xf32>
    %c144_438 = arith.constant 144 : index
    %c0_439 = arith.constant 0 : index
    %451 = vector.load %arg5[%c144_438, %c0_439] : memref<384x128xf32, #tpu.memory_space<vmem>>, vector<8x128xf32>
    tpu.vector_store %arg5[%c144_438, %c0_439], %450 {strides = array<i32>} : memref<384x128xf32, #tpu.memory_space<vmem>>, vector<8x128xf32>,
    %c152_440 = arith.constant 152 : index
    %c0_441 = arith.constant 0 : index
    %452 = vector.load %arg5[%c152_440, %c0_441] : memref<384x128xf32, #tpu.memory_space<vmem>>, vector<8x128xf32>
    tpu.vector_store %arg5[%c152_440, %c0_441], %413 {strides = array<i32>} : memref<384x128xf32, #tpu.memory_space<vmem>>, vector<8x128xf32>,
    %c127_i32_442 = arith.constant 127 : i32
    %453 = tpu.dynamic_rotate %413 by %c127_i32_442 dim 1 : vector<8x128xf32>, i32 -> vector<8x128xf32>
    %c160_443 = arith.constant 160 : index
    %c0_444 = arith.constant 0 : index
    %454 = vector.load %arg5[%c160_443, %c0_444] : memref<384x128xf32, #tpu.memory_space<vmem>>, vector<8x128xf32>
    tpu.vector_store %arg5[%c160_443, %c0_444], %453 {strides = array<i32>} : memref<384x128xf32, #tpu.memory_space<vmem>>, vector<8x128xf32>,
    %c126_i32_445 = arith.constant 126 : i32
    %455 = tpu.dynamic_rotate %413 by %c126_i32_445 dim 1 : vector<8x128xf32>, i32 -> vector<8x128xf32>
    %c168_446 = arith.constant 168 : index
    %c0_447 = arith.constant 0 : index
    %456 = vector.load %arg5[%c168_446, %c0_447] : memref<384x128xf32, #tpu.memory_space<vmem>>, vector<8x128xf32>
    tpu.vector_store %arg5[%c168_446, %c0_447], %455 {strides = array<i32>} : memref<384x128xf32, #tpu.memory_space<vmem>>, vector<8x128xf32>,
    %c125_i32_448 = arith.constant 125 : i32
    %457 = tpu.dynamic_rotate %413 by %c125_i32_448 dim 1 : vector<8x128xf32>, i32 -> vector<8x128xf32>
    %c176_449 = arith.constant 176 : index
    %c0_450 = arith.constant 0 : index
    %458 = vector.load %arg5[%c176_449, %c0_450] : memref<384x128xf32, #tpu.memory_space<vmem>>, vector<8x128xf32>
    tpu.vector_store %arg5[%c176_449, %c0_450], %457 {strides = array<i32>} : memref<384x128xf32, #tpu.memory_space<vmem>>, vector<8x128xf32>,
    %c124_i32_451 = arith.constant 124 : i32
    %459 = tpu.dynamic_rotate %413 by %c124_i32_451 dim 1 : vector<8x128xf32>, i32 -> vector<8x128xf32>
    %c184_452 = arith.constant 184 : index
    %c0_453 = arith.constant 0 : index
    %460 = vector.load %arg5[%c184_452, %c0_453] : memref<384x128xf32, #tpu.memory_space<vmem>>, vector<8x128xf32>
    tpu.vector_store %arg5[%c184_452, %c0_453], %459 {strides = array<i32>} : memref<384x128xf32, #tpu.memory_space<vmem>>, vector<8x128xf32>,
    %c123_i32_454 = arith.constant 123 : i32
    %461 = tpu.dynamic_rotate %413 by %c123_i32_454 dim 1 : vector<8x128xf32>, i32 -> vector<8x128xf32>
    %c192_455 = arith.constant 192 : index
    %c0_456 = arith.constant 0 : index
    %462 = vector.load %arg5[%c192_455, %c0_456] : memref<384x128xf32, #tpu.memory_space<vmem>>, vector<8x128xf32>
    tpu.vector_store %arg5[%c192_455, %c0_456], %461 {strides = array<i32>} : memref<384x128xf32, #tpu.memory_space<vmem>>, vector<8x128xf32>,
    %c122_i32_457 = arith.constant 122 : i32
    %463 = tpu.dynamic_rotate %413 by %c122_i32_457 dim 1 : vector<8x128xf32>, i32 -> vector<8x128xf32>
    %c200_458 = arith.constant 200 : index
    %c0_459 = arith.constant 0 : index
    %464 = vector.load %arg5[%c200_458, %c0_459] : memref<384x128xf32, #tpu.memory_space<vmem>>, vector<8x128xf32>
    tpu.vector_store %arg5[%c200_458, %c0_459], %463 {strides = array<i32>} : memref<384x128xf32, #tpu.memory_space<vmem>>, vector<8x128xf32>,
    %c121_i32_460 = arith.constant 121 : i32
    %465 = tpu.dynamic_rotate %413 by %c121_i32_460 dim 1 : vector<8x128xf32>, i32 -> vector<8x128xf32>
    %c208_461 = arith.constant 208 : index
    %c0_462 = arith.constant 0 : index
    %466 = vector.load %arg5[%c208_461, %c0_462] : memref<384x128xf32, #tpu.memory_space<vmem>>, vector<8x128xf32>
    tpu.vector_store %arg5[%c208_461, %c0_462], %465 {strides = array<i32>} : memref<384x128xf32, #tpu.memory_space<vmem>>, vector<8x128xf32>,
    %c120_i32_463 = arith.constant 120 : i32
    %467 = tpu.dynamic_rotate %413 by %c120_i32_463 dim 1 : vector<8x128xf32>, i32 -> vector<8x128xf32>
    %c216_464 = arith.constant 216 : index
    %c0_465 = arith.constant 0 : index
    %468 = vector.load %arg5[%c216_464, %c0_465] : memref<384x128xf32, #tpu.memory_space<vmem>>, vector<8x128xf32>
    tpu.vector_store %arg5[%c216_464, %c0_465], %467 {strides = array<i32>} : memref<384x128xf32, #tpu.memory_space<vmem>>, vector<8x128xf32>,
    %c119_i32_466 = arith.constant 119 : i32
    %469 = tpu.dynamic_rotate %413 by %c119_i32_466 dim 1 : vector<8x128xf32>, i32 -> vector<8x128xf32>
    %c224_467 = arith.constant 224 : index
    %c0_468 = arith.constant 0 : index
    %470 = vector.load %arg5[%c224_467, %c0_468] : memref<384x128xf32, #tpu.memory_space<vmem>>, vector<8x128xf32>
    tpu.vector_store %arg5[%c224_467, %c0_468], %469 {strides = array<i32>} : memref<384x128xf32, #tpu.memory_space<vmem>>, vector<8x128xf32>,
    %c118_i32_469 = arith.constant 118 : i32
    %471 = tpu.dynamic_rotate %413 by %c118_i32_469 dim 1 : vector<8x128xf32>, i32 -> vector<8x128xf32>
    %c232_470 = arith.constant 232 : index
    %c0_471 = arith.constant 0 : index
    %472 = vector.load %arg5[%c232_470, %c0_471] : memref<384x128xf32, #tpu.memory_space<vmem>>, vector<8x128xf32>
    tpu.vector_store %arg5[%c232_470, %c0_471], %471 {strides = array<i32>} : memref<384x128xf32, #tpu.memory_space<vmem>>, vector<8x128xf32>,
    %c117_i32_472 = arith.constant 117 : i32
    %473 = tpu.dynamic_rotate %413 by %c117_i32_472 dim 1 : vector<8x128xf32>, i32 -> vector<8x128xf32>
    %c240_473 = arith.constant 240 : index
    %c0_474 = arith.constant 0 : index
    %474 = vector.load %arg5[%c240_473, %c0_474] : memref<384x128xf32, #tpu.memory_space<vmem>>, vector<8x128xf32>
    tpu.vector_store %arg5[%c240_473, %c0_474], %473 {strides = array<i32>} : memref<384x128xf32, #tpu.memory_space<vmem>>, vector<8x128xf32>,
    %c116_i32_475 = arith.constant 116 : i32
    %475 = tpu.dynamic_rotate %413 by %c116_i32_475 dim 1 : vector<8x128xf32>, i32 -> vector<8x128xf32>
    %c248_476 = arith.constant 248 : index
    %c0_477 = arith.constant 0 : index
    %476 = vector.load %arg5[%c248_476, %c0_477] : memref<384x128xf32, #tpu.memory_space<vmem>>, vector<8x128xf32>
    tpu.vector_store %arg5[%c248_476, %c0_477], %475 {strides = array<i32>} : memref<384x128xf32, #tpu.memory_space<vmem>>, vector<8x128xf32>,
    %c115_i32_478 = arith.constant 115 : i32
    %477 = tpu.dynamic_rotate %413 by %c115_i32_478 dim 1 : vector<8x128xf32>, i32 -> vector<8x128xf32>
    %c256_479 = arith.constant 256 : index
    %c0_480 = arith.constant 0 : index
    %478 = vector.load %arg5[%c256_479, %c0_480] : memref<384x128xf32, #tpu.memory_space<vmem>>, vector<8x128xf32>
    tpu.vector_store %arg5[%c256_479, %c0_480], %477 {strides = array<i32>} : memref<384x128xf32, #tpu.memory_space<vmem>>, vector<8x128xf32>,
    %c114_i32_481 = arith.constant 114 : i32
    %479 = tpu.dynamic_rotate %413 by %c114_i32_481 dim 1 : vector<8x128xf32>, i32 -> vector<8x128xf32>
    %c264_482 = arith.constant 264 : index
    %c0_483 = arith.constant 0 : index
    %480 = vector.load %arg5[%c264_482, %c0_483] : memref<384x128xf32, #tpu.memory_space<vmem>>, vector<8x128xf32>
    tpu.vector_store %arg5[%c264_482, %c0_483], %479 {strides = array<i32>} : memref<384x128xf32, #tpu.memory_space<vmem>>, vector<8x128xf32>,
    %c113_i32_484 = arith.constant 113 : i32
    %481 = tpu.dynamic_rotate %413 by %c113_i32_484 dim 1 : vector<8x128xf32>, i32 -> vector<8x128xf32>
    %c272_485 = arith.constant 272 : index
    %c0_486 = arith.constant 0 : index
    %482 = vector.load %arg5[%c272_485, %c0_486] : memref<384x128xf32, #tpu.memory_space<vmem>>, vector<8x128xf32>
    tpu.vector_store %arg5[%c272_485, %c0_486], %481 {strides = array<i32>} : memref<384x128xf32, #tpu.memory_space<vmem>>, vector<8x128xf32>,
    %c112_i32_487 = arith.constant 112 : i32
    %483 = tpu.dynamic_rotate %413 by %c112_i32_487 dim 1 : vector<8x128xf32>, i32 -> vector<8x128xf32>
    %c280_488 = arith.constant 280 : index
    %c0_489 = arith.constant 0 : index
    %484 = vector.load %arg5[%c280_488, %c0_489] : memref<384x128xf32, #tpu.memory_space<vmem>>, vector<8x128xf32>
    tpu.vector_store %arg5[%c280_488, %c0_489], %483 {strides = array<i32>} : memref<384x128xf32, #tpu.memory_space<vmem>>, vector<8x128xf32>,
    %c111_i32_490 = arith.constant 111 : i32
    %485 = tpu.dynamic_rotate %413 by %c111_i32_490 dim 1 : vector<8x128xf32>, i32 -> vector<8x128xf32>
    %c288_491 = arith.constant 288 : index
    %c0_492 = arith.constant 0 : index
    %486 = vector.load %arg5[%c288_491, %c0_492] : memref<384x128xf32, #tpu.memory_space<vmem>>, vector<8x128xf32>
    tpu.vector_store %arg5[%c288_491, %c0_492], %485 {strides = array<i32>} : memref<384x128xf32, #tpu.memory_space<vmem>>, vector<8x128xf32>,
    %c110_i32_493 = arith.constant 110 : i32
    %487 = tpu.dynamic_rotate %413 by %c110_i32_493 dim 1 : vector<8x128xf32>, i32 -> vector<8x128xf32>
    %c296_494 = arith.constant 296 : index
    %c0_495 = arith.constant 0 : index
    %488 = vector.load %arg5[%c296_494, %c0_495] : memref<384x128xf32, #tpu.memory_space<vmem>>, vector<8x128xf32>
    tpu.vector_store %arg5[%c296_494, %c0_495], %487 {strides = array<i32>} : memref<384x128xf32, #tpu.memory_space<vmem>>, vector<8x128xf32>,
    %c109_i32_496 = arith.constant 109 : i32
    %489 = tpu.dynamic_rotate %413 by %c109_i32_496 dim 1 : vector<8x128xf32>, i32 -> vector<8x128xf32>
    %c304_497 = arith.constant 304 : index
    %c0_498 = arith.constant 0 : index
    %490 = vector.load %arg5[%c304_497, %c0_498] : memref<384x128xf32, #tpu.memory_space<vmem>>, vector<8x128xf32>
    tpu.vector_store %arg5[%c304_497, %c0_498], %489 {strides = array<i32>} : memref<384x128xf32, #tpu.memory_space<vmem>>, vector<8x128xf32>,
    %cst_499 = arith.constant -3.000000e+38 : f32
    %491 = vector.broadcast %cst_499 : f32 to vector<32x128xf32>
    %492 = arith.select %6, %411, %491 : vector<32x128xi1>, vector<32x128xf32>
    %c1_i32_500 = arith.constant 1 : i32
    %493 = tpu.dynamic_rotate %492 by %c1_i32_500 dim 1 : vector<32x128xf32>, i32 -> vector<32x128xf32>
    %494 = arith.maximumf %493, %492 : vector<32x128xf32>
    %c127_i32_501 = arith.constant 127 : i32
    %495 = tpu.dynamic_rotate %492 by %c127_i32_501 dim 1 : vector<32x128xf32>, i32 -> vector<32x128xf32>
    %496 = arith.maximumf %494, %495 : vector<32x128xf32>
    %cst_502 = arith.constant 0.000000e+00 : f32
    %497 = vector.broadcast %cst_502 : f32 to vector<32x128xf32>
    %498 = arith.select %6, %496, %497 : vector<32x128xi1>, vector<32x128xf32>
    %c312_503 = arith.constant 312 : index
    %c0_504 = arith.constant 0 : index
    %499 = vector.load %arg5[%c312_503, %c0_504] : memref<384x128xf32, #tpu.memory_space<vmem>>, vector<32x128xf32>
    tpu.vector_store %arg5[%c312_503, %c0_504], %498 {strides = array<i32>} : memref<384x128xf32, #tpu.memory_space<vmem>>, vector<32x128xf32>,
    %cst_505 = arith.constant 0.000000e+00 : f32
    %500 = vector.broadcast %cst_505 : f32 to vector<32x128xf32>
    %c96_506 = arith.constant 96 : index
    %c0_507 = arith.constant 0 : index
    %501 = vector.load %arg2[%c96_506, %c0_507] : memref<192x384xf32, #tpu.memory_space<vmem>>, vector<32x128xf32>
    %c0_508 = arith.constant 0 : index
    %c0_509 = arith.constant 0 : index
    %502 = vector.load %arg5[%c0_508, %c0_509] : memref<384x128xf32, #tpu.memory_space<vmem>>, vector<128x128xf32>
    %cst_510 = arith.constant dense<0.000000e+00> : vector<32x128xf32>
    %503 = tpu.matmul %501, %502, %cst_510 {dimension_numbers = #tpu.dot_dimension_numbers<[1], [0], [0], [1], [0, 0, 1, 1], [], []>} : vector<32x128xf32>, vector<128x128xf32>, vector<32x128xf32> -> vector<32x128xf32>
    %504 = arith.addf %500, %503 : vector<32x128xf32>
    %c96_511 = arith.constant 96 : index
    %c128_512 = arith.constant 128 : index
    %505 = vector.load %arg2[%c96_511, %c128_512] : memref<192x384xf32, #tpu.memory_space<vmem>>, vector<32x128xf32>
    %c128_513 = arith.constant 128 : index
    %c0_514 = arith.constant 0 : index
    %506 = vector.load %arg5[%c128_513, %c0_514] : memref<384x128xf32, #tpu.memory_space<vmem>>, vector<128x128xf32>
    %cst_515 = arith.constant dense<0.000000e+00> : vector<32x128xf32>
    %507 = tpu.matmul %505, %506, %cst_515 {dimension_numbers = #tpu.dot_dimension_numbers<[1], [0], [0], [1], [0, 0, 1, 1], [], []>} : vector<32x128xf32>, vector<128x128xf32>, vector<32x128xf32> -> vector<32x128xf32>
    %508 = arith.addf %504, %507 : vector<32x128xf32>
    %c96_516 = arith.constant 96 : index
    %c256_517 = arith.constant 256 : index
    %509 = vector.load %arg2[%c96_516, %c256_517] : memref<192x384xf32, #tpu.memory_space<vmem>>, vector<32x128xf32>
    %c256_518 = arith.constant 256 : index
    %c0_519 = arith.constant 0 : index
    %510 = vector.load %arg5[%c256_518, %c0_519] : memref<384x128xf32, #tpu.memory_space<vmem>>, vector<128x128xf32>
    %cst_520 = arith.constant dense<0.000000e+00> : vector<32x128xf32>
    %511 = tpu.matmul %509, %510, %cst_520 {dimension_numbers = #tpu.dot_dimension_numbers<[1], [0], [0], [1], [0, 0, 1, 1], [], []>} : vector<32x128xf32>, vector<128x128xf32>, vector<32x128xf32> -> vector<32x128xf32>
    %512 = arith.addf %508, %511 : vector<32x128xf32>
    %cst_521 = arith.constant 0.000000e+00 : f32
    %513 = vector.broadcast %cst_521 : f32 to vector<32x128xf32>
    %514 = arith.maximumf %512, %513 : vector<32x128xf32>
    %cst_522 = arith.constant 0.000000e+00 : f32
    %515 = vector.broadcast %cst_522 : f32 to vector<32x128xf32>
    %516 = arith.select %6, %514, %515 : vector<32x128xi1>, vector<32x128xf32>
    %c32_523 = arith.constant 32 : index
    %c0_524 = arith.constant 0 : index
    %517 = vector.load %arg3[%c32_523, %c0_524] : memref<80x32xf32, #tpu.memory_space<vmem>>, vector<8x32xf32>
    %cst_525 = arith.constant dense<0.000000e+00> : vector<8x128xf32>
    %518 = tpu.matmul %517, %516, %cst_525 {dimension_numbers = #tpu.dot_dimension_numbers<[1], [0], [0], [1], [0, 0, 1, 1], [], []>} : vector<8x32xf32>, vector<32x128xf32>, vector<8x128xf32> -> vector<8x128xf32>
    %c19_i32_526 = arith.constant 19 : i32
    %519 = tpu.dynamic_rotate %518 by %c19_i32_526 dim 1 : vector<8x128xf32>, i32 -> vector<8x128xf32>
    %c0_527 = arith.constant 0 : index
    %c0_528 = arith.constant 0 : index
    %520 = vector.load %arg5[%c0_527, %c0_528] : memref<384x128xf32, #tpu.memory_space<vmem>>, vector<8x128xf32>
    tpu.vector_store %arg5[%c0_527, %c0_528], %519 {strides = array<i32>} : memref<384x128xf32, #tpu.memory_space<vmem>>, vector<8x128xf32>,
    %c18_i32_529 = arith.constant 18 : i32
    %521 = tpu.dynamic_rotate %518 by %c18_i32_529 dim 1 : vector<8x128xf32>, i32 -> vector<8x128xf32>
    %c8_530 = arith.constant 8 : index
    %c0_531 = arith.constant 0 : index
    %522 = vector.load %arg5[%c8_530, %c0_531] : memref<384x128xf32, #tpu.memory_space<vmem>>, vector<8x128xf32>
    tpu.vector_store %arg5[%c8_530, %c0_531], %521 {strides = array<i32>} : memref<384x128xf32, #tpu.memory_space<vmem>>, vector<8x128xf32>,
    %c17_i32_532 = arith.constant 17 : i32
    %523 = tpu.dynamic_rotate %518 by %c17_i32_532 dim 1 : vector<8x128xf32>, i32 -> vector<8x128xf32>
    %c16_533 = arith.constant 16 : index
    %c0_534 = arith.constant 0 : index
    %524 = vector.load %arg5[%c16_533, %c0_534] : memref<384x128xf32, #tpu.memory_space<vmem>>, vector<8x128xf32>
    tpu.vector_store %arg5[%c16_533, %c0_534], %523 {strides = array<i32>} : memref<384x128xf32, #tpu.memory_space<vmem>>, vector<8x128xf32>,
    %c16_i32_535 = arith.constant 16 : i32
    %525 = tpu.dynamic_rotate %518 by %c16_i32_535 dim 1 : vector<8x128xf32>, i32 -> vector<8x128xf32>
    %c24_536 = arith.constant 24 : index
    %c0_537 = arith.constant 0 : index
    %526 = vector.load %arg5[%c24_536, %c0_537] : memref<384x128xf32, #tpu.memory_space<vmem>>, vector<8x128xf32>
    tpu.vector_store %arg5[%c24_536, %c0_537], %525 {strides = array<i32>} : memref<384x128xf32, #tpu.memory_space<vmem>>, vector<8x128xf32>,
    %c15_i32_538 = arith.constant 15 : i32
    %527 = tpu.dynamic_rotate %518 by %c15_i32_538 dim 1 : vector<8x128xf32>, i32 -> vector<8x128xf32>
    %c32_539 = arith.constant 32 : index
    %c0_540 = arith.constant 0 : index
    %528 = vector.load %arg5[%c32_539, %c0_540] : memref<384x128xf32, #tpu.memory_space<vmem>>, vector<8x128xf32>
    tpu.vector_store %arg5[%c32_539, %c0_540], %527 {strides = array<i32>} : memref<384x128xf32, #tpu.memory_space<vmem>>, vector<8x128xf32>,
    %c14_i32_541 = arith.constant 14 : i32
    %529 = tpu.dynamic_rotate %518 by %c14_i32_541 dim 1 : vector<8x128xf32>, i32 -> vector<8x128xf32>
    %c40_542 = arith.constant 40 : index
    %c0_543 = arith.constant 0 : index
    %530 = vector.load %arg5[%c40_542, %c0_543] : memref<384x128xf32, #tpu.memory_space<vmem>>, vector<8x128xf32>
    tpu.vector_store %arg5[%c40_542, %c0_543], %529 {strides = array<i32>} : memref<384x128xf32, #tpu.memory_space<vmem>>, vector<8x128xf32>,
    %c13_i32_544 = arith.constant 13 : i32
    %531 = tpu.dynamic_rotate %518 by %c13_i32_544 dim 1 : vector<8x128xf32>, i32 -> vector<8x128xf32>
    %c48_545 = arith.constant 48 : index
    %c0_546 = arith.constant 0 : index
    %532 = vector.load %arg5[%c48_545, %c0_546] : memref<384x128xf32, #tpu.memory_space<vmem>>, vector<8x128xf32>
    tpu.vector_store %arg5[%c48_545, %c0_546], %531 {strides = array<i32>} : memref<384x128xf32, #tpu.memory_space<vmem>>, vector<8x128xf32>,
    %c12_i32_547 = arith.constant 12 : i32
    %533 = tpu.dynamic_rotate %518 by %c12_i32_547 dim 1 : vector<8x128xf32>, i32 -> vector<8x128xf32>
    %c56_548 = arith.constant 56 : index
    %c0_549 = arith.constant 0 : index
    %534 = vector.load %arg5[%c56_548, %c0_549] : memref<384x128xf32, #tpu.memory_space<vmem>>, vector<8x128xf32>
    tpu.vector_store %arg5[%c56_548, %c0_549], %533 {strides = array<i32>} : memref<384x128xf32, #tpu.memory_space<vmem>>, vector<8x128xf32>,
    %c11_i32_550 = arith.constant 11 : i32
    %535 = tpu.dynamic_rotate %518 by %c11_i32_550 dim 1 : vector<8x128xf32>, i32 -> vector<8x128xf32>
    %c64_551 = arith.constant 64 : index
    %c0_552 = arith.constant 0 : index
    %536 = vector.load %arg5[%c64_551, %c0_552] : memref<384x128xf32, #tpu.memory_space<vmem>>, vector<8x128xf32>
    tpu.vector_store %arg5[%c64_551, %c0_552], %535 {strides = array<i32>} : memref<384x128xf32, #tpu.memory_space<vmem>>, vector<8x128xf32>,
    %c10_i32_553 = arith.constant 10 : i32
    %537 = tpu.dynamic_rotate %518 by %c10_i32_553 dim 1 : vector<8x128xf32>, i32 -> vector<8x128xf32>
    %c72_554 = arith.constant 72 : index
    %c0_555 = arith.constant 0 : index
    %538 = vector.load %arg5[%c72_554, %c0_555] : memref<384x128xf32, #tpu.memory_space<vmem>>, vector<8x128xf32>
    tpu.vector_store %arg5[%c72_554, %c0_555], %537 {strides = array<i32>} : memref<384x128xf32, #tpu.memory_space<vmem>>, vector<8x128xf32>,
    %c9_i32_556 = arith.constant 9 : i32
    %539 = tpu.dynamic_rotate %518 by %c9_i32_556 dim 1 : vector<8x128xf32>, i32 -> vector<8x128xf32>
    %c80_557 = arith.constant 80 : index
    %c0_558 = arith.constant 0 : index
    %540 = vector.load %arg5[%c80_557, %c0_558] : memref<384x128xf32, #tpu.memory_space<vmem>>, vector<8x128xf32>
    tpu.vector_store %arg5[%c80_557, %c0_558], %539 {strides = array<i32>} : memref<384x128xf32, #tpu.memory_space<vmem>>, vector<8x128xf32>,
    %c8_i32_559 = arith.constant 8 : i32
    %541 = tpu.dynamic_rotate %518 by %c8_i32_559 dim 1 : vector<8x128xf32>, i32 -> vector<8x128xf32>
    %c88_560 = arith.constant 88 : index
    %c0_561 = arith.constant 0 : index
    %542 = vector.load %arg5[%c88_560, %c0_561] : memref<384x128xf32, #tpu.memory_space<vmem>>, vector<8x128xf32>
    tpu.vector_store %arg5[%c88_560, %c0_561], %541 {strides = array<i32>} : memref<384x128xf32, #tpu.memory_space<vmem>>, vector<8x128xf32>,
    %c7_i32_562 = arith.constant 7 : i32
    %543 = tpu.dynamic_rotate %518 by %c7_i32_562 dim 1 : vector<8x128xf32>, i32 -> vector<8x128xf32>
    %c96_563 = arith.constant 96 : index
    %c0_564 = arith.constant 0 : index
    %544 = vector.load %arg5[%c96_563, %c0_564] : memref<384x128xf32, #tpu.memory_space<vmem>>, vector<8x128xf32>
    tpu.vector_store %arg5[%c96_563, %c0_564], %543 {strides = array<i32>} : memref<384x128xf32, #tpu.memory_space<vmem>>, vector<8x128xf32>,
    %c6_i32_565 = arith.constant 6 : i32
    %545 = tpu.dynamic_rotate %518 by %c6_i32_565 dim 1 : vector<8x128xf32>, i32 -> vector<8x128xf32>
    %c104_566 = arith.constant 104 : index
    %c0_567 = arith.constant 0 : index
    %546 = vector.load %arg5[%c104_566, %c0_567] : memref<384x128xf32, #tpu.memory_space<vmem>>, vector<8x128xf32>
    tpu.vector_store %arg5[%c104_566, %c0_567], %545 {strides = array<i32>} : memref<384x128xf32, #tpu.memory_space<vmem>>, vector<8x128xf32>,
    %c5_i32_568 = arith.constant 5 : i32
    %547 = tpu.dynamic_rotate %518 by %c5_i32_568 dim 1 : vector<8x128xf32>, i32 -> vector<8x128xf32>
    %c112_569 = arith.constant 112 : index
    %c0_570 = arith.constant 0 : index
    %548 = vector.load %arg5[%c112_569, %c0_570] : memref<384x128xf32, #tpu.memory_space<vmem>>, vector<8x128xf32>
    tpu.vector_store %arg5[%c112_569, %c0_570], %547 {strides = array<i32>} : memref<384x128xf32, #tpu.memory_space<vmem>>, vector<8x128xf32>,
    %c4_i32_571 = arith.constant 4 : i32
    %549 = tpu.dynamic_rotate %518 by %c4_i32_571 dim 1 : vector<8x128xf32>, i32 -> vector<8x128xf32>
    %c120_572 = arith.constant 120 : index
    %c0_573 = arith.constant 0 : index
    %550 = vector.load %arg5[%c120_572, %c0_573] : memref<384x128xf32, #tpu.memory_space<vmem>>, vector<8x128xf32>
    tpu.vector_store %arg5[%c120_572, %c0_573], %549 {strides = array<i32>} : memref<384x128xf32, #tpu.memory_space<vmem>>, vector<8x128xf32>,
    %c3_i32_574 = arith.constant 3 : i32
    %551 = tpu.dynamic_rotate %518 by %c3_i32_574 dim 1 : vector<8x128xf32>, i32 -> vector<8x128xf32>
    %c128_575 = arith.constant 128 : index
    %c0_576 = arith.constant 0 : index
    %552 = vector.load %arg5[%c128_575, %c0_576] : memref<384x128xf32, #tpu.memory_space<vmem>>, vector<8x128xf32>
    tpu.vector_store %arg5[%c128_575, %c0_576], %551 {strides = array<i32>} : memref<384x128xf32, #tpu.memory_space<vmem>>, vector<8x128xf32>,
    %c2_i32_577 = arith.constant 2 : i32
    %553 = tpu.dynamic_rotate %518 by %c2_i32_577 dim 1 : vector<8x128xf32>, i32 -> vector<8x128xf32>
    %c136_578 = arith.constant 136 : index
    %c0_579 = arith.constant 0 : index
    %554 = vector.load %arg5[%c136_578, %c0_579] : memref<384x128xf32, #tpu.memory_space<vmem>>, vector<8x128xf32>
    tpu.vector_store %arg5[%c136_578, %c0_579], %553 {strides = array<i32>} : memref<384x128xf32, #tpu.memory_space<vmem>>, vector<8x128xf32>,
    %c1_i32_580 = arith.constant 1 : i32
    %555 = tpu.dynamic_rotate %518 by %c1_i32_580 dim 1 : vector<8x128xf32>, i32 -> vector<8x128xf32>
    %c144_581 = arith.constant 144 : index
    %c0_582 = arith.constant 0 : index
    %556 = vector.load %arg5[%c144_581, %c0_582] : memref<384x128xf32, #tpu.memory_space<vmem>>, vector<8x128xf32>
    tpu.vector_store %arg5[%c144_581, %c0_582], %555 {strides = array<i32>} : memref<384x128xf32, #tpu.memory_space<vmem>>, vector<8x128xf32>,
    %c152_583 = arith.constant 152 : index
    %c0_584 = arith.constant 0 : index
    %557 = vector.load %arg5[%c152_583, %c0_584] : memref<384x128xf32, #tpu.memory_space<vmem>>, vector<8x128xf32>
    tpu.vector_store %arg5[%c152_583, %c0_584], %518 {strides = array<i32>} : memref<384x128xf32, #tpu.memory_space<vmem>>, vector<8x128xf32>,
    %c127_i32_585 = arith.constant 127 : i32
    %558 = tpu.dynamic_rotate %518 by %c127_i32_585 dim 1 : vector<8x128xf32>, i32 -> vector<8x128xf32>
    %c160_586 = arith.constant 160 : index
    %c0_587 = arith.constant 0 : index
    %559 = vector.load %arg5[%c160_586, %c0_587] : memref<384x128xf32, #tpu.memory_space<vmem>>, vector<8x128xf32>
    tpu.vector_store %arg5[%c160_586, %c0_587], %558 {strides = array<i32>} : memref<384x128xf32, #tpu.memory_space<vmem>>, vector<8x128xf32>,
    %c126_i32_588 = arith.constant 126 : i32
    %560 = tpu.dynamic_rotate %518 by %c126_i32_588 dim 1 : vector<8x128xf32>, i32 -> vector<8x128xf32>
    %c168_589 = arith.constant 168 : index
    %c0_590 = arith.constant 0 : index
    %561 = vector.load %arg5[%c168_589, %c0_590] : memref<384x128xf32, #tpu.memory_space<vmem>>, vector<8x128xf32>
    tpu.vector_store %arg5[%c168_589, %c0_590], %560 {strides = array<i32>} : memref<384x128xf32, #tpu.memory_space<vmem>>, vector<8x128xf32>,
    %c125_i32_591 = arith.constant 125 : i32
    %562 = tpu.dynamic_rotate %518 by %c125_i32_591 dim 1 : vector<8x128xf32>, i32 -> vector<8x128xf32>
    %c176_592 = arith.constant 176 : index
    %c0_593 = arith.constant 0 : index
    %563 = vector.load %arg5[%c176_592, %c0_593] : memref<384x128xf32, #tpu.memory_space<vmem>>, vector<8x128xf32>
    tpu.vector_store %arg5[%c176_592, %c0_593], %562 {strides = array<i32>} : memref<384x128xf32, #tpu.memory_space<vmem>>, vector<8x128xf32>,
    %c124_i32_594 = arith.constant 124 : i32
    %564 = tpu.dynamic_rotate %518 by %c124_i32_594 dim 1 : vector<8x128xf32>, i32 -> vector<8x128xf32>
    %c184_595 = arith.constant 184 : index
    %c0_596 = arith.constant 0 : index
    %565 = vector.load %arg5[%c184_595, %c0_596] : memref<384x128xf32, #tpu.memory_space<vmem>>, vector<8x128xf32>
    tpu.vector_store %arg5[%c184_595, %c0_596], %564 {strides = array<i32>} : memref<384x128xf32, #tpu.memory_space<vmem>>, vector<8x128xf32>,
    %c123_i32_597 = arith.constant 123 : i32
    %566 = tpu.dynamic_rotate %518 by %c123_i32_597 dim 1 : vector<8x128xf32>, i32 -> vector<8x128xf32>
    %c192_598 = arith.constant 192 : index
    %c0_599 = arith.constant 0 : index
    %567 = vector.load %arg5[%c192_598, %c0_599] : memref<384x128xf32, #tpu.memory_space<vmem>>, vector<8x128xf32>
    tpu.vector_store %arg5[%c192_598, %c0_599], %566 {strides = array<i32>} : memref<384x128xf32, #tpu.memory_space<vmem>>, vector<8x128xf32>,
    %c122_i32_600 = arith.constant 122 : i32
    %568 = tpu.dynamic_rotate %518 by %c122_i32_600 dim 1 : vector<8x128xf32>, i32 -> vector<8x128xf32>
    %c200_601 = arith.constant 200 : index
    %c0_602 = arith.constant 0 : index
    %569 = vector.load %arg5[%c200_601, %c0_602] : memref<384x128xf32, #tpu.memory_space<vmem>>, vector<8x128xf32>
    tpu.vector_store %arg5[%c200_601, %c0_602], %568 {strides = array<i32>} : memref<384x128xf32, #tpu.memory_space<vmem>>, vector<8x128xf32>,
    %c121_i32_603 = arith.constant 121 : i32
    %570 = tpu.dynamic_rotate %518 by %c121_i32_603 dim 1 : vector<8x128xf32>, i32 -> vector<8x128xf32>
    %c208_604 = arith.constant 208 : index
    %c0_605 = arith.constant 0 : index
    %571 = vector.load %arg5[%c208_604, %c0_605] : memref<384x128xf32, #tpu.memory_space<vmem>>, vector<8x128xf32>
    tpu.vector_store %arg5[%c208_604, %c0_605], %570 {strides = array<i32>} : memref<384x128xf32, #tpu.memory_space<vmem>>, vector<8x128xf32>,
    %c120_i32_606 = arith.constant 120 : i32
    %572 = tpu.dynamic_rotate %518 by %c120_i32_606 dim 1 : vector<8x128xf32>, i32 -> vector<8x128xf32>
    %c216_607 = arith.constant 216 : index
    %c0_608 = arith.constant 0 : index
    %573 = vector.load %arg5[%c216_607, %c0_608] : memref<384x128xf32, #tpu.memory_space<vmem>>, vector<8x128xf32>
    tpu.vector_store %arg5[%c216_607, %c0_608], %572 {strides = array<i32>} : memref<384x128xf32, #tpu.memory_space<vmem>>, vector<8x128xf32>,
    %c119_i32_609 = arith.constant 119 : i32
    %574 = tpu.dynamic_rotate %518 by %c119_i32_609 dim 1 : vector<8x128xf32>, i32 -> vector<8x128xf32>
    %c224_610 = arith.constant 224 : index
    %c0_611 = arith.constant 0 : index
    %575 = vector.load %arg5[%c224_610, %c0_611] : memref<384x128xf32, #tpu.memory_space<vmem>>, vector<8x128xf32>
    tpu.vector_store %arg5[%c224_610, %c0_611], %574 {strides = array<i32>} : memref<384x128xf32, #tpu.memory_space<vmem>>, vector<8x128xf32>,
    %c118_i32_612 = arith.constant 118 : i32
    %576 = tpu.dynamic_rotate %518 by %c118_i32_612 dim 1 : vector<8x128xf32>, i32 -> vector<8x128xf32>
    %c232_613 = arith.constant 232 : index
    %c0_614 = arith.constant 0 : index
    %577 = vector.load %arg5[%c232_613, %c0_614] : memref<384x128xf32, #tpu.memory_space<vmem>>, vector<8x128xf32>
    tpu.vector_store %arg5[%c232_613, %c0_614], %576 {strides = array<i32>} : memref<384x128xf32, #tpu.memory_space<vmem>>, vector<8x128xf32>,
    %c117_i32_615 = arith.constant 117 : i32
    %578 = tpu.dynamic_rotate %518 by %c117_i32_615 dim 1 : vector<8x128xf32>, i32 -> vector<8x128xf32>
    %c240_616 = arith.constant 240 : index
    %c0_617 = arith.constant 0 : index
    %579 = vector.load %arg5[%c240_616, %c0_617] : memref<384x128xf32, #tpu.memory_space<vmem>>, vector<8x128xf32>
    tpu.vector_store %arg5[%c240_616, %c0_617], %578 {strides = array<i32>} : memref<384x128xf32, #tpu.memory_space<vmem>>, vector<8x128xf32>,
    %c116_i32_618 = arith.constant 116 : i32
    %580 = tpu.dynamic_rotate %518 by %c116_i32_618 dim 1 : vector<8x128xf32>, i32 -> vector<8x128xf32>
    %c248_619 = arith.constant 248 : index
    %c0_620 = arith.constant 0 : index
    %581 = vector.load %arg5[%c248_619, %c0_620] : memref<384x128xf32, #tpu.memory_space<vmem>>, vector<8x128xf32>
    tpu.vector_store %arg5[%c248_619, %c0_620], %580 {strides = array<i32>} : memref<384x128xf32, #tpu.memory_space<vmem>>, vector<8x128xf32>,
    %c115_i32_621 = arith.constant 115 : i32
    %582 = tpu.dynamic_rotate %518 by %c115_i32_621 dim 1 : vector<8x128xf32>, i32 -> vector<8x128xf32>
    %c256_622 = arith.constant 256 : index
    %c0_623 = arith.constant 0 : index
    %583 = vector.load %arg5[%c256_622, %c0_623] : memref<384x128xf32, #tpu.memory_space<vmem>>, vector<8x128xf32>
    tpu.vector_store %arg5[%c256_622, %c0_623], %582 {strides = array<i32>} : memref<384x128xf32, #tpu.memory_space<vmem>>, vector<8x128xf32>,
    %c114_i32_624 = arith.constant 114 : i32
    %584 = tpu.dynamic_rotate %518 by %c114_i32_624 dim 1 : vector<8x128xf32>, i32 -> vector<8x128xf32>
    %c264_625 = arith.constant 264 : index
    %c0_626 = arith.constant 0 : index
    %585 = vector.load %arg5[%c264_625, %c0_626] : memref<384x128xf32, #tpu.memory_space<vmem>>, vector<8x128xf32>
    tpu.vector_store %arg5[%c264_625, %c0_626], %584 {strides = array<i32>} : memref<384x128xf32, #tpu.memory_space<vmem>>, vector<8x128xf32>,
    %c113_i32_627 = arith.constant 113 : i32
    %586 = tpu.dynamic_rotate %518 by %c113_i32_627 dim 1 : vector<8x128xf32>, i32 -> vector<8x128xf32>
    %c272_628 = arith.constant 272 : index
    %c0_629 = arith.constant 0 : index
    %587 = vector.load %arg5[%c272_628, %c0_629] : memref<384x128xf32, #tpu.memory_space<vmem>>, vector<8x128xf32>
    tpu.vector_store %arg5[%c272_628, %c0_629], %586 {strides = array<i32>} : memref<384x128xf32, #tpu.memory_space<vmem>>, vector<8x128xf32>,
    %c112_i32_630 = arith.constant 112 : i32
    %588 = tpu.dynamic_rotate %518 by %c112_i32_630 dim 1 : vector<8x128xf32>, i32 -> vector<8x128xf32>
    %c280_631 = arith.constant 280 : index
    %c0_632 = arith.constant 0 : index
    %589 = vector.load %arg5[%c280_631, %c0_632] : memref<384x128xf32, #tpu.memory_space<vmem>>, vector<8x128xf32>
    tpu.vector_store %arg5[%c280_631, %c0_632], %588 {strides = array<i32>} : memref<384x128xf32, #tpu.memory_space<vmem>>, vector<8x128xf32>,
    %c111_i32_633 = arith.constant 111 : i32
    %590 = tpu.dynamic_rotate %518 by %c111_i32_633 dim 1 : vector<8x128xf32>, i32 -> vector<8x128xf32>
    %c288_634 = arith.constant 288 : index
    %c0_635 = arith.constant 0 : index
    %591 = vector.load %arg5[%c288_634, %c0_635] : memref<384x128xf32, #tpu.memory_space<vmem>>, vector<8x128xf32>
    tpu.vector_store %arg5[%c288_634, %c0_635], %590 {strides = array<i32>} : memref<384x128xf32, #tpu.memory_space<vmem>>, vector<8x128xf32>,
    %c110_i32_636 = arith.constant 110 : i32
    %592 = tpu.dynamic_rotate %518 by %c110_i32_636 dim 1 : vector<8x128xf32>, i32 -> vector<8x128xf32>
    %c296_637 = arith.constant 296 : index
    %c0_638 = arith.constant 0 : index
    %593 = vector.load %arg5[%c296_637, %c0_638] : memref<384x128xf32, #tpu.memory_space<vmem>>, vector<8x128xf32>
    tpu.vector_store %arg5[%c296_637, %c0_638], %592 {strides = array<i32>} : memref<384x128xf32, #tpu.memory_space<vmem>>, vector<8x128xf32>,
    %c109_i32_639 = arith.constant 109 : i32
    %594 = tpu.dynamic_rotate %518 by %c109_i32_639 dim 1 : vector<8x128xf32>, i32 -> vector<8x128xf32>
    %c304_640 = arith.constant 304 : index
    %c0_641 = arith.constant 0 : index
    %595 = vector.load %arg5[%c304_640, %c0_641] : memref<384x128xf32, #tpu.memory_space<vmem>>, vector<8x128xf32>
    tpu.vector_store %arg5[%c304_640, %c0_641], %594 {strides = array<i32>} : memref<384x128xf32, #tpu.memory_space<vmem>>, vector<8x128xf32>,
    %cst_642 = arith.constant -3.000000e+38 : f32
    %596 = vector.broadcast %cst_642 : f32 to vector<32x128xf32>
    %597 = arith.select %6, %516, %596 : vector<32x128xi1>, vector<32x128xf32>
    %c1_i32_643 = arith.constant 1 : i32
    %598 = tpu.dynamic_rotate %597 by %c1_i32_643 dim 1 : vector<32x128xf32>, i32 -> vector<32x128xf32>
    %599 = arith.maximumf %598, %597 : vector<32x128xf32>
    %c127_i32_644 = arith.constant 127 : i32
    %600 = tpu.dynamic_rotate %597 by %c127_i32_644 dim 1 : vector<32x128xf32>, i32 -> vector<32x128xf32>
    %601 = arith.maximumf %599, %600 : vector<32x128xf32>
    %cst_645 = arith.constant 0.000000e+00 : f32
    %602 = vector.broadcast %cst_645 : f32 to vector<32x128xf32>
    %603 = arith.select %6, %601, %602 : vector<32x128xi1>, vector<32x128xf32>
    %c312_646 = arith.constant 312 : index
    %c0_647 = arith.constant 0 : index
    %604 = vector.load %arg5[%c312_646, %c0_647] : memref<384x128xf32, #tpu.memory_space<vmem>>, vector<32x128xf32>
    tpu.vector_store %arg5[%c312_646, %c0_647], %603 {strides = array<i32>} : memref<384x128xf32, #tpu.memory_space<vmem>>, vector<32x128xf32>,
    %cst_648 = arith.constant 0.000000e+00 : f32
    %605 = vector.broadcast %cst_648 : f32 to vector<32x128xf32>
    %c128_649 = arith.constant 128 : index
    %c0_650 = arith.constant 0 : index
    %606 = vector.load %arg2[%c128_649, %c0_650] : memref<192x384xf32, #tpu.memory_space<vmem>>, vector<32x128xf32>
    %c0_651 = arith.constant 0 : index
    %c0_652 = arith.constant 0 : index
    %607 = vector.load %arg5[%c0_651, %c0_652] : memref<384x128xf32, #tpu.memory_space<vmem>>, vector<128x128xf32>
    %cst_653 = arith.constant dense<0.000000e+00> : vector<32x128xf32>
    %608 = tpu.matmul %606, %607, %cst_653 {dimension_numbers = #tpu.dot_dimension_numbers<[1], [0], [0], [1], [0, 0, 1, 1], [], []>} : vector<32x128xf32>, vector<128x128xf32>, vector<32x128xf32> -> vector<32x128xf32>
    %609 = arith.addf %605, %608 : vector<32x128xf32>
    %c128_654 = arith.constant 128 : index
    %c128_655 = arith.constant 128 : index
    %610 = vector.load %arg2[%c128_654, %c128_655] : memref<192x384xf32, #tpu.memory_space<vmem>>, vector<32x128xf32>
    %c128_656 = arith.constant 128 : index
    %c0_657 = arith.constant 0 : index
    %611 = vector.load %arg5[%c128_656, %c0_657] : memref<384x128xf32, #tpu.memory_space<vmem>>, vector<128x128xf32>
    %cst_658 = arith.constant dense<0.000000e+00> : vector<32x128xf32>
    %612 = tpu.matmul %610, %611, %cst_658 {dimension_numbers = #tpu.dot_dimension_numbers<[1], [0], [0], [1], [0, 0, 1, 1], [], []>} : vector<32x128xf32>, vector<128x128xf32>, vector<32x128xf32> -> vector<32x128xf32>
    %613 = arith.addf %609, %612 : vector<32x128xf32>
    %c128_659 = arith.constant 128 : index
    %c256_660 = arith.constant 256 : index
    %614 = vector.load %arg2[%c128_659, %c256_660] : memref<192x384xf32, #tpu.memory_space<vmem>>, vector<32x128xf32>
    %c256_661 = arith.constant 256 : index
    %c0_662 = arith.constant 0 : index
    %615 = vector.load %arg5[%c256_661, %c0_662] : memref<384x128xf32, #tpu.memory_space<vmem>>, vector<128x128xf32>
    %cst_663 = arith.constant dense<0.000000e+00> : vector<32x128xf32>
    %616 = tpu.matmul %614, %615, %cst_663 {dimension_numbers = #tpu.dot_dimension_numbers<[1], [0], [0], [1], [0, 0, 1, 1], [], []>} : vector<32x128xf32>, vector<128x128xf32>, vector<32x128xf32> -> vector<32x128xf32>
    %617 = arith.addf %613, %616 : vector<32x128xf32>
    %cst_664 = arith.constant 0.000000e+00 : f32
    %618 = vector.broadcast %cst_664 : f32 to vector<32x128xf32>
    %619 = arith.maximumf %617, %618 : vector<32x128xf32>
    %cst_665 = arith.constant 0.000000e+00 : f32
    %620 = vector.broadcast %cst_665 : f32 to vector<32x128xf32>
    %621 = arith.select %6, %619, %620 : vector<32x128xi1>, vector<32x128xf32>
    %c40_666 = arith.constant 40 : index
    %c0_667 = arith.constant 0 : index
    %622 = vector.load %arg3[%c40_666, %c0_667] : memref<80x32xf32, #tpu.memory_space<vmem>>, vector<8x32xf32>
    %cst_668 = arith.constant dense<0.000000e+00> : vector<8x128xf32>
    %623 = tpu.matmul %622, %621, %cst_668 {dimension_numbers = #tpu.dot_dimension_numbers<[1], [0], [0], [1], [0, 0, 1, 1], [], []>} : vector<8x32xf32>, vector<32x128xf32>, vector<8x128xf32> -> vector<8x128xf32>
    %c19_i32_669 = arith.constant 19 : i32
    %624 = tpu.dynamic_rotate %623 by %c19_i32_669 dim 1 : vector<8x128xf32>, i32 -> vector<8x128xf32>
    %c0_670 = arith.constant 0 : index
    %c0_671 = arith.constant 0 : index
    %625 = vector.load %arg5[%c0_670, %c0_671] : memref<384x128xf32, #tpu.memory_space<vmem>>, vector<8x128xf32>
    tpu.vector_store %arg5[%c0_670, %c0_671], %624 {strides = array<i32>} : memref<384x128xf32, #tpu.memory_space<vmem>>, vector<8x128xf32>,
    %c18_i32_672 = arith.constant 18 : i32
    %626 = tpu.dynamic_rotate %623 by %c18_i32_672 dim 1 : vector<8x128xf32>, i32 -> vector<8x128xf32>
    %c8_673 = arith.constant 8 : index
    %c0_674 = arith.constant 0 : index
    %627 = vector.load %arg5[%c8_673, %c0_674] : memref<384x128xf32, #tpu.memory_space<vmem>>, vector<8x128xf32>
    tpu.vector_store %arg5[%c8_673, %c0_674], %626 {strides = array<i32>} : memref<384x128xf32, #tpu.memory_space<vmem>>, vector<8x128xf32>,
    %c17_i32_675 = arith.constant 17 : i32
    %628 = tpu.dynamic_rotate %623 by %c17_i32_675 dim 1 : vector<8x128xf32>, i32 -> vector<8x128xf32>
    %c16_676 = arith.constant 16 : index
    %c0_677 = arith.constant 0 : index
    %629 = vector.load %arg5[%c16_676, %c0_677] : memref<384x128xf32, #tpu.memory_space<vmem>>, vector<8x128xf32>
    tpu.vector_store %arg5[%c16_676, %c0_677], %628 {strides = array<i32>} : memref<384x128xf32, #tpu.memory_space<vmem>>, vector<8x128xf32>,
    %c16_i32_678 = arith.constant 16 : i32
    %630 = tpu.dynamic_rotate %623 by %c16_i32_678 dim 1 : vector<8x128xf32>, i32 -> vector<8x128xf32>
    %c24_679 = arith.constant 24 : index
    %c0_680 = arith.constant 0 : index
    %631 = vector.load %arg5[%c24_679, %c0_680] : memref<384x128xf32, #tpu.memory_space<vmem>>, vector<8x128xf32>
    tpu.vector_store %arg5[%c24_679, %c0_680], %630 {strides = array<i32>} : memref<384x128xf32, #tpu.memory_space<vmem>>, vector<8x128xf32>,
    %c15_i32_681 = arith.constant 15 : i32
    %632 = tpu.dynamic_rotate %623 by %c15_i32_681 dim 1 : vector<8x128xf32>, i32 -> vector<8x128xf32>
    %c32_682 = arith.constant 32 : index
    %c0_683 = arith.constant 0 : index
    %633 = vector.load %arg5[%c32_682, %c0_683] : memref<384x128xf32, #tpu.memory_space<vmem>>, vector<8x128xf32>
    tpu.vector_store %arg5[%c32_682, %c0_683], %632 {strides = array<i32>} : memref<384x128xf32, #tpu.memory_space<vmem>>, vector<8x128xf32>,
    %c14_i32_684 = arith.constant 14 : i32
    %634 = tpu.dynamic_rotate %623 by %c14_i32_684 dim 1 : vector<8x128xf32>, i32 -> vector<8x128xf32>
    %c40_685 = arith.constant 40 : index
    %c0_686 = arith.constant 0 : index
    %635 = vector.load %arg5[%c40_685, %c0_686] : memref<384x128xf32, #tpu.memory_space<vmem>>, vector<8x128xf32>
    tpu.vector_store %arg5[%c40_685, %c0_686], %634 {strides = array<i32>} : memref<384x128xf32, #tpu.memory_space<vmem>>, vector<8x128xf32>,
    %c13_i32_687 = arith.constant 13 : i32
    %636 = tpu.dynamic_rotate %623 by %c13_i32_687 dim 1 : vector<8x128xf32>, i32 -> vector<8x128xf32>
    %c48_688 = arith.constant 48 : index
    %c0_689 = arith.constant 0 : index
    %637 = vector.load %arg5[%c48_688, %c0_689] : memref<384x128xf32, #tpu.memory_space<vmem>>, vector<8x128xf32>
    tpu.vector_store %arg5[%c48_688, %c0_689], %636 {strides = array<i32>} : memref<384x128xf32, #tpu.memory_space<vmem>>, vector<8x128xf32>,
    %c12_i32_690 = arith.constant 12 : i32
    %638 = tpu.dynamic_rotate %623 by %c12_i32_690 dim 1 : vector<8x128xf32>, i32 -> vector<8x128xf32>
    %c56_691 = arith.constant 56 : index
    %c0_692 = arith.constant 0 : index
    %639 = vector.load %arg5[%c56_691, %c0_692] : memref<384x128xf32, #tpu.memory_space<vmem>>, vector<8x128xf32>
    tpu.vector_store %arg5[%c56_691, %c0_692], %638 {strides = array<i32>} : memref<384x128xf32, #tpu.memory_space<vmem>>, vector<8x128xf32>,
    %c11_i32_693 = arith.constant 11 : i32
    %640 = tpu.dynamic_rotate %623 by %c11_i32_693 dim 1 : vector<8x128xf32>, i32 -> vector<8x128xf32>
    %c64_694 = arith.constant 64 : index
    %c0_695 = arith.constant 0 : index
    %641 = vector.load %arg5[%c64_694, %c0_695] : memref<384x128xf32, #tpu.memory_space<vmem>>, vector<8x128xf32>
    tpu.vector_store %arg5[%c64_694, %c0_695], %640 {strides = array<i32>} : memref<384x128xf32, #tpu.memory_space<vmem>>, vector<8x128xf32>,
    %c10_i32_696 = arith.constant 10 : i32
    %642 = tpu.dynamic_rotate %623 by %c10_i32_696 dim 1 : vector<8x128xf32>, i32 -> vector<8x128xf32>
    %c72_697 = arith.constant 72 : index
    %c0_698 = arith.constant 0 : index
    %643 = vector.load %arg5[%c72_697, %c0_698] : memref<384x128xf32, #tpu.memory_space<vmem>>, vector<8x128xf32>
    tpu.vector_store %arg5[%c72_697, %c0_698], %642 {strides = array<i32>} : memref<384x128xf32, #tpu.memory_space<vmem>>, vector<8x128xf32>,
    %c9_i32_699 = arith.constant 9 : i32
    %644 = tpu.dynamic_rotate %623 by %c9_i32_699 dim 1 : vector<8x128xf32>, i32 -> vector<8x128xf32>
    %c80_700 = arith.constant 80 : index
    %c0_701 = arith.constant 0 : index
    %645 = vector.load %arg5[%c80_700, %c0_701] : memref<384x128xf32, #tpu.memory_space<vmem>>, vector<8x128xf32>
    tpu.vector_store %arg5[%c80_700, %c0_701], %644 {strides = array<i32>} : memref<384x128xf32, #tpu.memory_space<vmem>>, vector<8x128xf32>,
    %c8_i32_702 = arith.constant 8 : i32
    %646 = tpu.dynamic_rotate %623 by %c8_i32_702 dim 1 : vector<8x128xf32>, i32 -> vector<8x128xf32>
    %c88_703 = arith.constant 88 : index
    %c0_704 = arith.constant 0 : index
    %647 = vector.load %arg5[%c88_703, %c0_704] : memref<384x128xf32, #tpu.memory_space<vmem>>, vector<8x128xf32>
    tpu.vector_store %arg5[%c88_703, %c0_704], %646 {strides = array<i32>} : memref<384x128xf32, #tpu.memory_space<vmem>>, vector<8x128xf32>,
    %c7_i32_705 = arith.constant 7 : i32
    %648 = tpu.dynamic_rotate %623 by %c7_i32_705 dim 1 : vector<8x128xf32>, i32 -> vector<8x128xf32>
    %c96_706 = arith.constant 96 : index
    %c0_707 = arith.constant 0 : index
    %649 = vector.load %arg5[%c96_706, %c0_707] : memref<384x128xf32, #tpu.memory_space<vmem>>, vector<8x128xf32>
    tpu.vector_store %arg5[%c96_706, %c0_707], %648 {strides = array<i32>} : memref<384x128xf32, #tpu.memory_space<vmem>>, vector<8x128xf32>,
    %c6_i32_708 = arith.constant 6 : i32
    %650 = tpu.dynamic_rotate %623 by %c6_i32_708 dim 1 : vector<8x128xf32>, i32 -> vector<8x128xf32>
    %c104_709 = arith.constant 104 : index
    %c0_710 = arith.constant 0 : index
    %651 = vector.load %arg5[%c104_709, %c0_710] : memref<384x128xf32, #tpu.memory_space<vmem>>, vector<8x128xf32>
    tpu.vector_store %arg5[%c104_709, %c0_710], %650 {strides = array<i32>} : memref<384x128xf32, #tpu.memory_space<vmem>>, vector<8x128xf32>,
    %c5_i32_711 = arith.constant 5 : i32
    %652 = tpu.dynamic_rotate %623 by %c5_i32_711 dim 1 : vector<8x128xf32>, i32 -> vector<8x128xf32>
    %c112_712 = arith.constant 112 : index
    %c0_713 = arith.constant 0 : index
    %653 = vector.load %arg5[%c112_712, %c0_713] : memref<384x128xf32, #tpu.memory_space<vmem>>, vector<8x128xf32>
    tpu.vector_store %arg5[%c112_712, %c0_713], %652 {strides = array<i32>} : memref<384x128xf32, #tpu.memory_space<vmem>>, vector<8x128xf32>,
    %c4_i32_714 = arith.constant 4 : i32
    %654 = tpu.dynamic_rotate %623 by %c4_i32_714 dim 1 : vector<8x128xf32>, i32 -> vector<8x128xf32>
    %c120_715 = arith.constant 120 : index
    %c0_716 = arith.constant 0 : index
    %655 = vector.load %arg5[%c120_715, %c0_716] : memref<384x128xf32, #tpu.memory_space<vmem>>, vector<8x128xf32>
    tpu.vector_store %arg5[%c120_715, %c0_716], %654 {strides = array<i32>} : memref<384x128xf32, #tpu.memory_space<vmem>>, vector<8x128xf32>,
    %c3_i32_717 = arith.constant 3 : i32
    %656 = tpu.dynamic_rotate %623 by %c3_i32_717 dim 1 : vector<8x128xf32>, i32 -> vector<8x128xf32>
    %c128_718 = arith.constant 128 : index
    %c0_719 = arith.constant 0 : index
    %657 = vector.load %arg5[%c128_718, %c0_719] : memref<384x128xf32, #tpu.memory_space<vmem>>, vector<8x128xf32>
    tpu.vector_store %arg5[%c128_718, %c0_719], %656 {strides = array<i32>} : memref<384x128xf32, #tpu.memory_space<vmem>>, vector<8x128xf32>,
    %c2_i32_720 = arith.constant 2 : i32
    %658 = tpu.dynamic_rotate %623 by %c2_i32_720 dim 1 : vector<8x128xf32>, i32 -> vector<8x128xf32>
    %c136_721 = arith.constant 136 : index
    %c0_722 = arith.constant 0 : index
    %659 = vector.load %arg5[%c136_721, %c0_722] : memref<384x128xf32, #tpu.memory_space<vmem>>, vector<8x128xf32>
    tpu.vector_store %arg5[%c136_721, %c0_722], %658 {strides = array<i32>} : memref<384x128xf32, #tpu.memory_space<vmem>>, vector<8x128xf32>,
    %c1_i32_723 = arith.constant 1 : i32
    %660 = tpu.dynamic_rotate %623 by %c1_i32_723 dim 1 : vector<8x128xf32>, i32 -> vector<8x128xf32>
    %c144_724 = arith.constant 144 : index
    %c0_725 = arith.constant 0 : index
    %661 = vector.load %arg5[%c144_724, %c0_725] : memref<384x128xf32, #tpu.memory_space<vmem>>, vector<8x128xf32>
    tpu.vector_store %arg5[%c144_724, %c0_725], %660 {strides = array<i32>} : memref<384x128xf32, #tpu.memory_space<vmem>>, vector<8x128xf32>,
    %c152_726 = arith.constant 152 : index
    %c0_727 = arith.constant 0 : index
    %662 = vector.load %arg5[%c152_726, %c0_727] : memref<384x128xf32, #tpu.memory_space<vmem>>, vector<8x128xf32>
    tpu.vector_store %arg5[%c152_726, %c0_727], %623 {strides = array<i32>} : memref<384x128xf32, #tpu.memory_space<vmem>>, vector<8x128xf32>,
    %c127_i32_728 = arith.constant 127 : i32
    %663 = tpu.dynamic_rotate %623 by %c127_i32_728 dim 1 : vector<8x128xf32>, i32 -> vector<8x128xf32>
    %c160_729 = arith.constant 160 : index
    %c0_730 = arith.constant 0 : index
    %664 = vector.load %arg5[%c160_729, %c0_730] : memref<384x128xf32, #tpu.memory_space<vmem>>, vector<8x128xf32>
    tpu.vector_store %arg5[%c160_729, %c0_730], %663 {strides = array<i32>} : memref<384x128xf32, #tpu.memory_space<vmem>>, vector<8x128xf32>,
    %c126_i32_731 = arith.constant 126 : i32
    %665 = tpu.dynamic_rotate %623 by %c126_i32_731 dim 1 : vector<8x128xf32>, i32 -> vector<8x128xf32>
    %c168_732 = arith.constant 168 : index
    %c0_733 = arith.constant 0 : index
    %666 = vector.load %arg5[%c168_732, %c0_733] : memref<384x128xf32, #tpu.memory_space<vmem>>, vector<8x128xf32>
    tpu.vector_store %arg5[%c168_732, %c0_733], %665 {strides = array<i32>} : memref<384x128xf32, #tpu.memory_space<vmem>>, vector<8x128xf32>,
    %c125_i32_734 = arith.constant 125 : i32
    %667 = tpu.dynamic_rotate %623 by %c125_i32_734 dim 1 : vector<8x128xf32>, i32 -> vector<8x128xf32>
    %c176_735 = arith.constant 176 : index
    %c0_736 = arith.constant 0 : index
    %668 = vector.load %arg5[%c176_735, %c0_736] : memref<384x128xf32, #tpu.memory_space<vmem>>, vector<8x128xf32>
    tpu.vector_store %arg5[%c176_735, %c0_736], %667 {strides = array<i32>} : memref<384x128xf32, #tpu.memory_space<vmem>>, vector<8x128xf32>,
    %c124_i32_737 = arith.constant 124 : i32
    %669 = tpu.dynamic_rotate %623 by %c124_i32_737 dim 1 : vector<8x128xf32>, i32 -> vector<8x128xf32>
    %c184_738 = arith.constant 184 : index
    %c0_739 = arith.constant 0 : index
    %670 = vector.load %arg5[%c184_738, %c0_739] : memref<384x128xf32, #tpu.memory_space<vmem>>, vector<8x128xf32>
    tpu.vector_store %arg5[%c184_738, %c0_739], %669 {strides = array<i32>} : memref<384x128xf32, #tpu.memory_space<vmem>>, vector<8x128xf32>,
    %c123_i32_740 = arith.constant 123 : i32
    %671 = tpu.dynamic_rotate %623 by %c123_i32_740 dim 1 : vector<8x128xf32>, i32 -> vector<8x128xf32>
    %c192_741 = arith.constant 192 : index
    %c0_742 = arith.constant 0 : index
    %672 = vector.load %arg5[%c192_741, %c0_742] : memref<384x128xf32, #tpu.memory_space<vmem>>, vector<8x128xf32>
    tpu.vector_store %arg5[%c192_741, %c0_742], %671 {strides = array<i32>} : memref<384x128xf32, #tpu.memory_space<vmem>>, vector<8x128xf32>,
    %c122_i32_743 = arith.constant 122 : i32
    %673 = tpu.dynamic_rotate %623 by %c122_i32_743 dim 1 : vector<8x128xf32>, i32 -> vector<8x128xf32>
    %c200_744 = arith.constant 200 : index
    %c0_745 = arith.constant 0 : index
    %674 = vector.load %arg5[%c200_744, %c0_745] : memref<384x128xf32, #tpu.memory_space<vmem>>, vector<8x128xf32>
    tpu.vector_store %arg5[%c200_744, %c0_745], %673 {strides = array<i32>} : memref<384x128xf32, #tpu.memory_space<vmem>>, vector<8x128xf32>,
    %c121_i32_746 = arith.constant 121 : i32
    %675 = tpu.dynamic_rotate %623 by %c121_i32_746 dim 1 : vector<8x128xf32>, i32 -> vector<8x128xf32>
    %c208_747 = arith.constant 208 : index
    %c0_748 = arith.constant 0 : index
    %676 = vector.load %arg5[%c208_747, %c0_748] : memref<384x128xf32, #tpu.memory_space<vmem>>, vector<8x128xf32>
    tpu.vector_store %arg5[%c208_747, %c0_748], %675 {strides = array<i32>} : memref<384x128xf32, #tpu.memory_space<vmem>>, vector<8x128xf32>,
    %c120_i32_749 = arith.constant 120 : i32
    %677 = tpu.dynamic_rotate %623 by %c120_i32_749 dim 1 : vector<8x128xf32>, i32 -> vector<8x128xf32>
    %c216_750 = arith.constant 216 : index
    %c0_751 = arith.constant 0 : index
    %678 = vector.load %arg5[%c216_750, %c0_751] : memref<384x128xf32, #tpu.memory_space<vmem>>, vector<8x128xf32>
    tpu.vector_store %arg5[%c216_750, %c0_751], %677 {strides = array<i32>} : memref<384x128xf32, #tpu.memory_space<vmem>>, vector<8x128xf32>,
    %c119_i32_752 = arith.constant 119 : i32
    %679 = tpu.dynamic_rotate %623 by %c119_i32_752 dim 1 : vector<8x128xf32>, i32 -> vector<8x128xf32>
    %c224_753 = arith.constant 224 : index
    %c0_754 = arith.constant 0 : index
    %680 = vector.load %arg5[%c224_753, %c0_754] : memref<384x128xf32, #tpu.memory_space<vmem>>, vector<8x128xf32>
    tpu.vector_store %arg5[%c224_753, %c0_754], %679 {strides = array<i32>} : memref<384x128xf32, #tpu.memory_space<vmem>>, vector<8x128xf32>,
    %c118_i32_755 = arith.constant 118 : i32
    %681 = tpu.dynamic_rotate %623 by %c118_i32_755 dim 1 : vector<8x128xf32>, i32 -> vector<8x128xf32>
    %c232_756 = arith.constant 232 : index
    %c0_757 = arith.constant 0 : index
    %682 = vector.load %arg5[%c232_756, %c0_757] : memref<384x128xf32, #tpu.memory_space<vmem>>, vector<8x128xf32>
    tpu.vector_store %arg5[%c232_756, %c0_757], %681 {strides = array<i32>} : memref<384x128xf32, #tpu.memory_space<vmem>>, vector<8x128xf32>,
    %c117_i32_758 = arith.constant 117 : i32
    %683 = tpu.dynamic_rotate %623 by %c117_i32_758 dim 1 : vector<8x128xf32>, i32 -> vector<8x128xf32>
    %c240_759 = arith.constant 240 : index
    %c0_760 = arith.constant 0 : index
    %684 = vector.load %arg5[%c240_759, %c0_760] : memref<384x128xf32, #tpu.memory_space<vmem>>, vector<8x128xf32>
    tpu.vector_store %arg5[%c240_759, %c0_760], %683 {strides = array<i32>} : memref<384x128xf32, #tpu.memory_space<vmem>>, vector<8x128xf32>,
    %c116_i32_761 = arith.constant 116 : i32
    %685 = tpu.dynamic_rotate %623 by %c116_i32_761 dim 1 : vector<8x128xf32>, i32 -> vector<8x128xf32>
    %c248_762 = arith.constant 248 : index
    %c0_763 = arith.constant 0 : index
    %686 = vector.load %arg5[%c248_762, %c0_763] : memref<384x128xf32, #tpu.memory_space<vmem>>, vector<8x128xf32>
    tpu.vector_store %arg5[%c248_762, %c0_763], %685 {strides = array<i32>} : memref<384x128xf32, #tpu.memory_space<vmem>>, vector<8x128xf32>,
    %c115_i32_764 = arith.constant 115 : i32
    %687 = tpu.dynamic_rotate %623 by %c115_i32_764 dim 1 : vector<8x128xf32>, i32 -> vector<8x128xf32>
    %c256_765 = arith.constant 256 : index
    %c0_766 = arith.constant 0 : index
    %688 = vector.load %arg5[%c256_765, %c0_766] : memref<384x128xf32, #tpu.memory_space<vmem>>, vector<8x128xf32>
    tpu.vector_store %arg5[%c256_765, %c0_766], %687 {strides = array<i32>} : memref<384x128xf32, #tpu.memory_space<vmem>>, vector<8x128xf32>,
    %c114_i32_767 = arith.constant 114 : i32
    %689 = tpu.dynamic_rotate %623 by %c114_i32_767 dim 1 : vector<8x128xf32>, i32 -> vector<8x128xf32>
    %c264_768 = arith.constant 264 : index
    %c0_769 = arith.constant 0 : index
    %690 = vector.load %arg5[%c264_768, %c0_769] : memref<384x128xf32, #tpu.memory_space<vmem>>, vector<8x128xf32>
    tpu.vector_store %arg5[%c264_768, %c0_769], %689 {strides = array<i32>} : memref<384x128xf32, #tpu.memory_space<vmem>>, vector<8x128xf32>,
    %c113_i32_770 = arith.constant 113 : i32
    %691 = tpu.dynamic_rotate %623 by %c113_i32_770 dim 1 : vector<8x128xf32>, i32 -> vector<8x128xf32>
    %c272_771 = arith.constant 272 : index
    %c0_772 = arith.constant 0 : index
    %692 = vector.load %arg5[%c272_771, %c0_772] : memref<384x128xf32, #tpu.memory_space<vmem>>, vector<8x128xf32>
    tpu.vector_store %arg5[%c272_771, %c0_772], %691 {strides = array<i32>} : memref<384x128xf32, #tpu.memory_space<vmem>>, vector<8x128xf32>,
    %c112_i32_773 = arith.constant 112 : i32
    %693 = tpu.dynamic_rotate %623 by %c112_i32_773 dim 1 : vector<8x128xf32>, i32 -> vector<8x128xf32>
    %c280_774 = arith.constant 280 : index
    %c0_775 = arith.constant 0 : index
    %694 = vector.load %arg5[%c280_774, %c0_775] : memref<384x128xf32, #tpu.memory_space<vmem>>, vector<8x128xf32>
    tpu.vector_store %arg5[%c280_774, %c0_775], %693 {strides = array<i32>} : memref<384x128xf32, #tpu.memory_space<vmem>>, vector<8x128xf32>,
    %c111_i32_776 = arith.constant 111 : i32
    %695 = tpu.dynamic_rotate %623 by %c111_i32_776 dim 1 : vector<8x128xf32>, i32 -> vector<8x128xf32>
    %c288_777 = arith.constant 288 : index
    %c0_778 = arith.constant 0 : index
    %696 = vector.load %arg5[%c288_777, %c0_778] : memref<384x128xf32, #tpu.memory_space<vmem>>, vector<8x128xf32>
    tpu.vector_store %arg5[%c288_777, %c0_778], %695 {strides = array<i32>} : memref<384x128xf32, #tpu.memory_space<vmem>>, vector<8x128xf32>,
    %c110_i32_779 = arith.constant 110 : i32
    %697 = tpu.dynamic_rotate %623 by %c110_i32_779 dim 1 : vector<8x128xf32>, i32 -> vector<8x128xf32>
    %c296_780 = arith.constant 296 : index
    %c0_781 = arith.constant 0 : index
    %698 = vector.load %arg5[%c296_780, %c0_781] : memref<384x128xf32, #tpu.memory_space<vmem>>, vector<8x128xf32>
    tpu.vector_store %arg5[%c296_780, %c0_781], %697 {strides = array<i32>} : memref<384x128xf32, #tpu.memory_space<vmem>>, vector<8x128xf32>,
    %c109_i32_782 = arith.constant 109 : i32
    %699 = tpu.dynamic_rotate %623 by %c109_i32_782 dim 1 : vector<8x128xf32>, i32 -> vector<8x128xf32>
    %c304_783 = arith.constant 304 : index
    %c0_784 = arith.constant 0 : index
    %700 = vector.load %arg5[%c304_783, %c0_784] : memref<384x128xf32, #tpu.memory_space<vmem>>, vector<8x128xf32>
    tpu.vector_store %arg5[%c304_783, %c0_784], %699 {strides = array<i32>} : memref<384x128xf32, #tpu.memory_space<vmem>>, vector<8x128xf32>,
    %cst_785 = arith.constant -3.000000e+38 : f32
    %701 = vector.broadcast %cst_785 : f32 to vector<32x128xf32>
    %702 = arith.select %6, %621, %701 : vector<32x128xi1>, vector<32x128xf32>
    %c1_i32_786 = arith.constant 1 : i32
    %703 = tpu.dynamic_rotate %702 by %c1_i32_786 dim 1 : vector<32x128xf32>, i32 -> vector<32x128xf32>
    %704 = arith.maximumf %703, %702 : vector<32x128xf32>
    %c127_i32_787 = arith.constant 127 : i32
    %705 = tpu.dynamic_rotate %702 by %c127_i32_787 dim 1 : vector<32x128xf32>, i32 -> vector<32x128xf32>
    %706 = arith.maximumf %704, %705 : vector<32x128xf32>
    %cst_788 = arith.constant 0.000000e+00 : f32
    %707 = vector.broadcast %cst_788 : f32 to vector<32x128xf32>
    %708 = arith.select %6, %706, %707 : vector<32x128xi1>, vector<32x128xf32>
    %c312_789 = arith.constant 312 : index
    %c0_790 = arith.constant 0 : index
    %709 = vector.load %arg5[%c312_789, %c0_790] : memref<384x128xf32, #tpu.memory_space<vmem>>, vector<32x128xf32>
    tpu.vector_store %arg5[%c312_789, %c0_790], %708 {strides = array<i32>} : memref<384x128xf32, #tpu.memory_space<vmem>>, vector<32x128xf32>,
    %cst_791 = arith.constant 0.000000e+00 : f32
    %710 = vector.broadcast %cst_791 : f32 to vector<32x128xf32>
    %c160_792 = arith.constant 160 : index
    %c0_793 = arith.constant 0 : index
    %711 = vector.load %arg2[%c160_792, %c0_793] : memref<192x384xf32, #tpu.memory_space<vmem>>, vector<32x128xf32>
    %c0_794 = arith.constant 0 : index
    %c0_795 = arith.constant 0 : index
    %712 = vector.load %arg5[%c0_794, %c0_795] : memref<384x128xf32, #tpu.memory_space<vmem>>, vector<128x128xf32>
    %cst_796 = arith.constant dense<0.000000e+00> : vector<32x128xf32>
    %713 = tpu.matmul %711, %712, %cst_796 {dimension_numbers = #tpu.dot_dimension_numbers<[1], [0], [0], [1], [0, 0, 1, 1], [], []>} : vector<32x128xf32>, vector<128x128xf32>, vector<32x128xf32> -> vector<32x128xf32>
    %714 = arith.addf %710, %713 : vector<32x128xf32>
    %c160_797 = arith.constant 160 : index
    %c128_798 = arith.constant 128 : index
    %715 = vector.load %arg2[%c160_797, %c128_798] : memref<192x384xf32, #tpu.memory_space<vmem>>, vector<32x128xf32>
    %c128_799 = arith.constant 128 : index
    %c0_800 = arith.constant 0 : index
    %716 = vector.load %arg5[%c128_799, %c0_800] : memref<384x128xf32, #tpu.memory_space<vmem>>, vector<128x128xf32>
    %cst_801 = arith.constant dense<0.000000e+00> : vector<32x128xf32>
    %717 = tpu.matmul %715, %716, %cst_801 {dimension_numbers = #tpu.dot_dimension_numbers<[1], [0], [0], [1], [0, 0, 1, 1], [], []>} : vector<32x128xf32>, vector<128x128xf32>, vector<32x128xf32> -> vector<32x128xf32>
    %718 = arith.addf %714, %717 : vector<32x128xf32>
    %c160_802 = arith.constant 160 : index
    %c256_803 = arith.constant 256 : index
    %719 = vector.load %arg2[%c160_802, %c256_803] : memref<192x384xf32, #tpu.memory_space<vmem>>, vector<32x128xf32>
    %c256_804 = arith.constant 256 : index
    %c0_805 = arith.constant 0 : index
    %720 = vector.load %arg5[%c256_804, %c0_805] : memref<384x128xf32, #tpu.memory_space<vmem>>, vector<128x128xf32>
    %cst_806 = arith.constant dense<0.000000e+00> : vector<32x128xf32>
    %721 = tpu.matmul %719, %720, %cst_806 {dimension_numbers = #tpu.dot_dimension_numbers<[1], [0], [0], [1], [0, 0, 1, 1], [], []>} : vector<32x128xf32>, vector<128x128xf32>, vector<32x128xf32> -> vector<32x128xf32>
    %722 = arith.addf %718, %721 : vector<32x128xf32>
    %cst_807 = arith.constant 0.000000e+00 : f32
    %723 = vector.broadcast %cst_807 : f32 to vector<32x128xf32>
    %724 = arith.maximumf %722, %723 : vector<32x128xf32>
    %c48_808 = arith.constant 48 : index
    %c8_809 = arith.constant 8 : index
    %725 = vector.load %arg3[%c48_808, %c8_809] : memref<80x32xf32, #tpu.memory_space<vmem>>, vector<32x1xf32>
    %c48_810 = arith.constant 48 : index
    %c9 = arith.constant 9 : index
    %726 = vector.load %arg3[%c48_810, %c9] : memref<80x32xf32, #tpu.memory_space<vmem>>, vector<32x1xf32>
    %727 = vector.broadcast %725 : vector<32x1xf32> to vector<32x128xf32>
    %728 = arith.mulf %411, %727 : vector<32x128xf32>
    %729 = vector.broadcast %726 : vector<32x1xf32> to vector<32x128xf32>
    %730 = arith.addf %728, %729 : vector<32x128xf32>
    %731 = arith.addf %724, %730 : vector<32x128xf32>
    %cst_811 = arith.constant 0.000000e+00 : f32
    %732 = vector.broadcast %cst_811 : f32 to vector<32x128xf32>
    %733 = arith.maximumf %731, %732 : vector<32x128xf32>
    %cst_812 = arith.constant 0.000000e+00 : f32
    %734 = vector.broadcast %cst_812 : f32 to vector<32x128xf32>
    %735 = arith.select %6, %733, %734 : vector<32x128xi1>, vector<32x128xf32>
    %c40_813 = arith.constant 40 : index
    %c0_814 = arith.constant 0 : index
    %736 = vector.load %arg0[%c40_813, %c0_814] : memref<48x128xf32, #tpu.memory_space<vmem>>, vector<8x128xf32>
    %cst_815 = arith.constant dense<0.000000e+00> : vector<8x32xf32>
    %737 = tpu.matmul %736, %735, %cst_815 {dimension_numbers = #tpu.dot_dimension_numbers<[1], [1], [0], [0], [0, 0, 1, 0], [], []>} : vector<8x128xf32>, vector<32x128xf32>, vector<8x32xf32> -> vector<8x32xf32>
    %c168_816 = arith.constant 168 : index
    %c0_817 = arith.constant 0 : index
    %738 = vector.load %arg1[%c168_816, %c0_817] : memref<240x128xf32, #tpu.memory_space<vmem>>, vector<32x128xf32>
    %c200_818 = arith.constant 200 : index
    %c0_819 = arith.constant 0 : index
    %739 = vector.load %arg1[%c200_818, %c0_819] : memref<240x128xf32, #tpu.memory_space<vmem>>, vector<32x128xf32>
    %c232_820 = arith.constant 232 : index
    %c0_821 = arith.constant 0 : index
    %740 = vector.load %arg1[%c232_820, %c0_821] : memref<240x128xf32, #tpu.memory_space<vmem>>, vector<1x128xf32>
    %cst_822 = arith.constant dense<0.000000e+00> : vector<8x128xf32>
    %741 = tpu.matmul %87, %738, %cst_822 {dimension_numbers = #tpu.dot_dimension_numbers<[1], [0], [0], [1], [0, 0, 1, 1], [], []>} : vector<8x32xf32>, vector<32x128xf32>, vector<8x128xf32> -> vector<8x128xf32>
    %cst_823 = arith.constant dense<0.000000e+00> : vector<8x128xf32>
    %742 = tpu.matmul %737, %739, %cst_823 {dimension_numbers = #tpu.dot_dimension_numbers<[1], [0], [0], [1], [0, 0, 1, 1], [], []>} : vector<8x32xf32>, vector<32x128xf32>, vector<8x128xf32> -> vector<8x128xf32>
    %743 = arith.addf %741, %742 : vector<8x128xf32>
    %744 = vector.broadcast %740 : vector<1x128xf32> to vector<8x128xf32>
    %745 = arith.addf %743, %744 : vector<8x128xf32>
    %c0_824 = arith.constant 0 : index
    %c0_825 = arith.constant 0 : index
    %746 = vector.load %arg4[%c0_824, %c0_825] : memref<8x128xf32, #tpu.memory_space<vmem>>, vector<8x128xf32>
    tpu.vector_store %arg4[%c0_824, %c0_825], %745 {strides = array<i32>} : memref<8x128xf32, #tpu.memory_space<vmem>>, vector<8x128xf32>,
    return
  }
}

</mosaic_0001>

<bundles_post_ra>
// kernel: forward.1
= control target key start
LH: loop header
LB: loop body
LE: loop exit
PB: predicated region body
PF: predicated region fallthrough
CT: control target
= control target key end

     0   :  { %v5726_v2 = vmov 0.0   ;;  %vm5727_vm0 = vmmov 0   ;;  %s7345_s11 = smov 32   ;;  %s7344_s12 = smov 64   ;;  %vm139_vm1 = vcmask 261120   ;;  %vm549_vm4 = vcmask 64512   ;;  %s7339_s1 = inlined_call_operand.vmem [shape: f32[240,128], index: 1, kind: input, shape index: {}]   ;;  %s7340_s0 = inlined_call_operand.vmem [shape: f32[48,128], index: 0, kind: input, shape index: {}]   ;;  %s7341_s3 = inlined_call_operand.vmem [shape: f32[80,32], index: 3, kind: input, shape index: {}]   ;;  %s7342_s2 = inlined_call_operand.vmem [shape: f32[192,384], index: 2, kind: input, shape index: {}]   ;;  %s7343_s4 = inlined_call_operand.vmem [shape: f32[8,128], index: 4, kind: output, shape index: {}]  }
   0x1   :  { %7447 = sst [smem:[#allocation3_spill]] %s7339_s1  ;;  %v44_v0 = vld [vmem:[%s7339_s1 + $0x78] sm:$0xff]  ;;  %v43_v1 = vld [vmem:[%s7339_s1 + $0x70] sm:$0xff]  ;;  %4767 = vmatprep.subr.mxu1 %v5726_v2  ;;  %541 = vst [vmem:[#allocation2 + $0x8] sm:$0xff] %v5726_v2  ;;  %542 = vst [vmem:[#allocation2 + $0x120] sm:$0xff] %v5726_v2  ;;  %4775 = vmatprep.mubr.msk.f32.mxu1 %vm5727_vm0, %v5726_v2  ;;  %s7421_s19 = smov 1  }
   0x2   :  { %7448 = sst [smem:[#allocation4_spill]] %s7340_s0  ;;  %4729 = vmatprep.subr.mxu0 %v44_v0  ;;  %v42_v3 = vld [vmem:[%s7339_s1 + $0x68] sm:$0xff]  ;;  %v41_v4 = vld [vmem:[%s7339_s1 + $0x60] sm:$0xff]  ;;  %v5816_v5 = vld [vmem:[%s7339_s1 + $0x98] sm:$0xff]  ;;  %s7419_s22 = smov 127  }
   0x3   :  { %7449 = sst [smem:[#allocation5_spill]] %s7341_s3  ;;  %4730 = vmatpush3.msra.mxu0 %v44_v0  ;;  %4768 = vmatpush3.msra.mxu1 %v5816_v5  ;;  %v5822_v6 = vld [vmem:[%s7339_s1 + $0x90] sm:$0xff]  ;;  %v40_v7 = vld [vmem:[%s7339_s1 + $0x58] sm:$0xff]  ;;  %v5831_v8 = vld [vmem:[%s7340_s0 + $0x7] sm:$0x1]  ;;  %s7417_s23 = smov 117  }
   0x4   :  { %7450 = sst [smem:[#allocation6_spill]] %s7343_s4  ;;  %4731 = vmatprep.subr.mxu0 %v43_v1  ;;  %4769 = vmatprep.subr.mxu1 %v5726_v2  ;;  %v25_v9 = vld [vmem:[%s7340_s0 + $0x8] sm:$0xff]  ;;  %546 = vst [vmem:[#allocation2 + $0x8] sm:$0x1] %v5831_v8  ;;  %v39_v11 = vld [vmem:[%s7339_s1 + $0x50] sm:$0xff]  ;;  %v5850_v12 = vld [vmem:[%s7339_s1 + $0x80] sm:$0xff] }
   0x5   :  { %4732 = vmatpush3.msra.mxu0 %v43_v1  ;;  %4770 = vmatpush3.msra.mxu1 %v5822_v6  ;;  %v5841_v10 = vld [vmem:[%s7339_s1 + $0x88] sm:$0xff]  ;;  %v37_v14 = vld [vmem:[%s7339_s1 + $0x40] sm:$0xff]  ;;  %v36_v15 = vld [vmem:[%s7339_s1 + $0x38] sm:$0xff]  ;;  %vm18_vm2 = vcmp.ne.f32.partialorder %v5831_v8, 0.0  ;;  %s7415_s24 = smov 116   ;;  %s7413_s25 = smov 119  }
   0x6   :  { %4733 = vmatprep.subr.mxu0 %v42_v3  ;;  %4771 = vmatprep.subr.mxu1 %v5726_v2  ;;  %v38_v13 = vld [vmem:[%s7339_s1 + $0x48] sm:$0xff]  ;;  %v35_v16 = vld [vmem:[%s7339_s1 + $0x30] sm:$0xff]  ;;  %v33_v18 = vld [vmem:[%s7339_s1 + $0x20] sm:$0xff]  ;;  %s7411_s26 = smov 118   ;;  %s7409_s27 = smov 121  }
   0x7   :  { %4734 = vmatpush3.msra.mxu0 %v42_v3  ;;  %4761 = vmatprep.mubr.f32.mxu0 %v25_v9  ;;  %v34_v17 = vld [vmem:[%s7339_s1 + $0x28] sm:$0xff]  ;;  %v32_v19 = vld [vmem:[%s7339_s1 + $0x18] sm:$0xff]  ;;  %v31_v20 = vld [vmem:[%s7339_s1 + $0x10] sm:$0xff]  ;;  %s7407_s28 = smov 120   ;;  %s7405_s29 = smov 123  }
   0x8   :  { %4735 = vmatprep.subr.mxu0 %v41_v4  ;;  %4772 = vmatpush3.msra.mxu1 %v5841_v10  ;;  %v30_v21 = vld [vmem:[%s7339_s1 + $0x8] sm:$0xff]  ;;  %v29_v22 = vld [vmem:[%s7339_s1] sm:$0xff]  ;;  %v26_v23 = vld [vmem:[%s7340_s0 + $0x10] sm:$0xff]  ;;  %s7403_s30 = smov 122   ;;  %s7401_s5 = smov 125  }
   0x9   :  { %4736 = vmatpush3.msra.mxu0 %v41_v4  ;;  %4773 = vmatprep.subr.mxu1 %v5726_v2  ;;  %v5903_v27 = vld [vmem:[%s7339_s1 + $0xa0] ss:$0 sm:$0xff]  ;;  %v27_v59 = vld [vmem:[%s7340_s0 + $0x18] sm:$0xff]  ;;  %s7399_s6 = smov 124   ;;  %s7397_s9 = smov 126  }
   0xa   :  { %4737 = vmatprep.subr.mxu0 %v40_v7  ;;  %4774 = vmatpush3.msra.mxu1 %v5850_v12  ;;  %v28_v60 = vld [vmem:[%s7340_s0 + $0x20] sm:$0xff]  ;;  %s7391_s10 = smov 2   ;;  %s7387_s13 = smov 3  }
   0xb   :  { %4738 = vmatpush3.msra.mxu0 %v40_v7  ;;  %4776 = vmatmul.mubr.f32.vlgmr.msra.gmra.mxu1 %v5726_v2  ;;  %s7395_s14 = smov 4   ;;  %s7389_s15 = smov 6  }
   0xc   :  { %4739 = vmatprep.subr.mxu0 %v39_v11  ;;  %4778 = vmatprep.subr.mxu1 %v5726_v2  ;;  %s7393_s16 = smov 5   ;;  %s7349_s17 = smov 8  }
   0xd   :  { %4740 = vmatpush3.msra.mxu0 %v39_v11  ;;  %4779 = vmatpush3.msra.mxu1 %v5816_v5  ;;  %s7361_s18 = smov 7   ;;  %s7347_s20 = smov 10  }
   0xe   :  { %4741 = vmatprep.subr.mxu0 %v38_v13  ;;  %4780 = vmatprep.subr.mxu1 %v5726_v2  ;;  %s7385_s21 = smov 9   ;;  %s7351_s7 = smov 11  }
   0xf   :  { %4742 = vmatpush3.msra.mxu0 %v38_v13  ;;  %4781 = vmatpush3.msra.mxu1 %v5822_v6  ;;  %s7353_s8 = smov 13   ;;  %s7477_s4 = smov 121  }
  0x10   :  { %4743 = vmatprep.subr.mxu0 %v37_v14  ;;  %4782 = vmatprep.subr.mxu1 %v5726_v2  ;;  %s7478_s1 = smov 120  }
  0x11   :  { %4744 = vmatpush3.msra.mxu0 %v37_v14  ;;  %4783 = vmatpush3.msra.mxu1 %v5841_v10 }
  0x12   :  { %4745 = vmatprep.subr.mxu0 %v36_v15  ;;  %4784 = vmatprep.subr.mxu1 %v5726_v2 }
  0x13   :  { %4746 = vmatpush3.msra.mxu0 %v36_v15  ;;  %4785 = vmatpush3.msra.mxu1 %v5850_v12 }
  0x14   :  { %4747 = vmatprep.subr.mxu0 %v35_v16  ;;  %4786 = vmatprep.mubr.msk.f32.mxu1 %vm5727_vm0, %v5726_v2 }
  0x15   :  { %4748 = vmatpush3.msra.mxu0 %v35_v16  ;;  %4789 = vmatprep.subr.mxu1 %v5726_v2 }
  0x16   :  { %4749 = vmatprep.subr.mxu0 %v34_v17 }
  0x17   :  { %4750 = vmatpush3.msra.mxu0 %v34_v17 }
  0x18   :  { %4751 = vmatprep.subr.mxu0 %v33_v18 }
  0x19   :  { %4752 = vmatpush3.msra.mxu0 %v33_v18 }
  0x1a   :  { %4753 = vmatprep.subr.mxu0 %v32_v19 }
  0x1b   :  { %4754 = vmatpush3.msra.mxu0 %v32_v19 }
  0x1c   :  { %4755 = vmatprep.subr.mxu0 %v31_v20 }
  0x1d   :  { %4756 = vmatpush3.msra.mxu0 %v31_v20  ;;  %v20_v20 = vlaneseq }
  0x1e   :  { %4757 = vmatprep.subr.mxu0 %v30_v21 }
  0x1f   :  { %4758 = vmatpush3.msra.mxu0 %v30_v21  ;;  %v21_v21 = vshrl.u32 %v20_v20, 7 }
  0x20   :  { %4759 = vmatprep.subr.mxu0 %v29_v22 }
  0x21   :  { %4760 = vmatpush3.msra.mxu0 %v29_v22  ;;  %v22_v22 = vsub.s32 0, %v21_v21 }
  0x22   :  { %4762 = vmatmul.mubr.f32.vlgmr.msra.gmra.mxu0 %v26_v23  ;;  %v5730_v23 = vmov 0  }
  0x23   :  { %4764 = vmatprep.mubr.f32.mxu0 %v27_v59 }
  0x26   :  { %4765 = vmatmul.mubr.f32.gmra.mxu0 %v28_v60 }
  0xcb   :  { %v209_v24 = vpop.f32.mrf.mxu1 }
  0xcd   :  { %v4777_v25 = vpop.f32.mrf.mxu1 }
  0xe2   :  { %v4763_v26 = vpop.f32.mrf.mxu0 }
  0xe3   :  { %v126_v45 = vadd.f32 %v4763_v26, %v5903_v27  ;;  %v547_v26 = vld [vmem:[%s7340_s0] sm:$0xff]  ;;  %s7482_s0 = smov 124  }
  0xe4   :  { %v120_v28 = vpop.f32.mrf.mxu0 }
  0xe5   :  { %v121_v29 = vadd.f32 %v5903_v27, %v120_v28 }
  0xe6   :  { %v4766_v1 = vpop.f32.mrf.mxu0 }
  0xe7   :  { %v213_v30 = vadd.f32 %v209_v24, %v121_v29  ;;  %v19_v24 = vsel %vm18_vm2, 1, %v5730_v23 }
  0xe8   :  { %v130_v3 = vpop.f32.mrf.mxu0  ;;  %v5951_v25 = vrot.slane %v19_v24, %v22_v22  ;;  %v748_v24 = vld [vmem:[%s7342_s2 + $0x18] sm:$0xff] }
  0xe9   :  { %5648 = vtanh.f32 %v213_v30  ;;  %v4238_v32 = vmul.f32 -1.442695, %v213_v30  ;;  %v131_v4 = vadd.f32 %v5903_v27, %v130_v3 }
  0xea   :  { %vm24_vm3 = vcmp.eq.s32.totalorder %v5951_v25, 1 }
  0xeb   :  { %5650 = vpow2.f32 %v4238_v32  ;;  %v5959_v28 = vsel %vm24_vm3, %v547_v26, -3e+38  ;;  %v136_v32 = vadd.f32 %v4766_v1, %v5903_v27  ;;  %v767_v27 = vld [vmem:[%s7342_s2 + $0x8] sm:$0xff] }
  0xec   :  { %4848 = vmatprep.mubr.f32.mxu0 %v767_v27 }
  0xf6   :  { %v5649_v31 = vpop.eup %5648 }
  0xf7   :  { %223 = vrot.lane.b32.xlu0 %v5649_v31, %s7345_s11  ;;  %v548_v31 = vld [vmem:[%s7341_s3] sm:$0xff] }
  0xf8   :  { %v5651_v33 = vpop.eup %5650 }
  0xf9   :  { %v217_v34 = vadd.f32 1.0, %v5651_v33 }
  0xfb   :  { %5652 = vrcp.f32 %v217_v34 }
 0x108   :  { %v5653_v35 = vpop.eup %5652 }
 0x109   :  { %v221_v38 = vmul.f32 0.0, %v5653_v35 }
 0x169   :  { %v224_v36 = vpop.permute.xlu0 %223 }
 0x16a   :  { %v226_v37 = vmul.f32 %v5653_v35, %v224_v36 }
 0x16c   :  { %228 = vrot.lane.b32.xlu0 %v226_v37, %s7345_s11 }
 0x1de   :  { %v229_v39 = vpop.permute.xlu0 %228 }
 0x1df   :  { %v231_v40 = vadd.f32 %v229_v39, %v221_v38  ;;  %v747_v38 = vld [vmem:[%s7342_s2] sm:$0xff] }
 0x1e1   :  { %5654 = vtanh.f32 %v231_v40 }
 0x1ee   :  { %v5655_v41 = vpop.eup %5654 }
 0x1ef   :  { %234 = vrot.lane.b32.xlu1 %v5655_v41, %s7345_s11 }
 0x261   :  { %v235_v42 = vpop.permute.xlu1 %234 }
 0x262   :  { %v237_v43 = vmul.f32 %v5653_v35, %v235_v42 }
 0x264   :  { %239 = vrot.lane.b32.xlu1 %v237_v43, %s7344_s12 }
 0x2d6   :  { %v240_v44 = vpop.permute.xlu1 %239 }
 0x2d7   :  { %4787 = vmatmul.mubr.msk.f32.vlgmr.msra.gmra.mxu1 %vm139_vm1, %v240_v44 }
 0x2d8   :  { %4790 = vmatpush3.msra.mxu1 %v5816_v5  ;;  %4797 = vmatprep.mubr.msk.f32.mxu1 %vm5727_vm0, %v5726_v2 }
 0x2d9   :  { %4791 = vmatprep.subr.mxu1 %v5726_v2 }
 0x2da   :  { %4792 = vmatpush3.msra.mxu1 %v5822_v6 }
 0x2db   :  { %4793 = vmatprep.subr.mxu1 %v5726_v2 }
 0x2dc   :  { %4794 = vmatpush3.msra.mxu1 %v5841_v10 }
 0x2dd   :  { %4795 = vmatprep.subr.mxu1 %v5726_v2 }
 0x2de   :  { %4796 = vmatpush3.msra.mxu1 %v5850_v12 }
 0x2df   :  { %4800 = vmatprep.subr.mxu1 %v5726_v2 }
 0x397   :  { %v309_v46 = vpop.f32.mrf.mxu1 }
 0x398   :  { %v313_v47 = vadd.f32 %v309_v46, %v126_v45 }
 0x399   :  { %v4788_v48 = vpop.f32.mrf.mxu1 }
 0x39a   :  { %5656 = vtanh.f32 %v313_v47  ;;  %v4240_v50 = vmul.f32 -1.442695, %v313_v47 }
 0x39c   :  { %5658 = vpow2.f32 %v4240_v50 }
 0x3a7   :  { %v5657_v49 = vpop.eup %5656 }
 0x3a8   :  { %323 = vrot.lane.b32.xlu0 %v5657_v49, %s7345_s11 }
 0x3a9   :  { %v5659_v51 = vpop.eup %5658 }
 0x3aa   :  { %v317_v52 = vadd.f32 1.0, %v5659_v51 }
 0x3ac   :  { %5660 = vrcp.f32 %v317_v52 }
 0x3b9   :  { %v5661_v53 = vpop.eup %5660 }
 0x3ba   :  { %v321_v56 = vmul.f32 %v5661_v53, %v231_v40 }
 0x41a   :  { %v324_v54 = vpop.permute.xlu0 %323 }
 0x41b   :  { %v326_v55 = vmul.f32 %v5661_v53, %v324_v54 }
 0x41d   :  { %328 = vrot.lane.b32.xlu1 %v326_v55, %s7345_s11 }
 0x48f   :  { %v329_v57 = vpop.permute.xlu1 %328 }
 0x490   :  { %v331_v58 = vadd.f32 %v329_v57, %v321_v56  ;;  %v768_v57 = vld [vmem:[%s7342_s2 + $0x20] sm:$0xff] }
 0x492   :  { %5662 = vtanh.f32 %v331_v58 }
 0x49f   :  { %v5663_v61 = vpop.eup %5662 }
 0x4a0   :  { %334 = vrot.lane.b32.xlu0 %v5663_v61, %s7345_s11 }
 0x512   :  { %v335_v62 = vpop.permute.xlu0 %334 }
 0x513   :  { %v337_v63 = vmul.f32 %v5661_v53, %v335_v62  ;;  %v6075_v62 = vld [vmem:[#allocation2 + $0x8] sm:$0xff] }
 0x515   :  { %339 = vrot.lane.b32.xlu1 %v337_v63, %s7344_s12 }
 0x587   :  { %v340_v0 = vpop.permute.xlu1 %339 }
 0x588   :  { %4798 = vmatmul.mubr.msk.f32.vlgmr.msra.gmra.mxu1 %vm139_vm1, %v340_v0 }
 0x589   :  { %4801 = vmatpush3.msra.mxu1 %v5816_v5  ;;  %4808 = vmatprep.mubr.msk.f32.mxu1 %vm5727_vm0, %v5726_v2 }
 0x58a   :  { %4802 = vmatprep.subr.mxu1 %v5726_v2 }
 0x58b   :  { %4803 = vmatpush3.msra.mxu1 %v5822_v6 }
 0x58c   :  { %4804 = vmatprep.subr.mxu1 %v5726_v2 }
 0x58d   :  { %4805 = vmatpush3.msra.mxu1 %v5841_v10 }
 0x58e   :  { %4806 = vmatprep.subr.mxu1 %v5726_v2 }
 0x58f   :  { %4807 = vmatpush3.msra.mxu1 %v5850_v12 }
 0x590   :  { %4811 = vmatprep.subr.mxu1 %v5726_v2 }
 0x648   :  { %v409_v5 = vpop.f32.mrf.mxu1 }
 0x649   :  { %v413_v7 = vadd.f32 %v409_v5, %v131_v4  ;;  %v769_v5 = vld [vmem:[%s7342_s2 + $0x38] sm:$0xff] }
 0x64a   :  { %v4799_v9 = vpop.f32.mrf.mxu1 }
 0x64b   :  { %5664 = vtanh.f32 %v413_v7  ;;  %v4242_v6 = vmul.f32 -1.442695, %v413_v7  ;;  %v770_v9 = vld [vmem:[%s7342_s2 + $0x50] sm:$0xff] }
 0x64d   :  { %5666 = vpow2.f32 %v4242_v6 }
 0x658   :  { %v5665_v11 = vpop.eup %5664 }
 0x659   :  { %423 = vrot.lane.b32.xlu0 %v5665_v11, %s7345_s11 }
 0x65a   :  { %v5667_v10 = vpop.eup %5666 }
 0x65b   :  { %v417_v13 = vadd.f32 1.0, %v5667_v10 }
 0x65d   :  { %5668 = vrcp.f32 %v417_v13 }
 0x66a   :  { %v5669_v14 = vpop.eup %5668 }
 0x66b   :  { %v421_v16 = vmul.f32 %v5669_v14, %v331_v58 }
 0x6cb   :  { %v424_v12 = vpop.permute.xlu0 %423 }
 0x6cc   :  { %v426_v15 = vmul.f32 %v5669_v14, %v424_v12 }
 0x6ce   :  { %428 = vrot.lane.b32.xlu1 %v426_v15, %s7345_s11 }
 0x740   :  { %v429_v17 = vpop.permute.xlu1 %428 }
 0x741   :  { %v5946_v18 = vadd.f32 %v429_v17, %v421_v16 }
 0x743   :  { %5670 = vtanh.f32 %v5946_v18 }
 0x750   :  { %v5671_v19 = vpop.eup %5670 }
 0x751   :  { %434 = vrot.lane.b32.xlu0 %v5671_v19, %s7345_s11  ;;  %s7357_s11 = smov 109  }
 0x755   :  { %739 = vrot.lane.b32.xlu0 %v5959_v28, %s7421_s19 }
 0x759   :  { %742 = vrot.lane.b32.xlu0 %v5959_v28, %s7419_s22 }
 0x7c3   :  { %v435_v8 = vpop.permute.xlu0 %434 }
 0x7c4   :  { %v437_v29 = vmul.f32 %v5669_v14, %v435_v8  ;;  %v957_v14 = vld [vmem:[%s7342_s2 + $0x10] sm:$0xff]  ;;  %v750_v8 = vld [vmem:[%s7342_s2 + $0x48] sm:$0xff] }
 0x7c6   :  { %439 = vrot.lane.b32.xlu1 %v437_v29, %s7344_s12  ;;  %s7355_s12 = smov 12   ;;  %v958_v29 = vld [vmem:[%s7342_s2 + $0x28] sm:$0xff] }
 0x7c7   :  { %v6060_v39 = vpop.permute.xlu0 %739 }
 0x7c8   :  { %v741_v1 = vmax.f32 %v6060_v39, %v5959_v28 }
 0x7cb   :  { %v6062_v40 = vpop.permute.xlu0 %742 }
 0x7cc   :  { %v744_v7 = vmax.f32 %v741_v1, %v6062_v40 }
 0x838   :  { %v440_v30 = vpop.permute.xlu1 %439 }
 0x839   :  { %4809 = vmatmul.mubr.msk.f32.vlgmr.msra.gmra.mxu1 %vm139_vm1, %v440_v30  ;;  %v959_v30 = vld [vmem:[%s7342_s2 + $0x40] sm:$0xff] }
 0x83a   :  { %4812 = vmatpush3.msra.mxu1 %v547_v26  ;;  %4813 = vmatprep.mubr.msk.f32.mxu1 %vm5727_vm0, %v5726_v2  ;;  %v749_v26 = vld [vmem:[%s7342_s2 + $0x30] sm:$0xff] }
 0x83d   :  { %4814 = vmatmul.mubr.msk.f32.vlgmr.msra.gmra.mxu1 %vm549_vm4, %v548_v31  ;;  %v960_v31 = vld [vmem:[%s7342_s2 + $0x58] sm:$0xff] }
 0x83e   :  { %4886 = vmatprep.mubr.f32.mxu1 %v747_v38 }
 0x8f9   :  { %v509_v33 = vpop.f32.mrf.mxu1 }
 0x8fa   :  { %v5974_v34 = vadd.f32 %v509_v33, %v136_v32 }
 0x8fb   :  { %v4810_v35 = vpop.f32.mrf.mxu1 }
 0x8fc   :  { %5672 = vtanh.f32 %v5974_v34 }
 0x8fd   :  { %v5976_v36 = vpop.f32.mrf.mxu1 }
 0x8fe   :  { %711 = vrot.lane.b32.xlu1 %v5976_v36, %s7417_s23  ;;  %714 = vrot.lane.b32.xlu0 %v5976_v36, %s7415_s24 }
 0x8ff   :  { %v4815_v37 = vpop.f32.mrf.mxu1 }
 0x902   :  { %705 = vrot.lane.b32.xlu1 %v5976_v36, %s7413_s25  ;;  %708 = vrot.lane.b32.xlu0 %v5976_v36, %s7411_s26 }
 0x906   :  { %699 = vrot.lane.b32.xlu1 %v5976_v36, %s7409_s27  ;;  %702 = vrot.lane.b32.xlu0 %v5976_v36, %s7407_s28 }
 0x90a   :  { %693 = vrot.lane.b32.xlu1 %v5976_v36, %s7405_s29  ;;  %696 = vrot.lane.b32.xlu0 %v5976_v36, %s7403_s30 }
 0x90e   :  { %687 = vrot.lane.b32.xlu1 %v5976_v36, %s7401_s5  ;;  %690 = vrot.lane.b32.xlu0 %v5976_v36, %s7399_s6 }
 0x912   :  { %681 = vrot.lane.b32.xlu1 %v5976_v36, %s7419_s22  ;;  %684 = vrot.lane.b32.xlu0 %v5976_v36, %s7397_s9 }
 0x916   :  { %674 = vrot.lane.b32.xlu1 %v5976_v36, %s7391_s10  ;;  %677 = vrot.lane.b32.xlu0 %v5976_v36, %s7421_s19 }
 0x91a   :  { %671 = vrot.lane.b32.xlu1 %v5976_v36, %s7387_s13  ;;  %668 = vrot.lane.b32.xlu0 %v5976_v36, %s7395_s14 }
 0x91e   :  { %662 = vrot.lane.b32.xlu1 %v5976_v36, %s7389_s15  ;;  %665 = vrot.lane.b32.xlu0 %v5976_v36, %s7393_s16 }
 0x922   :  { %656 = vrot.lane.b32.xlu1 %v5976_v36, %s7349_s17  ;;  %659 = vrot.lane.b32.xlu0 %v5976_v36, %s7361_s18  ;;  %s7363_s17 = smov 110   ;;  %s7375_s18 = smov 115  }
 0x926   :  { %650 = vrot.lane.b32.xlu1 %v5976_v36, %s7347_s20  ;;  %653 = vrot.lane.b32.xlu0 %v5976_v36, %s7385_s21  ;;  %s7359_s20 = smov 14   ;;  %s7457_s21 = smov 14  }
 0x92a   :  { %647 = vrot.lane.b32.xlu1 %v5976_v36, %s7351_s7  ;;  %641 = vrot.lane.b32.xlu0 %v5976_v36, %s7353_s8  ;;  %s7365_s7 = smov 15   ;;  %s7367_s8 = smov 111  }
 0x92e   :  { %644 = vrot.lane.b32.xlu1 %v5976_v36, %s7355_s12  ;;  %735 = vrot.lane.b32.xlu0 %v5976_v36, %s7357_s11  ;;  %s7369_s12 = smov 16   ;;  %s7371_s11 = smov 112  }
 0x932   :  { %638 = vrot.lane.b32.xlu1 %v5976_v36, %s7359_s20  ;;  %732 = vrot.lane.b32.xlu0 %v5976_v36, %s7363_s17  ;;  %s7383_s17 = smov 17   ;;  %s7452_s20 = smov 7  }
 0x936   :  { %635 = vrot.lane.b32.xlu1 %v5976_v36, %s7365_s7  ;;  %729 = vrot.lane.b32.xlu0 %v5976_v36, %s7367_s8  ;;  %s7377_s7 = smov 113   ;;  %s7381_s8 = smov 18  }
 0x93a   :  { %632 = vrot.lane.b32.xlu1 %v5976_v36, %s7369_s12  ;;  %726 = vrot.lane.b32.xlu0 %v5976_v36, %s7371_s11  ;;  %s7373_s12 = smov 114   ;;  %s7379_s11 = smov 19  }
 0x93e   :  { %629 = vrot.lane.b32.xlu1 %v5976_v36, %s7383_s17  ;;  %723 = vrot.lane.b32.xlu0 %v5976_v36, %s7377_s7  ;;  %s7453_s7 = smov 11   ;;  %s7456_s17 = smov 10  }
 0x942   :  { %626 = vrot.lane.b32.xlu1 %v5976_v36, %s7381_s8  ;;  %720 = vrot.lane.b32.xlu0 %v5976_v36, %s7373_s12  ;;  %s7451_s12 = smov 9   ;;  %s7458_s8 = smov 13  }
 0x946   :  { %623 = vrot.lane.b32.xlu1 %v5976_v36, %s7379_s11  ;;  %s7455_s11 = smov 12  }
 0x94a   :  { %717 = vrot.lane.b32.xlu1 %v5976_v36, %s7375_s18  ;;  %s7454_s18 = smov 8  }
 0x970   :  { %v712_v41 = vpop.permute.xlu1 %711  ;;  %v715_v42 = vpop.permute.xlu0 %714 }
 0x971   :  { %4816 = vmatprep.subr.mxu0 %v715_v42 }
 0x972   :  { %4817 = vmatpush3.msra.mxu0 %v715_v42 }
 0x973   :  { %4818 = vmatprep.subr.mxu0 %v712_v41 }
 0x974   :  { %v706_v43 = vpop.permute.xlu1 %705  ;;  %v709_v44 = vpop.permute.xlu0 %708  ;;  %4819 = vmatpush3.msra.mxu0 %v712_v41 }
 0x975   :  { %4820 = vmatprep.subr.mxu0 %v709_v44 }
 0x976   :  { %4821 = vmatpush3.msra.mxu0 %v709_v44 }
 0x977   :  { %4822 = vmatprep.subr.mxu0 %v706_v43 }
 0x978   :  { %v700_v45 = vpop.permute.xlu1 %699  ;;  %v703_v46 = vpop.permute.xlu0 %702  ;;  %4823 = vmatpush3.msra.mxu0 %v706_v43 }
 0x979   :  { %4824 = vmatprep.subr.mxu0 %v703_v46 }
 0x97a   :  { %4825 = vmatpush3.msra.mxu0 %v703_v46 }
 0x97b   :  { %4826 = vmatprep.subr.mxu0 %v700_v45 }
 0x97c   :  { %v694_v47 = vpop.permute.xlu1 %693  ;;  %v697_v48 = vpop.permute.xlu0 %696  ;;  %4827 = vmatpush3.msra.mxu0 %v700_v45 }
 0x97d   :  { %4828 = vmatprep.subr.mxu0 %v697_v48 }
 0x97e   :  { %4829 = vmatpush3.msra.mxu0 %v697_v48 }
 0x97f   :  { %4830 = vmatprep.subr.mxu0 %v694_v47 }
 0x980   :  { %v688_v49 = vpop.permute.xlu1 %687  ;;  %v691_v50 = vpop.permute.xlu0 %690  ;;  %4831 = vmatpush3.msra.mxu0 %v694_v47 }
 0x981   :  { %4832 = vmatprep.subr.mxu0 %v691_v50 }
 0x982   :  { %4833 = vmatpush3.msra.mxu0 %v691_v50 }
 0x983   :  { %4834 = vmatprep.subr.mxu0 %v688_v49 }
 0x984   :  { %v682_v51 = vpop.permute.xlu1 %681  ;;  %v685_v52 = vpop.permute.xlu0 %684  ;;  %4835 = vmatpush3.msra.mxu0 %v688_v49 }
 0x985   :  { %4836 = vmatprep.subr.mxu0 %v685_v52 }
 0x986   :  { %4837 = vmatpush3.msra.mxu0 %v685_v52 }
 0x987   :  { %4838 = vmatprep.subr.mxu0 %v682_v51 }
 0x988   :  { %v675_v53 = vpop.permute.xlu1 %674  ;;  %v678_v54 = vpop.permute.xlu0 %677  ;;  %4839 = vmatpush3.msra.mxu0 %v682_v51 }
 0x989   :  { %4840 = vmatprep.subr.mxu0 %v5976_v36 }
 0x98a   :  { %4841 = vmatpush3.msra.mxu0 %v5976_v36 }
 0x98b   :  { %4842 = vmatprep.subr.mxu0 %v678_v54 }
 0x98c   :  { %v672_v55 = vpop.permute.xlu1 %671  ;;  %v669_v56 = vpop.permute.xlu0 %668  ;;  %4843 = vmatpush3.msra.mxu0 %v678_v54 }
 0x98d   :  { %4844 = vmatprep.subr.mxu0 %v675_v53  ;;  %4854 = vmatprep.subr.mxu1 %v669_v56 }
 0x98e   :  { %4845 = vmatpush3.msra.mxu0 %v675_v53  ;;  %4855 = vmatpush3.msra.mxu1 %v669_v56 }
 0x98f   :  { %4846 = vmatprep.subr.mxu0 %v672_v55 }
 0x990   :  { %v663_v58 = vpop.permute.xlu1 %662  ;;  %v666_v59 = vpop.permute.xlu0 %665  ;;  %4847 = vmatpush3.msra.mxu0 %v672_v55 }
 0x991   :  { %4856 = vmatprep.subr.mxu1 %v666_v59  ;;  %4892 = vmatprep.subr.mxu0 %v5726_v2 }
 0x992   :  { %4849 = vmatmul.mubr.f32.vlgmr.msra.gmra.mxu0 %v768_v57  ;;  %4857 = vmatpush3.msra.mxu1 %v666_v59  ;;  %v1074_v59 = vld [vmem:[%s7341_s3 + $0x8] sm:$0xff] }
 0x993   :  { %4893 = vmatpush3.msra.mxu0 %v5726_v2  ;;  %4858 = vmatprep.subr.mxu1 %v663_v58 }
 0x994   :  { %v657_v60 = vpop.permute.xlu1 %656  ;;  %v660_v61 = vpop.permute.xlu0 %659  ;;  %4894 = vmatprep.subr.mxu0 %v5726_v2  ;;  %4859 = vmatpush3.msra.mxu1 %v663_v58 }
 0x995   :  { %4895 = vmatpush3.msra.mxu0 %v5726_v2  ;;  %4860 = vmatprep.subr.mxu1 %v660_v61 }
 0x996   :  { %4896 = vmatprep.subr.mxu0 %v5726_v2  ;;  %4861 = vmatpush3.msra.mxu1 %v660_v61 }
 0x997   :  { %4897 = vmatpush3.msra.mxu0 %v5726_v2  ;;  %4862 = vmatprep.subr.mxu1 %v657_v60 }
 0x998   :  { %v651_v63 = vpop.permute.xlu1 %650  ;;  %v654_v0 = vpop.permute.xlu0 %653  ;;  %4898 = vmatprep.subr.mxu0 %v5726_v2  ;;  %4863 = vmatpush3.msra.mxu1 %v657_v60 }
 0x999   :  { %4899 = vmatpush3.msra.mxu0 %v5726_v2  ;;  %4864 = vmatprep.subr.mxu1 %v654_v0 }
 0x99a   :  { %4900 = vmatprep.subr.mxu0 %v6075_v62  ;;  %4865 = vmatpush3.msra.mxu1 %v654_v0  ;;  %v1299_v0 = vld [vmem:[%s7342_s2 + $0x60] sm:$0xff] }
 0x99b   :  { %4901 = vmatpush3.msra.mxu0 %v6075_v62  ;;  %4866 = vmatprep.subr.mxu1 %v651_v63 }
 0x99c   :  { %v648_v3 = vpop.permute.xlu1 %647  ;;  %v642_v4 = vpop.permute.xlu0 %641  ;;  %4902 = vmatprep.subr.mxu0 %v5726_v2  ;;  %4867 = vmatpush3.msra.mxu1 %v651_v63  ;;  %v1319_v63 = vld [vmem:[%s7342_s2 + $0x68] sm:$0xff] }
 0x99d   :  { %4903 = vmatpush3.msra.mxu0 %v5726_v2  ;;  %4868 = vmatprep.subr.mxu1 %v648_v3 }
 0x99e   :  { %4904 = vmatprep.subr.mxu0 %v5726_v2  ;;  %4869 = vmatpush3.msra.mxu1 %v648_v3 }
 0x99f   :  { %4905 = vmatpush3.msra.mxu0 %v5726_v2  ;;  %4851 = vmatprep.mubr.f32.mxu0 %v769_v5 }
 0x9a0   :  { %v645_v11 = vpop.permute.xlu1 %644  ;;  %v736_v6 = vpop.permute.xlu0 %735  ;;  %4906 = vmatprep.subr.mxu0 %v5726_v2  ;;  %4852 = vmatmul.mubr.f32.gmra.mxu0 %v770_v9 }
 0x9a1   :  { %4907 = vmatpush3.msra.mxu0 %v5726_v2  ;;  %4870 = vmatprep.subr.mxu1 %v645_v11 }
 0x9a2   :  { %5684 = vmatprep.subr.msk.mxu0 %vm24_vm3, %v744_v7  ;;  %4871 = vmatpush3.msra.mxu1 %v645_v11 }
 0x9a3   :  { %5685 = vmatpush3.msk.msra.mxu0 %vm24_vm3, %v744_v7  ;;  %4872 = vmatprep.subr.mxu1 %v642_v4 }
 0x9a4   :  { %v639_v10 = vpop.permute.xlu1 %638  ;;  %v733_v13 = vpop.permute.xlu0 %732  ;;  %4910 = vmatprep.subr.mxu0 %v736_v6  ;;  %4873 = vmatpush3.msra.mxu1 %v642_v4 }
 0x9a5   :  { %4911 = vmatpush3.msra.mxu0 %v736_v6  ;;  %4874 = vmatprep.subr.mxu1 %v639_v10 }
 0x9a6   :  { %4912 = vmatprep.subr.mxu0 %v733_v13  ;;  %4875 = vmatpush3.msra.mxu1 %v639_v10 }
 0x9a7   :  { %4913 = vmatpush3.msra.mxu0 %v733_v13  ;;  %4924 = vmatprep.mubr.f32.mxu0 %v957_v14 }
 0x9a8   :  { %v636_v12 = vpop.permute.xlu1 %635  ;;  %v730_v15 = vpop.permute.xlu0 %729 }
 0x9a9   :  { %4876 = vmatprep.subr.mxu1 %v636_v12  ;;  %4914 = vmatprep.subr.mxu0 %v730_v15 }
 0x9aa   :  { %4877 = vmatpush3.msra.mxu1 %v636_v12  ;;  %4915 = vmatpush3.msra.mxu0 %v730_v15 }
 0x9ac   :  { %v633_v16 = vpop.permute.xlu1 %632  ;;  %v727_v17 = vpop.permute.xlu0 %726 }
 0x9ad   :  { %4878 = vmatprep.subr.mxu1 %v633_v16  ;;  %4916 = vmatprep.subr.mxu0 %v727_v17 }
 0x9ae   :  { %4879 = vmatpush3.msra.mxu1 %v633_v16  ;;  %4917 = vmatpush3.msra.mxu0 %v727_v17 }
 0x9b0   :  { %v630_v19 = vpop.permute.xlu1 %629  ;;  %v724_v20 = vpop.permute.xlu0 %723 }
 0x9b1   :  { %4880 = vmatprep.subr.mxu1 %v630_v19  ;;  %4918 = vmatprep.subr.mxu0 %v724_v20 }
 0x9b2   :  { %4881 = vmatpush3.msra.mxu1 %v630_v19  ;;  %4919 = vmatpush3.msra.mxu0 %v724_v20 }
 0x9b4   :  { %v627_v21 = vpop.permute.xlu1 %626  ;;  %v721_v22 = vpop.permute.xlu0 %720 }
 0x9b5   :  { %4882 = vmatprep.subr.mxu1 %v627_v21  ;;  %4920 = vmatprep.subr.mxu0 %v721_v22 }
 0x9b6   :  { %4883 = vmatpush3.msra.mxu1 %v627_v21  ;;  %4921 = vmatpush3.msra.mxu0 %v721_v22 }
 0x9b8   :  { %v624_v23 = vpop.permute.xlu1 %623 }
 0x9b9   :  { %4884 = vmatprep.subr.mxu1 %v624_v23 }
 0x9ba   :  { %4885 = vmatpush3.msra.mxu1 %v624_v23 }
 0x9bb   :  { %4887 = vmatmul.mubr.f32.vlgmr.msra.gmra.mxu1 %v748_v24  ;;  %4930 = vmatprep.subr.mxu1 %v5726_v2 }
 0x9bc   :  { %v718_v28 = vpop.permute.xlu1 %717  ;;  %4889 = vmatprep.mubr.f32.mxu1 %v749_v26 }
 0x9bd   :  { %4922 = vmatprep.subr.mxu0 %v718_v28 }
 0x9be   :  { %4923 = vmatpush3.msra.mxu0 %v718_v28 }
 0x9bf   :  { %4890 = vmatmul.mubr.f32.gmra.mxu1 %v750_v8  ;;  %4925 = vmatmul.mubr.f32.vlgmr.msra.gmra.mxu0 %v958_v29  ;;  %v1320_v29 = vld [vmem:[%s7342_s2 + $0x80] sm:$0xff] }
 0x9c0   :  { %4927 = vmatprep.mubr.f32.mxu0 %v959_v30  ;;  %4938 = vmatprep.mubr.msk.f32.mxu1 %vm5727_vm0, %v5726_v2 }
 0x9c3   :  { %4928 = vmatmul.mubr.f32.gmra.mxu0 %v960_v31 }
 0x9c4   :  { %5011 = vmatprep.mubr.f32.mxu0 %v1299_v0  ;;  %v1302_v0 = vld [vmem:[%s7342_s2 + $0xa8] sm:$0xff] }
 0xa52   :  { %v4850_v32 = vpop.f32.mrf.mxu0 }
 0xa54   :  { %v853_v33 = vpop.f32.mrf.mxu0 }
 0xa60   :  { %v4853_v35 = vpop.f32.mrf.mxu0 }
 0xa62   :  { %v863_v37 = vpop.f32.mrf.mxu0 }
 0xa7b   :  { %v4888_v36 = vpop.f32.mrf.mxu1 }
 0xa7c   :  { %v944_v38 = vadd.f32 %v4888_v36, %v4850_v32  ;;  %v6276_v32 = vld [vmem:[#allocation2 + $0x120] sm:$0xff]  ;;  %v1321_v36 = vld [vmem:[%s7342_s2 + $0x98] sm:$0xff] }
 0xa7d   :  { %v938_v27 = vpop.f32.mrf.mxu1 }
 0xa7e   :  { %v939_v41 = vadd.f32 %v938_v27, %v853_v33  ;;  %v1322_v27 = vld [vmem:[%s7342_s2 + $0xb0] sm:$0xff] }
 0xa7f   :  { %v4891_v39 = vpop.f32.mrf.mxu1  ;;  %v4926_v40 = vpop.f32.mrf.mxu0 }
 0xa80   :  { %v1063_v42 = vadd.f32 %v4926_v40, %v944_v38  ;;  %v954_v45 = vadd.f32 %v4891_v39, %v4853_v35 }
 0xa81   :  { %v948_v43 = vpop.f32.mrf.mxu1  ;;  %v1043_v44 = vpop.f32.mrf.mxu0 }
 0xa82   :  { %v1067_v46 = vmax.f32 %v1063_v42, 0.0  ;;  %v1062_v47 = vadd.f32 %v1043_v44, %v939_v41  ;;  %v949_v49 = vadd.f32 %v948_v43, %v863_v37 }
 0xa83   :  { %v4929_v48 = vpop.f32.mrf.mxu0 }
 0xa84   :  { %v1066_v50 = vmax.f32 %v1062_v47, 0.0  ;;  %v1065_v51 = vadd.f32 %v4929_v48, %v954_v45  ;;  %v6126_v52 = vsel %vm24_vm3, %v1067_v46, -3e+38 }
 0xa85   :  { %1269 = vrot.lane.b32.xlu0 %v6126_v52, %s7421_s19  ;;  %v1053_v53 = vpop.f32.mrf.mxu0 }
 0xa86   :  { %v1069_v54 = vmax.f32 %v1065_v51, 0.0  ;;  %v1064_v55 = vadd.f32 %v1053_v53, %v949_v49  ;;  %v6132_v56 = vsel %vm24_vm3, %v1066_v50, -3e+38 }
 0xa87   :  { %1267 = vrot.lane.b32.xlu1 %v6132_v56, %s7421_s19 }
 0xa88   :  { %v1068_v57 = vmax.f32 %v1064_v55, 0.0  ;;  %4931 = vmatpush3.msk.msra.mxu1 %vm24_vm3, %v1069_v54  ;;  %v6145_v58 = vsel %vm24_vm3, %v1069_v54, -3e+38 }
 0xa89   :  { %1281 = vrot.lane.b32.xlu0 %v6126_v52, %s7419_s22  ;;  %4932 = vmatprep.subr.mxu1 %v5726_v2 }
 0xa8a   :  { %4933 = vmatpush3.msk.msra.mxu1 %vm24_vm3, %v1068_v57  ;;  %v6162_v60 = vsel %vm24_vm3, %v1068_v57, -3e+38 }
 0xa8b   :  { %1273 = vrot.lane.b32.xlu1 %v6145_v58, %s7421_s19  ;;  %4934 = vmatprep.subr.mxu1 %v5726_v2 }
 0xa8c   :  { %4935 = vmatpush3.msk.msra.mxu1 %vm24_vm3, %v1067_v46 }
 0xa8d   :  { %1279 = vrot.lane.b32.xlu0 %v6132_v56, %s7419_s22  ;;  %4936 = vmatprep.subr.mxu1 %v5726_v2 }
 0xa8e   :  { %4937 = vmatpush3.msk.msra.mxu1 %vm24_vm3, %v1066_v50  ;;  %v1509_v50 = vld [vmem:[%s7342_s2 + $0x70] sm:$0xff] }
 0xa8f   :  { %1271 = vrot.lane.b32.xlu1 %v6162_v60, %s7421_s19  ;;  %4939 = vmatmul.mubr.msk.f32.vlgmr.msra.gmra.mxu1 %vm139_vm1, %v1074_v59 }
 0xa90   :  { %4973 = vmatprep.mubr.f32.mxu1 %v1319_v63 }
 0xa91   :  { %1285 = vrot.lane.b32.xlu0 %v6145_v58, %s7419_s22 }
 0xa93   :  { %1283 = vrot.lane.b32.xlu1 %v6162_v60, %s7419_s22 }
 0xaf7   :  { %v6255_v1 = vpop.permute.xlu0 %1269 }
 0xaf8   :  { %v1276_v42 = vmax.f32 %v6255_v1, %v6126_v52 }
 0xaf9   :  { %v6257_v3 = vpop.permute.xlu1 %1267 }
 0xafa   :  { %v1275_v44 = vmax.f32 %v6257_v3, %v6132_v56  ;;  %v1510_v3 = vld [vmem:[%s7342_s2 + $0x88] sm:$0xff] }
 0xafb   :  { %v6259_v4 = vpop.permute.xlu0 %1281 }
 0xafc   :  { %v1288_v45 = vmax.f32 %v1276_v42, %v6259_v4  ;;  %v1511_v4 = vld [vmem:[%s7342_s2 + $0xa0] sm:$0xff] }
 0xafd   :  { %v6261_v5 = vpop.permute.xlu1 %1273  ;;  %v1851_v42 = vld [vmem:[%s7342_s2 + $0xc0] sm:$0xff] }
 0xafe   :  { %v1278_v37 = vmax.f32 %v6261_v5, %v6145_v58  ;;  %v1512_v5 = vld [vmem:[%s7342_s2 + $0xb8] sm:$0xff] }
 0xaff   :  { %v6263_v7 = vpop.permute.xlu0 %1279 }
 0xb00   :  { %v1287_v48 = vmax.f32 %v1275_v44, %v6263_v7 }
 0xb01   :  { %v6265_v9 = vpop.permute.xlu1 %1271 }
 0xb02   :  { %v1277_v38 = vmax.f32 %v6265_v9, %v6162_v60 }
 0xb03   :  { %v6267_v11 = vpop.permute.xlu0 %1285 }
 0xb04   :  { %v1290_v39 = vmax.f32 %v1278_v37, %v6267_v11 }
 0xb05   :  { %v6269_v6 = vpop.permute.xlu1 %1283 }
 0xb06   :  { %v1289_v43 = vmax.f32 %v1277_v38, %v6269_v6 }
 0xb4f   :  { %v6171_v61 = vpop.f32.mrf.mxu1 }
 0xb50   :  { %1236 = vrot.lane.b32.xlu1 %v6171_v61, %s7417_s23  ;;  %1239 = vrot.lane.b32.xlu0 %v6171_v61, %s7415_s24  ;;  %s7475_s23 = smov 119   ;;  %s7476_s24 = smov 118  }
 0xb51   :  { %v4940_v2 = vpop.f32.mrf.mxu1 }
 0xb52   :  { %v1301_v2 = vld [vmem:[%s7342_s2 + $0x90] sm:$0xff] }
 0xb54   :  { %1230 = vrot.lane.b32.xlu1 %v6171_v61, %s7413_s25  ;;  %1233 = vrot.lane.b32.xlu0 %v6171_v61, %s7411_s26  ;;  %s7471_s25 = smov 1   ;;  %s7472_s26 = smov 127  }
 0xb58   :  { %1224 = vrot.lane.b32.xlu1 %v6171_v61, %s7409_s27  ;;  %1227 = vrot.lane.b32.xlu0 %v6171_v61, %s7407_s28  ;;  %s7467_s28 = smov 19   ;;  %s7468_s27 = smov 113  }
 0xb5c   :  { %1218 = vrot.lane.b32.xlu1 %v6171_v61, %s7405_s29  ;;  %1221 = vrot.lane.b32.xlu0 %v6171_v61, %s7403_s30  ;;  %s7465_s30 = smov 18   ;;  %s7466_s29 = smov 112  }
 0xb60   :  { %1212 = vrot.lane.b32.xlu1 %v6171_v61, %s7401_s5  ;;  %1215 = vrot.lane.b32.xlu0 %v6171_v61, %s7399_s6  ;;  %s7463_s6 = smov 17   ;;  %s7464_s5 = smov 111  }
 0xb64   :  { %1206 = vrot.lane.b32.xlu1 %v6171_v61, %s7419_s22  ;;  %1209 = vrot.lane.b32.xlu0 %v6171_v61, %s7397_s9  ;;  %s7469_s9 = smov 115   ;;  %s7474_s22 = smov 116  }
 0xb68   :  { %1199 = vrot.lane.b32.xlu1 %v6171_v61, %s7391_s10  ;;  %1202 = vrot.lane.b32.xlu0 %v6171_v61, %s7421_s19  ;;  %s7461_s10 = smov 16   ;;  %s7473_s19 = smov 117  }
 0xb6c   :  { %1196 = vrot.lane.b32.xlu1 %v6171_v61, %s7387_s13  ;;  %1193 = vrot.lane.b32.xlu0 %v6171_v61, %s7395_s14  ;;  %s7459_s13 = smov 15   ;;  %s7470_s14 = smov 114  }
 0xb70   :  { %1187 = vrot.lane.b32.xlu1 %v6171_v61, %s7389_s15  ;;  %1190 = vrot.lane.b32.xlu0 %v6171_v61, %s7393_s16  ;;  %s7460_s15 = smov 109   ;;  %s7462_s16 = smov 110  }
 0xb74   :  { %1178 = vrot.lane.b32.xlu1 %v6171_v61, %s7451_s12  ;;  %1184 = vrot.lane.b32.xlu0 %v6171_v61, %s7452_s20 }
 0xb78   :  { %1172 = vrot.lane.b32.xlu1 %v6171_v61, %s7453_s7  ;;  %1181 = vrot.lane.b32.xlu0 %v6171_v61, %s7454_s18 }
 0xb7c   :  { %1169 = vrot.lane.b32.xlu1 %v6171_v61, %s7455_s11  ;;  %1175 = vrot.lane.b32.xlu0 %v6171_v61, %s7456_s17 }
 0xb80   :  { %1163 = vrot.lane.b32.xlu1 %v6171_v61, %s7457_s21  ;;  %1166 = vrot.lane.b32.xlu0 %v6171_v61, %s7458_s8 }
 0xb84   :  { %1160 = vrot.lane.b32.xlu1 %v6171_v61, %s7459_s13  ;;  %1260 = vrot.lane.b32.xlu0 %v6171_v61, %s7460_s15 }
 0xb88   :  { %1157 = vrot.lane.b32.xlu1 %v6171_v61, %s7461_s10  ;;  %1257 = vrot.lane.b32.xlu0 %v6171_v61, %s7462_s16 }
 0xb8c   :  { %1154 = vrot.lane.b32.xlu1 %v6171_v61, %s7463_s6  ;;  %1254 = vrot.lane.b32.xlu0 %v6171_v61, %s7464_s5 }
 0xb90   :  { %1151 = vrot.lane.b32.xlu1 %v6171_v61, %s7465_s30  ;;  %1251 = vrot.lane.b32.xlu0 %v6171_v61, %s7466_s29 }
 0xb94   :  { %1148 = vrot.lane.b32.xlu1 %v6171_v61, %s7467_s28  ;;  %1248 = vrot.lane.b32.xlu0 %v6171_v61, %s7468_s27 }
 0xb98   :  { %1242 = vrot.lane.b32.xlu1 %v6171_v61, %s7469_s9  ;;  %1245 = vrot.lane.b32.xlu0 %v6171_v61, %s7470_s14 }
 0xbc2   :  { %v1237_v10 = vpop.permute.xlu1 %1236  ;;  %v1240_v13 = vpop.permute.xlu0 %1239 }
 0xbc3   :  { %4941 = vmatprep.subr.mxu1 %v1240_v13 }
 0xbc4   :  { %4942 = vmatpush3.msra.mxu1 %v1240_v13 }
 0xbc5   :  { %4943 = vmatprep.subr.mxu1 %v1237_v10 }
 0xbc6   :  { %v1231_v14 = vpop.permute.xlu1 %1230  ;;  %v1234_v12 = vpop.permute.xlu0 %1233  ;;  %4944 = vmatpush3.msra.mxu1 %v1237_v10 }
 0xbc7   :  { %4945 = vmatprep.subr.mxu1 %v1234_v12 }
 0xbc8   :  { %4946 = vmatpush3.msra.mxu1 %v1234_v12 }
 0xbc9   :  { %4947 = vmatprep.subr.mxu1 %v1231_v14 }
 0xbca   :  { %v1225_v15 = vpop.permute.xlu1 %1224  ;;  %v1228_v16 = vpop.permute.xlu0 %1227  ;;  %4948 = vmatpush3.msra.mxu1 %v1231_v14 }
 0xbcb   :  { %4949 = vmatprep.subr.mxu1 %v1228_v16 }
 0xbcc   :  { %4950 = vmatpush3.msra.mxu1 %v1228_v16 }
 0xbcd   :  { %4951 = vmatprep.subr.mxu1 %v1225_v15 }
 0xbce   :  { %v1219_v17 = vpop.permute.xlu1 %1218  ;;  %v1222_v19 = vpop.permute.xlu0 %1221  ;;  %4952 = vmatpush3.msra.mxu1 %v1225_v15 }
 0xbcf   :  { %4953 = vmatprep.subr.mxu1 %v1222_v19 }
 0xbd0   :  { %4954 = vmatpush3.msra.mxu1 %v1222_v19 }
 0xbd1   :  { %4955 = vmatprep.subr.mxu1 %v1219_v17 }
 0xbd2   :  { %v1213_v20 = vpop.permute.xlu1 %1212  ;;  %v1216_v21 = vpop.permute.xlu0 %1215  ;;  %4956 = vmatpush3.msra.mxu1 %v1219_v17 }
 0xbd3   :  { %4957 = vmatprep.subr.mxu1 %v1216_v21 }
 0xbd4   :  { %4958 = vmatpush3.msra.mxu1 %v1216_v21 }
 0xbd5   :  { %4959 = vmatprep.subr.mxu1 %v1213_v20 }
 0xbd6   :  { %v1207_v22 = vpop.permute.xlu1 %1206  ;;  %v1210_v23 = vpop.permute.xlu0 %1209  ;;  %4960 = vmatpush3.msra.mxu1 %v1213_v20 }
 0xbd7   :  { %4961 = vmatprep.subr.mxu1 %v1210_v23 }
 0xbd8   :  { %4962 = vmatpush3.msra.mxu1 %v1210_v23 }
 0xbd9   :  { %4963 = vmatprep.subr.mxu1 %v1207_v22 }
 0xbda   :  { %v1200_v24 = vpop.permute.xlu1 %1199  ;;  %v1203_v26 = vpop.permute.xlu0 %1202  ;;  %4964 = vmatpush3.msra.mxu1 %v1207_v22 }
 0xbdb   :  { %4965 = vmatprep.subr.mxu1 %v6171_v61 }
 0xbdc   :  { %4966 = vmatpush3.msra.mxu1 %v6171_v61  ;;  %v1300_v61 = vld [vmem:[%s7342_s2 + $0x78] sm:$0xff] }
 0xbdd   :  { %4967 = vmatprep.subr.mxu1 %v1203_v26 }
 0xbde   :  { %v1197_v28 = vpop.permute.xlu1 %1196  ;;  %v1194_v8 = vpop.permute.xlu0 %1193  ;;  %4968 = vmatpush3.msra.mxu1 %v1203_v26 }
 0xbdf   :  { %4969 = vmatprep.subr.mxu1 %v1200_v24  ;;  %4979 = vmatprep.subr.mxu0 %v1194_v8 }
 0xbe0   :  { %4970 = vmatpush3.msra.mxu1 %v1200_v24  ;;  %4980 = vmatpush3.msra.mxu0 %v1194_v8 }
 0xbe1   :  { %4971 = vmatprep.subr.mxu1 %v1197_v28 }
 0xbe2   :  { %v1188_v30 = vpop.permute.xlu1 %1187  ;;  %v1191_v31 = vpop.permute.xlu0 %1190  ;;  %4972 = vmatpush3.msra.mxu1 %v1197_v28 }
 0xbe3   :  { %4981 = vmatprep.subr.mxu0 %v1191_v31  ;;  %5017 = vmatprep.subr.mxu1 %v6276_v32 }
 0xbe4   :  { %4974 = vmatmul.mubr.f32.vlgmr.msra.gmra.mxu1 %v1320_v29  ;;  %4982 = vmatpush3.msra.mxu0 %v1191_v31 }
 0xbe5   :  { %5018 = vmatpush3.msra.mxu1 %v6276_v32  ;;  %4983 = vmatprep.subr.mxu0 %v1188_v30 }
 0xbe6   :  { %v1179_v33 = vpop.permute.xlu1 %1178  ;;  %v1185_v35 = vpop.permute.xlu0 %1184  ;;  %5019 = vmatprep.subr.mxu1 %v6276_v32  ;;  %4984 = vmatpush3.msra.mxu0 %v1188_v30 }
 0xbe7   :  { %5020 = vmatpush3.msra.mxu1 %v6276_v32  ;;  %4985 = vmatprep.subr.mxu0 %v1185_v35 }
 0xbe8   :  { %5021 = vmatprep.subr.mxu1 %v6276_v32  ;;  %4986 = vmatpush3.msra.mxu0 %v1185_v35 }
 0xbe9   :  { %5022 = vmatpush3.msra.mxu1 %v6276_v32  ;;  %4976 = vmatprep.mubr.f32.mxu1 %v1321_v36 }
 0xbea   :  { %v1173_v40 = vpop.permute.xlu1 %1172  ;;  %v1182_v41 = vpop.permute.xlu0 %1181  ;;  %5023 = vmatprep.subr.mxu1 %v6276_v32  ;;  %4977 = vmatmul.mubr.f32.gmra.mxu1 %v1322_v27  ;;  %v1626_v27 = vld [vmem:[%s7341_s3 + $0x10] sm:$0xff]  ;;  %s7479_s3 = smov 123  }
 0xbeb   :  { %5024 = vmatpush3.msra.mxu1 %v6276_v32  ;;  %4987 = vmatprep.subr.mxu0 %v1182_v41 }
 0xbec   :  { %5025 = vmatprep.subr.mxu1 %v6075_v62  ;;  %4988 = vmatpush3.msra.mxu0 %v1182_v41  ;;  %v1871_v41 = vld [vmem:[%s7342_s2 + $0xc8] sm:$0xff] }
 0xbed   :  { %5026 = vmatpush3.msra.mxu1 %v6075_v62  ;;  %4989 = vmatprep.subr.mxu0 %v1179_v33 }
 0xbee   :  { %v1170_v46 = vpop.permute.xlu1 %1169  ;;  %v1176_v47 = vpop.permute.xlu0 %1175  ;;  %5686 = vmatprep.subr.msk.mxu1 %vm24_vm3, %v1290_v39  ;;  %4990 = vmatpush3.msra.mxu0 %v1179_v33 }
 0xbef   :  { %5687 = vmatpush3.msk.msra.mxu1 %vm24_vm3, %v1290_v39  ;;  %4991 = vmatprep.subr.mxu0 %v1176_v47 }
 0xbf0   :  { %5688 = vmatprep.subr.msk.mxu1 %vm24_vm3, %v1289_v43  ;;  %4992 = vmatpush3.msra.mxu0 %v1176_v47 }
 0xbf1   :  { %5689 = vmatpush3.msk.msra.mxu1 %vm24_vm3, %v1289_v43  ;;  %4993 = vmatprep.subr.mxu0 %v1173_v40 }
 0xbf2   :  { %v1164_v62 = vpop.permute.xlu1 %1163  ;;  %v1167_v49 = vpop.permute.xlu0 %1166  ;;  %5690 = vmatprep.subr.msk.mxu1 %vm24_vm3, %v1288_v45  ;;  %4994 = vmatpush3.msra.mxu0 %v1173_v40 }
 0xbf3   :  { %5691 = vmatpush3.msk.msra.mxu1 %vm24_vm3, %v1288_v45  ;;  %4995 = vmatprep.subr.mxu0 %v1170_v46 }
 0xbf4   :  { %5692 = vmatprep.subr.msk.mxu1 %vm24_vm3, %v1287_v48  ;;  %4996 = vmatpush3.msra.mxu0 %v1170_v46 }
 0xbf5   :  { %5693 = vmatpush3.msk.msra.mxu1 %vm24_vm3, %v1287_v48  ;;  %4997 = vmatprep.subr.mxu0 %v1167_v49 }
 0xbf6   :  { %v1161_v51 = vpop.permute.xlu1 %1160  ;;  %v1261_v52 = vpop.permute.xlu0 %1260  ;;  %4998 = vmatpush3.msra.mxu0 %v1167_v49  ;;  %5049 = vmatprep.mubr.f32.mxu1 %v1509_v50 }
 0xbf7   :  { %4999 = vmatprep.subr.mxu0 %v1164_v62  ;;  %5035 = vmatprep.subr.mxu1 %v1261_v52 }
 0xbf8   :  { %5000 = vmatpush3.msra.mxu0 %v1164_v62  ;;  %5036 = vmatpush3.msra.mxu1 %v1261_v52 }
 0xbf9   :  { %5001 = vmatprep.subr.mxu0 %v1161_v51 }
 0xbfa   :  { %v1158_v53 = vpop.permute.xlu1 %1157  ;;  %v1258_v54 = vpop.permute.xlu0 %1257  ;;  %5002 = vmatpush3.msra.mxu0 %v1161_v51 }
 0xbfb   :  { %5003 = vmatprep.subr.mxu0 %v1158_v53  ;;  %5037 = vmatprep.subr.mxu1 %v1258_v54 }
 0xbfc   :  { %5004 = vmatpush3.msra.mxu0 %v1158_v53  ;;  %5038 = vmatpush3.msra.mxu1 %v1258_v54 }
 0xbfe   :  { %v1155_v55 = vpop.permute.xlu1 %1154  ;;  %v1255_v56 = vpop.permute.xlu0 %1254 }
 0xbff   :  { %5005 = vmatprep.subr.mxu0 %v1155_v55  ;;  %5039 = vmatprep.subr.mxu1 %v1255_v56 }
 0xc00   :  { %5006 = vmatpush3.msra.mxu0 %v1155_v55  ;;  %5040 = vmatpush3.msra.mxu1 %v1255_v56 }
 0xc02   :  { %v1152_v57 = vpop.permute.xlu1 %1151  ;;  %v1252_v58 = vpop.permute.xlu0 %1251 }
 0xc03   :  { %5007 = vmatprep.subr.mxu0 %v1152_v57  ;;  %5041 = vmatprep.subr.mxu1 %v1252_v58 }
 0xc04   :  { %5008 = vmatpush3.msra.mxu0 %v1152_v57  ;;  %5042 = vmatpush3.msra.mxu1 %v1252_v58 }
 0xc06   :  { %v1149_v59 = vpop.permute.xlu1 %1148  ;;  %v1249_v60 = vpop.permute.xlu0 %1248 }
 0xc07   :  { %5009 = vmatprep.subr.mxu0 %v1149_v59  ;;  %5043 = vmatprep.subr.mxu1 %v1249_v60 }
 0xc08   :  { %5010 = vmatpush3.msra.mxu0 %v1149_v59  ;;  %5044 = vmatpush3.msra.mxu1 %v1249_v60 }
 0xc09   :  { %5012 = vmatmul.mubr.f32.vlgmr.msra.gmra.mxu0 %v1300_v61  ;;  %5055 = vmatprep.subr.mxu0 %v6276_v32 }
 0xc0a   :  { %v1246_v63 = vpop.permute.xlu0 %1245  ;;  %5014 = vmatprep.mubr.f32.mxu0 %v1301_v2  ;;  %v1243_v1 = vpop.permute.xlu1 %1242 }
 0xc0b   :  { %5045 = vmatprep.subr.mxu1 %v1246_v63 }
 0xc0c   :  { %5046 = vmatpush3.msra.mxu1 %v1246_v63 }
 0xc0d   :  { %5015 = vmatmul.mubr.f32.gmra.mxu0 %v1302_v0  ;;  %5047 = vmatprep.subr.mxu1 %v1243_v1 }
 0xc0e   :  { %5048 = vmatpush3.msra.mxu1 %v1243_v1  ;;  %5063 = vmatprep.mubr.msk.f32.mxu0 %vm5727_vm0, %v6276_v32 }
 0xc0f   :  { %5050 = vmatmul.mubr.f32.vlgmr.msra.gmra.mxu1 %v1510_v3 }
 0xc10   :  { %5052 = vmatprep.mubr.f32.mxu1 %v1511_v4 }
 0xc13   :  { %5053 = vmatmul.mubr.f32.gmra.mxu1 %v1512_v5  ;;  %v1872_v5 = vld [vmem:[%s7342_s2 + $0xe0] sm:$0xff] }
 0xc14   :  { %5136 = vmatprep.mubr.f32.mxu1 %v1851_v42 }
 0xca4   :  { %v4975_v7 = vpop.f32.mrf.mxu1 }
 0xca6   :  { %v1405_v9 = vpop.f32.mrf.mxu1 }
 0xcaa   :  { %v4978_v11 = vpop.f32.mrf.mxu1 }
 0xcac   :  { %v1415_v13 = vpop.f32.mrf.mxu1 }
 0xcc9   :  { %v5013_v6 = vpop.f32.mrf.mxu0 }
 0xcca   :  { %v1496_v12 = vadd.f32 %v5013_v6, %v4975_v7  ;;  %v1873_v7 = vld [vmem:[%s7342_s2 + $0xf8] sm:$0xff] }
 0xccb   :  { %v1490_v10 = vpop.f32.mrf.mxu0 }
 0xccc   :  { %v1491_v16 = vadd.f32 %v1490_v10, %v1405_v9 }
 0xccd   :  { %v5016_v14 = vpop.f32.mrf.mxu0 }
 0xcce   :  { %v1506_v21 = vadd.f32 %v5016_v14, %v4978_v11 }
 0xccf   :  { %v5051_v15 = vpop.f32.mrf.mxu1  ;;  %v1500_v19 = vpop.f32.mrf.mxu0 }
 0xcd0   :  { %v1615_v17 = vadd.f32 %v5051_v15, %v1496_v12  ;;  %v1501_v26 = vadd.f32 %v1500_v19, %v1415_v13  ;;  %v6512_v15 = vld [vmem:[#allocation2 + $0x8] sm:$0xff] }
 0xcd1   :  { %v1595_v20 = vpop.f32.mrf.mxu1 }
 0xcd2   :  { %v1619_v22 = vmax.f32 %v1615_v17, 0.0  ;;  %v1614_v23 = vadd.f32 %v1595_v20, %v1491_v16 }
 0xcd3   :  { %v5054_v24 = vpop.f32.mrf.mxu1 }
 0xcd4   :  { %v6348_v28 = vsel %vm24_vm3, %v1619_v22, -3e+38  ;;  %v1618_v8 = vmax.f32 %v1614_v23, 0.0  ;;  %v1617_v29 = vadd.f32 %v5054_v24, %v1506_v21 }
 0xcd5   :  { %1821 = vrot.lane.b32.xlu1 %v6348_v28, %s7471_s25  ;;  %v1605_v30 = vpop.f32.mrf.mxu1 }
 0xcd6   :  { %v6354_v31 = vsel %vm24_vm3, %v1618_v8, -3e+38  ;;  %v1621_v33 = vmax.f32 %v1617_v29, 0.0  ;;  %v1616_v35 = vadd.f32 %v1605_v30, %v1501_v26  ;;  %v1874_v29 = vld [vmem:[%s7342_s2 + $0x110] sm:$0xff] }
 0xcd7   :  { %1819 = vrot.lane.b32.xlu0 %v6354_v31, %s7471_s25  ;;  %v2061_v30 = vld [vmem:[%s7342_s2 + $0xd0] sm:$0xff] }
 0xcd8   :  { %v1620_v36 = vmax.f32 %v1616_v35, 0.0  ;;  %5056 = vmatpush3.msk.msra.mxu0 %vm24_vm3, %v1621_v33  ;;  %v6365_v37 = vsel %vm24_vm3, %v1621_v33, -3e+38 }
 0xcd9   :  { %1833 = vrot.lane.b32.xlu1 %v6348_v28, %s7472_s26  ;;  %5057 = vmatprep.subr.mxu0 %v6276_v32 }
 0xcda   :  { %5058 = vmatpush3.msk.msra.mxu0 %vm24_vm3, %v1620_v36  ;;  %v6382_v38 = vsel %vm24_vm3, %v1620_v36, -3e+38 }
 0xcdb   :  { %1825 = vrot.lane.b32.xlu0 %v6365_v37, %s7471_s25  ;;  %5059 = vmatprep.subr.mxu0 %v6276_v32 }
 0xcdc   :  { %5060 = vmatpush3.msk.msra.mxu0 %vm24_vm3, %v1619_v22 }
 0xcdd   :  { %1831 = vrot.lane.b32.xlu1 %v6354_v31, %s7472_s26  ;;  %5061 = vmatprep.subr.mxu0 %v6276_v32 }
 0xcde   :  { %5062 = vmatpush3.msk.msra.mxu0 %vm24_vm3, %v1618_v8 }
 0xcdf   :  { %1823 = vrot.lane.b32.xlu0 %v6382_v38, %s7471_s25  ;;  %5064 = vmatmul.mubr.msk.f32.vlgmr.msra.gmra.mxu0 %vm139_vm1, %v1626_v27 }
 0xce0   :  { %5098 = vmatprep.mubr.f32.mxu0 %v1871_v41  ;;  %v1853_v41 = vld [vmem:[%s7342_s2 + $0xf0] sm:$0xff] }
 0xce1   :  { %1837 = vrot.lane.b32.xlu1 %v6365_v37, %s7472_s26 }
 0xce3   :  { %1835 = vrot.lane.b32.xlu0 %v6382_v38, %s7472_s26 }
 0xd47   :  { %v6477_v43 = vpop.permute.xlu1 %1821 }
 0xd48   :  { %v1828_v16 = vmax.f32 %v6477_v43, %v6348_v28 }
 0xd49   :  { %v6479_v44 = vpop.permute.xlu0 %1819 }
 0xd4a   :  { %v1827_v19 = vmax.f32 %v6479_v44, %v6354_v31  ;;  %v1854_v44 = vld [vmem:[%s7342_s2 + $0x108] sm:$0xff] }
 0xd4b   :  { %v6481_v45 = vpop.permute.xlu1 %1833 }
 0xd4c   :  { %v1840_v20 = vmax.f32 %v1828_v16, %v6481_v45 }
 0xd4d   :  { %v6483_v46 = vpop.permute.xlu0 %1825 }
 0xd4e   :  { %v1830_v6 = vmax.f32 %v6483_v46, %v6365_v37 }
 0xd4f   :  { %v6485_v47 = vpop.permute.xlu1 %1831 }
 0xd50   :  { %v1839_v23 = vmax.f32 %v1827_v19, %v6485_v47  ;;  %v2062_v47 = vld [vmem:[%s7342_s2 + $0xe8] sm:$0xff] }
 0xd51   :  { %v6487_v48 = vpop.permute.xlu0 %1823 }
 0xd52   :  { %v1829_v10 = vmax.f32 %v6487_v48, %v6382_v38  ;;  %v2063_v48 = vld [vmem:[%s7342_s2 + $0x100] sm:$0xff] }
 0xd53   :  { %v6489_v62 = vpop.permute.xlu1 %1837 }
 0xd54   :  { %v1842_v13 = vmax.f32 %v1830_v6, %v6489_v62 }
 0xd55   :  { %v6491_v49 = vpop.permute.xlu0 %1835 }
 0xd56   :  { %v1841_v17 = vmax.f32 %v1829_v10, %v6491_v49 }
 0xd9f   :  { %v6393_v39 = vpop.f32.mrf.mxu0 }
 0xda0   :  { %1788 = vrot.lane.b32.xlu1 %v6393_v39, %s7473_s19  ;;  %1791 = vrot.lane.b32.xlu0 %v6393_v39, %s7474_s22  ;;  %s7480_s19 = smov 122   ;;  %s7481_s22 = smov 125  }
 0xda1   :  { %v5065_v40 = vpop.f32.mrf.mxu0 }
 0xda2   :  { %v1852_v40 = vld [vmem:[%s7342_s2 + $0xd8] sm:$0xff] }
 0xda4   :  { %1782 = vrot.lane.b32.xlu1 %v6393_v39, %s7475_s23  ;;  %1785 = vrot.lane.b32.xlu0 %v6393_v39, %s7476_s24  ;;  %s7483_s24 = smov 126  }
 0xda8   :  { %1776 = vrot.lane.b32.xlu1 %v6393_v39, %s7477_s4  ;;  %1779 = vrot.lane.b32.xlu0 %v6393_v39, %s7478_s1  ;;  %s7490_s1 = sld [smem:[#allocation5_spill]]  ;;  %s7493_s4 = smov 118  }
 0xdac   :  { %1770 = vrot.lane.b32.xlu1 %v6393_v39, %s7479_s3  ;;  %1773 = vrot.lane.b32.xlu0 %v6393_v39, %s7480_s19  ;;  %s7484_s3 = smov 4   ;;  %s7487_s19 = smov 6  }
 0xdae   :  { %v2174_v45 = vld [vmem:[%s7490_s1 + $0x30] sm:$0xff]  ;;  %v2175_v62 = vld [vmem:[%s7490_s1 + $0x38] sm:$0xff]  ;;  %v2176_v49 = vld [vmem:[%s7490_s1 + $0x40] sm:$0xff] }
 0xdb0   :  { %1764 = vrot.lane.b32.xlu1 %v6393_v39, %s7481_s22  ;;  %1767 = vrot.lane.b32.xlu0 %v6393_v39, %s7482_s0  ;;  %s7485_s22 = smov 5   ;;  %s7486_s0 = smov 2  }
 0xdb4   :  { %1758 = vrot.lane.b32.xlu1 %v6393_v39, %s7472_s26  ;;  %1761 = vrot.lane.b32.xlu0 %v6393_v39, %s7483_s24  ;;  %s7488_s24 = smov 3  }
 0xdb8   :  { %1745 = vrot.lane.b32.xlu1 %v6393_v39, %s7484_s3  ;;  %1754 = vrot.lane.b32.xlu0 %v6393_v39, %s7471_s25 }
 0xdbc   :  { %1742 = vrot.lane.b32.xlu1 %v6393_v39, %s7485_s22  ;;  %1751 = vrot.lane.b32.xlu0 %v6393_v39, %s7486_s0 }
 0xdc0   :  { %1739 = vrot.lane.b32.xlu1 %v6393_v39, %s7487_s19  ;;  %1748 = vrot.lane.b32.xlu0 %v6393_v39, %s7488_s24 }
 0xdc4   :  { %1733 = vrot.lane.b32.xlu1 %v6393_v39, %s7454_s18  ;;  %1736 = vrot.lane.b32.xlu0 %v6393_v39, %s7452_s20 }
 0xdc8   :  { %1730 = vrot.lane.b32.xlu1 %v6393_v39, %s7451_s12  ;;  %1727 = vrot.lane.b32.xlu0 %v6393_v39, %s7456_s17 }
 0xdcc   :  { %1724 = vrot.lane.b32.xlu1 %v6393_v39, %s7453_s7  ;;  %1721 = vrot.lane.b32.xlu0 %v6393_v39, %s7455_s11 }
 0xdd0   :  { %1715 = vrot.lane.b32.xlu1 %v6393_v39, %s7457_s21  ;;  %1718 = vrot.lane.b32.xlu0 %v6393_v39, %s7458_s8 }
 0xdd4   :  { %1812 = vrot.lane.b32.xlu1 %v6393_v39, %s7460_s15  ;;  %1712 = vrot.lane.b32.xlu0 %v6393_v39, %s7459_s13 }
 0xdd8   :  { %1809 = vrot.lane.b32.xlu1 %v6393_v39, %s7462_s16  ;;  %1709 = vrot.lane.b32.xlu0 %v6393_v39, %s7461_s10 }
 0xddc   :  { %1806 = vrot.lane.b32.xlu1 %v6393_v39, %s7464_s5  ;;  %1706 = vrot.lane.b32.xlu0 %v6393_v39, %s7463_s6  ;;  %s7498_s5 = smov 125  }
 0xde0   :  { %1803 = vrot.lane.b32.xlu1 %v6393_v39, %s7466_s29  ;;  %1703 = vrot.lane.b32.xlu0 %v6393_v39, %s7465_s30  ;;  %s7489_s29 = sld [smem:[#allocation4_spill]]  ;;  %s7497_s30 = smov 122  }
 0xde4   :  { %1800 = vrot.lane.b32.xlu1 %v6393_v39, %s7468_s27  ;;  %1700 = vrot.lane.b32.xlu0 %v6393_v39, %s7467_s28  ;;  %s7494_s27 = smov 121   ;;  %s7496_s28 = smov 123  }
 0xde6   :  { %v5681_v42 = vld [vmem:[%s7489_s29] sm:$0xff]  ;;  %s7495_s29 = smov 120  }
 0xde8   :  { %1794 = vrot.lane.b32.xlu1 %v6393_v39, %s7469_s9  ;;  %1797 = vrot.lane.b32.xlu0 %v6393_v39, %s7470_s14  ;;  %s7491_s9 = smov 117   ;;  %s7492_s14 = smov 116  }
 0xe12   :  { %v1789_v50 = vpop.permute.xlu1 %1788  ;;  %v1792_v51 = vpop.permute.xlu0 %1791 }
 0xe13   :  { %5066 = vmatprep.subr.mxu0 %v1792_v51 }
 0xe14   :  { %5067 = vmatpush3.msra.mxu0 %v1792_v51  ;;  %v2177_v51 = vld [vmem:[%s7490_s1 + $0x48] sm:$0xff] }
 0xe15   :  { %5068 = vmatprep.subr.mxu0 %v1789_v50 }
 0xe16   :  { %v1783_v52 = vpop.permute.xlu1 %1782  ;;  %v1786_v53 = vpop.permute.xlu0 %1785  ;;  %5069 = vmatpush3.msra.mxu0 %v1789_v50  ;;  %v2064_v50 = vld [vmem:[%s7342_s2 + $0x118] sm:$0xff] }
 0xe17   :  { %5070 = vmatprep.subr.mxu0 %v1786_v53 }
 0xe18   :  { %5071 = vmatpush3.msra.mxu0 %v1786_v53 }
 0xe19   :  { %5072 = vmatprep.subr.mxu0 %v1783_v52 }
 0xe1a   :  { %v1777_v54 = vpop.permute.xlu1 %1776  ;;  %v1780_v55 = vpop.permute.xlu0 %1779  ;;  %5073 = vmatpush3.msra.mxu0 %v1783_v52 }
 0xe1b   :  { %5074 = vmatprep.subr.mxu0 %v1780_v55 }
 0xe1c   :  { %5075 = vmatpush3.msra.mxu0 %v1780_v55 }
 0xe1d   :  { %5076 = vmatprep.subr.mxu0 %v1777_v54 }
 0xe1e   :  { %v1771_v56 = vpop.permute.xlu1 %1770  ;;  %v1774_v57 = vpop.permute.xlu0 %1773  ;;  %5077 = vmatpush3.msra.mxu0 %v1777_v54 }
 0xe1f   :  { %5078 = vmatprep.subr.mxu0 %v1774_v57 }
 0xe20   :  { %5079 = vmatpush3.msra.mxu0 %v1774_v57 }
 0xe21   :  { %5080 = vmatprep.subr.mxu0 %v1771_v56 }
 0xe22   :  { %v1765_v58 = vpop.permute.xlu1 %1764  ;;  %v1768_v59 = vpop.permute.xlu0 %1767  ;;  %5081 = vmatpush3.msra.mxu0 %v1771_v56 }
 0xe23   :  { %5082 = vmatprep.subr.mxu0 %v1768_v59 }
 0xe24   :  { %5083 = vmatpush3.msra.mxu0 %v1768_v59 }
 0xe25   :  { %5084 = vmatprep.subr.mxu0 %v1765_v58 }
 0xe26   :  { %v1759_v60 = vpop.permute.xlu1 %1758  ;;  %v1762_v61 = vpop.permute.xlu0 %1761  ;;  %5085 = vmatpush3.msra.mxu0 %v1765_v58 }
 0xe27   :  { %5086 = vmatprep.subr.mxu0 %v1762_v61 }
 0xe28   :  { %5087 = vmatpush3.msra.mxu0 %v1762_v61 }
 0xe29   :  { %5088 = vmatprep.subr.mxu0 %v1759_v60 }
 0xe2a   :  { %v1746_v2 = vpop.permute.xlu1 %1745  ;;  %v1755_v63 = vpop.permute.xlu0 %1754  ;;  %5089 = vmatpush3.msra.mxu0 %v1759_v60 }
 0xe2b   :  { %5090 = vmatprep.subr.mxu0 %v6393_v39  ;;  %5104 = vmatprep.subr.mxu1 %v1746_v2 }
 0xe2c   :  { %5091 = vmatpush3.msra.mxu0 %v6393_v39  ;;  %5105 = vmatpush3.msra.mxu1 %v1746_v2 }
 0xe2d   :  { %5092 = vmatprep.subr.mxu0 %v1755_v63 }
 0xe2e   :  { %v1743_v0 = vpop.permute.xlu1 %1742  ;;  %v1752_v1 = vpop.permute.xlu0 %1751  ;;  %5093 = vmatpush3.msra.mxu0 %v1755_v63 }
 0xe2f   :  { %5094 = vmatprep.subr.mxu0 %v1752_v1  ;;  %5106 = vmatprep.subr.mxu1 %v1743_v0 }
 0xe30   :  { %5095 = vmatpush3.msra.mxu0 %v1752_v1  ;;  %5107 = vmatpush3.msra.mxu1 %v1743_v0 }
 0xe32   :  { %v1740_v3 = vpop.permute.xlu1 %1739  ;;  %v1749_v4 = vpop.permute.xlu0 %1748 }
 0xe33   :  { %5096 = vmatprep.subr.mxu0 %v1749_v4  ;;  %5108 = vmatprep.subr.mxu1 %v1740_v3 }
 0xe34   :  { %5097 = vmatpush3.msra.mxu0 %v1749_v4  ;;  %5109 = vmatpush3.msra.mxu1 %v1740_v3 }
 0xe35   :  { %5142 = vmatprep.subr.mxu0 %v6276_v32  ;;  %5099 = vmatmul.mubr.f32.vlgmr.msra.gmra.mxu0 %v1872_v5 }
 0xe36   :  { %v1734_v9 = vpop.permute.xlu1 %1733  ;;  %v1737_v11 = vpop.permute.xlu0 %1736  ;;  %5143 = vmatpush3.msra.mxu0 %v6276_v32  ;;  %5101 = vmatprep.mubr.f32.mxu0 %v1873_v7 }
 0xe37   :  { %5110 = vmatprep.subr.mxu1 %v1737_v11  ;;  %5144 = vmatprep.subr.mxu0 %v6276_v32 }
 0xe38   :  { %5111 = vmatpush3.msra.mxu1 %v1737_v11  ;;  %5145 = vmatpush3.msra.mxu0 %v6276_v32 }
 0xe39   :  { %5112 = vmatprep.subr.mxu1 %v1734_v9  ;;  %5146 = vmatprep.subr.mxu0 %v6276_v32 }
 0xe3a   :  { %v1731_v14 = vpop.permute.xlu1 %1730  ;;  %v1728_v12 = vpop.permute.xlu0 %1727  ;;  %5113 = vmatpush3.msra.mxu1 %v1734_v9  ;;  %5147 = vmatpush3.msra.mxu0 %v6276_v32 }
 0xe3b   :  { %5114 = vmatprep.subr.mxu1 %v1731_v14  ;;  %5148 = vmatprep.subr.mxu0 %v6276_v32 }
 0xe3c   :  { %5115 = vmatpush3.msra.mxu1 %v1731_v14  ;;  %5149 = vmatpush3.msra.mxu0 %v6276_v32 }
 0xe3d   :  { %5116 = vmatprep.subr.mxu1 %v1728_v12  ;;  %5150 = vmatprep.subr.mxu0 %v6512_v15 }
 0xe3e   :  { %v1725_v21 = vpop.permute.xlu1 %1724  ;;  %v1722_v22 = vpop.permute.xlu0 %1721  ;;  %5117 = vmatpush3.msra.mxu1 %v1728_v12  ;;  %5151 = vmatpush3.msra.mxu0 %v6512_v15 }
 0xe3f   :  { %5118 = vmatprep.subr.mxu1 %v1725_v21  ;;  %5694 = vmatprep.subr.msk.mxu0 %vm24_vm3, %v1842_v13 }
 0xe40   :  { %5119 = vmatpush3.msra.mxu1 %v1725_v21  ;;  %5695 = vmatpush3.msk.msra.mxu0 %vm24_vm3, %v1842_v13 }
 0xe41   :  { %5120 = vmatprep.subr.mxu1 %v1722_v22  ;;  %5696 = vmatprep.subr.msk.mxu0 %vm24_vm3, %v1841_v17 }
 0xe42   :  { %v1716_v24 = vpop.permute.xlu1 %1715  ;;  %v1719_v26 = vpop.permute.xlu0 %1718  ;;  %5121 = vmatpush3.msra.mxu1 %v1722_v22  ;;  %5697 = vmatpush3.msk.msra.mxu0 %vm24_vm3, %v1841_v17 }
 0xe43   :  { %5122 = vmatprep.subr.mxu1 %v1719_v26  ;;  %5698 = vmatprep.subr.msk.mxu0 %vm24_vm3, %v1840_v20 }
 0xe44   :  { %5123 = vmatpush3.msra.mxu1 %v1719_v26  ;;  %5699 = vmatpush3.msk.msra.mxu0 %vm24_vm3, %v1840_v20 }
 0xe45   :  { %5124 = vmatprep.subr.mxu1 %v1716_v24  ;;  %5700 = vmatprep.subr.msk.mxu0 %vm24_vm3, %v1839_v23 }
 0xe46   :  { %v1813_v28 = vpop.permute.xlu1 %1812  ;;  %v1713_v8 = vpop.permute.xlu0 %1712  ;;  %5125 = vmatpush3.msra.mxu1 %v1716_v24  ;;  %5701 = vmatpush3.msk.msra.mxu0 %vm24_vm3, %v1839_v23 }
 0xe47   :  { %5126 = vmatprep.subr.mxu1 %v1713_v8  ;;  %5160 = vmatprep.subr.mxu0 %v1813_v28 }
 0xe48   :  { %5127 = vmatpush3.msra.mxu1 %v1713_v8  ;;  %5161 = vmatpush3.msra.mxu0 %v1813_v28 }
 0xe49   :  { %5102 = vmatmul.mubr.f32.gmra.mxu0 %v1874_v29 }
 0xe4a   :  { %v1810_v31 = vpop.permute.xlu1 %1809  ;;  %v1710_v33 = vpop.permute.xlu0 %1709  ;;  %5174 = vmatprep.mubr.f32.mxu0 %v2061_v30 }
 0xe4b   :  { %5128 = vmatprep.subr.mxu1 %v1710_v33  ;;  %5162 = vmatprep.subr.mxu0 %v1810_v31 }
 0xe4c   :  { %5129 = vmatpush3.msra.mxu1 %v1710_v33  ;;  %5163 = vmatpush3.msra.mxu0 %v1810_v31  ;;  %v2287_v33 = vld [vmem:[%s7490_s1 + $0x18] sm:$0xff] }
 0xe4e   :  { %v1807_v35 = vpop.permute.xlu1 %1806  ;;  %v1707_v36 = vpop.permute.xlu0 %1706 }
 0xe4f   :  { %5130 = vmatprep.subr.mxu1 %v1707_v36  ;;  %5164 = vmatprep.subr.mxu0 %v1807_v35 }
 0xe50   :  { %5131 = vmatpush3.msra.mxu1 %v1707_v36  ;;  %5165 = vmatpush3.msra.mxu0 %v1807_v35 }
 0xe52   :  { %v1804_v37 = vpop.permute.xlu1 %1803  ;;  %v1704_v27 = vpop.permute.xlu0 %1703 }
 0xe53   :  { %5132 = vmatprep.subr.mxu1 %v1704_v27  ;;  %5166 = vmatprep.subr.mxu0 %v1804_v37 }
 0xe54   :  { %5133 = vmatpush3.msra.mxu1 %v1704_v27  ;;  %5167 = vmatpush3.msra.mxu0 %v1804_v37  ;;  %v2532_v37 = vld [vmem:[%s7342_s2 + $0x128] sm:$0xff]  ;;  %v2512_v27 = vld [vmem:[%s7342_s2 + $0x120] sm:$0xff] }
 0xe56   :  { %v1801_v38 = vpop.permute.xlu1 %1800  ;;  %v1701_v39 = vpop.permute.xlu0 %1700 }
 0xe57   :  { %5134 = vmatprep.subr.mxu1 %v1701_v39  ;;  %5168 = vmatprep.subr.mxu0 %v1801_v38 }
 0xe58   :  { %5135 = vmatpush3.msra.mxu1 %v1701_v39  ;;  %5169 = vmatpush3.msra.mxu0 %v1801_v38 }
 0xe59   :  { %5137 = vmatmul.mubr.f32.vlgmr.msra.gmra.mxu1 %v1852_v40  ;;  %5180 = vmatprep.subr.mxu1 %v5681_v42 }
 0xe5a   :  { %v1798_v43 = vpop.permute.xlu0 %1797  ;;  %5139 = vmatprep.mubr.f32.mxu1 %v1853_v41  ;;  %5181 = vmatpush3.msra.mxu1 %v5681_v42  ;;  %v1795_v46 = vpop.permute.xlu1 %1794 }
 0xe5b   :  { %5170 = vmatprep.subr.mxu0 %v1798_v43  ;;  %5188 = vmatprep.subr.mxu1 %v6276_v32 }
 0xe5c   :  { %5171 = vmatpush3.msra.mxu0 %v1798_v43 }
 0xe5d   :  { %5140 = vmatmul.mubr.f32.gmra.mxu1 %v1854_v44  ;;  %5172 = vmatprep.subr.mxu0 %v1795_v46 }
 0xe5e   :  { %5173 = vmatpush3.msra.mxu0 %v1795_v46  ;;  %5182 = vmatprep.mubr.msk.f32.mxu1 %vm549_vm4, %v2174_v45 }
 0xe5f   :  { %5175 = vmatmul.mubr.f32.vlgmr.msra.gmra.mxu0 %v2062_v47 }
 0xe60   :  { %5177 = vmatprep.mubr.f32.mxu0 %v2063_v48 }
 0xe61   :  { %5183 = vmatmul.mubr.msk.f32.vlgmr.msra.gmra.mxu1 %vm549_vm4, %v2175_v62 }
 0xe62   :  { %5185 = vmatprep.mubr.msk.f32.mxu1 %vm549_vm4, %v2176_v49 }
 0xe63   :  { %5178 = vmatmul.mubr.f32.gmra.mxu0 %v2064_v50 }
 0xe64   :  { %5269 = vmatprep.mubr.f32.mxu0 %v2512_v27 }
 0xe65   :  { %5186 = vmatmul.mubr.msk.f32.gmra.mxu1 %vm549_vm4, %v2177_v51 }
 0xe66   :  { %5196 = vmatprep.mubr.msk.f32.mxu1 %vm5727_vm0, %v6276_v32 }
 0xef5   :  { %v5100_v52 = vpop.f32.mrf.mxu0 }
 0xef7   :  { %v1957_v53 = vpop.f32.mrf.mxu0 }
 0xf09   :  { %v5103_v54 = vpop.f32.mrf.mxu0 }
 0xf0b   :  { %v1967_v57 = vpop.f32.mrf.mxu0 }
 0xf19   :  { %v5138_v55 = vpop.f32.mrf.mxu1 }
 0xf1a   :  { %v2048_v59 = vadd.f32 %v5138_v55, %v5100_v52 }
 0xf1b   :  { %v2042_v56 = vpop.f32.mrf.mxu1 }
 0xf1c   :  { %v2043_v2 = vadd.f32 %v2042_v56, %v1957_v53 }
 0xf1d   :  { %v5141_v58 = vpop.f32.mrf.mxu1 }
 0xf1e   :  { %v2058_v3 = vadd.f32 %v5141_v58, %v5103_v54 }
 0xf1f   :  { %v2052_v60 = vpop.f32.mrf.mxu1  ;;  %v5176_v61 = vpop.f32.mrf.mxu0 }
 0xf20   :  { %v2167_v63 = vadd.f32 %v5176_v61, %v2048_v59  ;;  %v2053_v11 = vadd.f32 %v2052_v60, %v1967_v57  ;;  %v2533_v61 = vld [vmem:[%s7342_s2 + $0x140] sm:$0xff] }
 0xf21   :  { %v2147_v0 = vpop.f32.mrf.mxu0  ;;  %v5184_v1 = vpop.f32.mrf.mxu1 }
 0xf22   :  { %v2171_v4 = vmax.f32 %v2167_v63, 0.0  ;;  %v2166_v5 = vadd.f32 %v2147_v0, %v2043_v2  ;;  %v6755_v0 = vld [vmem:[#allocation2 + $0x120] sm:$0xff] }
 0xf23   :  { %v5179_v7 = vpop.f32.mrf.mxu0  ;;  %v2256_v9 = vpop.f32.mrf.mxu1 }
 0xf24   :  { %v2170_v6 = vmax.f32 %v2166_v5, 0.0  ;;  %v2276_v10 = vadd.f32 %v5184_v1, %v2171_v4  ;;  %v2169_v13 = vadd.f32 %v5179_v7, %v2058_v3  ;;  %v2534_v4 = vld [vmem:[%s7342_s2 + $0x158] sm:$0xff]  ;;  %v2535_v7 = vld [vmem:[%s7342_s2 + $0x170] sm:$0xff] }
 0xf25   :  { %v2157_v14 = vpop.f32.mrf.mxu0  ;;  %v5187_v12 = vpop.f32.mrf.mxu1 }
 0xf26   :  { %v6587_v16 = vmax.f32 %v2276_v10, 0.0  ;;  %v2173_v17 = vmax.f32 %v2169_v13, 0.0  ;;  %v2275_v19 = vadd.f32 %v2256_v9, %v2170_v6  ;;  %v2168_v20 = vadd.f32 %v2157_v14, %v2053_v11 }
 0xf27   :  { %v2266_v26 = vpop.f32.mrf.mxu1 }
 0xf28   :  { %v6589_v21 = vmax.f32 %v2275_v19, 0.0  ;;  %v2172_v22 = vmax.f32 %v2168_v20, 0.0  ;;  %v2278_v23 = vadd.f32 %v5187_v12, %v2173_v17  ;;  %v6594_v24 = vsel %vm24_vm3, %v6587_v16, -3e+38 }
 0xf29   :  { %2482 = vrot.lane.b32.xlu0 %v6594_v24, %s7471_s25 }
 0xf2a   :  { %v6598_v28 = vmax.f32 %v2278_v23, 0.0  ;;  %v2277_v8 = vadd.f32 %v2266_v26, %v2172_v22  ;;  %v6603_v29 = vsel %vm24_vm3, %v6589_v21, -3e+38 }
 0xf2b   :  { %2480 = vrot.lane.b32.xlu1 %v6603_v29, %s7471_s25 }
 0xf2c   :  { %v6607_v30 = vmax.f32 %v2277_v8, 0.0  ;;  %5189 = vmatpush3.msk.msra.mxu1 %vm24_vm3, %v6598_v28  ;;  %v6621_v31 = vsel %vm24_vm3, %v6598_v28, -3e+38 }
 0xf2d   :  { %2494 = vrot.lane.b32.xlu0 %v6594_v24, %s7472_s26  ;;  %5190 = vmatprep.subr.mxu1 %v6276_v32 }
 0xf2e   :  { %5191 = vmatpush3.msk.msra.mxu1 %vm24_vm3, %v6607_v30  ;;  %v6641_v35 = vsel %vm24_vm3, %v6607_v30, -3e+38 }
 0xf2f   :  { %2486 = vrot.lane.b32.xlu1 %v6621_v31, %s7471_s25  ;;  %5192 = vmatprep.subr.mxu1 %v6276_v32 }
 0xf30   :  { %5193 = vmatpush3.msk.msra.mxu1 %vm24_vm3, %v6587_v16 }
 0xf31   :  { %2492 = vrot.lane.b32.xlu0 %v6603_v29, %s7472_s26  ;;  %5194 = vmatprep.subr.mxu1 %v6276_v32 }
 0xf32   :  { %5195 = vmatpush3.msk.msra.mxu1 %vm24_vm3, %v6589_v21 }
 0xf33   :  { %2484 = vrot.lane.b32.xlu1 %v6641_v35, %s7471_s25  ;;  %5197 = vmatmul.mubr.msk.f32.vlgmr.msra.gmra.mxu1 %vm139_vm1, %v2287_v33 }
 0xf34   :  { %5231 = vmatprep.mubr.f32.mxu1 %v2532_v37 }
 0xf35   :  { %2498 = vrot.lane.b32.xlu0 %v6621_v31, %s7472_s26 }
 0xf37   :  { %2496 = vrot.lane.b32.xlu1 %v6641_v35, %s7472_s26 }
 0xf9b   :  { %v6734_v38 = vpop.permute.xlu0 %2482 }
 0xf9c   :  { %v2489_v13 = vmax.f32 %v6734_v38, %v6594_v24  ;;  %v2722_v24 = vld [vmem:[%s7342_s2 + $0x130] sm:$0xff]  ;;  %v2513_v38 = vld [vmem:[%s7342_s2 + $0x138] sm:$0xff] }
 0xf9d   :  { %v6736_v39 = vpop.permute.xlu1 %2480 }
 0xf9e   :  { %v2488_v12 = vmax.f32 %v6736_v39, %v6603_v29  ;;  %v2514_v39 = vld [vmem:[%s7342_s2 + $0x150] sm:$0xff] }
 0xf9f   :  { %v6738_v40 = vpop.permute.xlu0 %2494 }
 0xfa0   :  { %v2501_v17 = vmax.f32 %v2489_v13, %v6738_v40 }
 0xfa1   :  { %v6740_v41 = vpop.permute.xlu1 %2486 }
 0xfa2   :  { %v2491_v5 = vmax.f32 %v6740_v41, %v6621_v31  ;;  %v2515_v41 = vld [vmem:[%s7342_s2 + $0x168] sm:$0xff] }
 0xfa3   :  { %v6742_v42 = vpop.permute.xlu0 %2492 }
 0xfa4   :  { %v2500_v22 = vmax.f32 %v2488_v12, %v6742_v42 }
 0xfa5   :  { %v6744_v43 = vpop.permute.xlu1 %2484 }
 0xfa6   :  { %v2490_v9 = vmax.f32 %v6744_v43, %v6641_v35  ;;  %v2723_v43 = vld [vmem:[%s7342_s2 + $0x148] sm:$0xff] }
 0xfa7   :  { %v6746_v44 = vpop.permute.xlu0 %2498 }
 0xfa8   :  { %v2503_v11 = vmax.f32 %v2491_v5, %v6746_v44  ;;  %v2724_v44 = vld [vmem:[%s7342_s2 + $0x160] sm:$0xff] }
 0xfa9   :  { %v6748_v45 = vpop.permute.xlu1 %2496 }
 0xfaa   :  { %v2502_v14 = vmax.f32 %v2490_v9, %v6748_v45  ;;  %v2725_v45 = vld [vmem:[%s7342_s2 + $0x178] sm:$0xff] }
 0xff3   :  { %v6650_v32 = vpop.f32.mrf.mxu1 }
 0xff4   :  { %2449 = vrot.lane.b32.xlu1 %v6650_v32, %s7491_s9  ;;  %2452 = vrot.lane.b32.xlu0 %v6650_v32, %s7492_s14  ;;  %s7499_s14 = smov 124  }
 0xff5   :  { %v5198_v36 = vpop.f32.mrf.mxu1 }
 0xff8   :  { %2443 = vrot.lane.b32.xlu1 %v6650_v32, %s7475_s23  ;;  %2446 = vrot.lane.b32.xlu0 %v6650_v32, %s7493_s4  ;;  %s7506_s23 = smov 115   ;;  %s7507_s4 = smov 114  }
 0xffc   :  { %2437 = vrot.lane.b32.xlu1 %v6650_v32, %s7494_s27  ;;  %2440 = vrot.lane.b32.xlu0 %v6650_v32, %s7495_s29  ;;  %s7500_s29 = smov 126  }
0x1000   :  { %2431 = vrot.lane.b32.xlu1 %v6650_v32, %s7496_s28  ;;  %2434 = vrot.lane.b32.xlu0 %v6650_v32, %s7497_s30 }
0x1004   :  { %2425 = vrot.lane.b32.xlu1 %v6650_v32, %s7498_s5  ;;  %2428 = vrot.lane.b32.xlu0 %v6650_v32, %s7499_s14 }
0x1008   :  { %2419 = vrot.lane.b32.xlu1 %v6650_v32, %s7472_s26  ;;  %2422 = vrot.lane.b32.xlu0 %v6650_v32, %s7500_s29 }
0x100c   :  { %2412 = vrot.lane.b32.xlu1 %v6650_v32, %s7486_s0  ;;  %2415 = vrot.lane.b32.xlu0 %v6650_v32, %s7471_s25 }
0x1010   :  { %2409 = vrot.lane.b32.xlu1 %v6650_v32, %s7488_s24  ;;  %2406 = vrot.lane.b32.xlu0 %v6650_v32, %s7484_s3 }
0x1014   :  { %2400 = vrot.lane.b32.xlu1 %v6650_v32, %s7487_s19  ;;  %2403 = vrot.lane.b32.xlu0 %v6650_v32, %s7485_s22 }
0x1018   :  { %2391 = vrot.lane.b32.xlu1 %v6650_v32, %s7451_s12  ;;  %2397 = vrot.lane.b32.xlu0 %v6650_v32, %s7452_s20 }
0x101c   :  { %2385 = vrot.lane.b32.xlu1 %v6650_v32, %s7453_s7  ;;  %2394 = vrot.lane.b32.xlu0 %v6650_v32, %s7454_s18 }
0x1020   :  { %2382 = vrot.lane.b32.xlu1 %v6650_v32, %s7455_s11  ;;  %2388 = vrot.lane.b32.xlu0 %v6650_v32, %s7456_s17 }
0x1024   :  { %2376 = vrot.lane.b32.xlu1 %v6650_v32, %s7457_s21  ;;  %2379 = vrot.lane.b32.xlu0 %v6650_v32, %s7458_s8  ;;  %s7501_s8 = smov 111  }
0x1028   :  { %2373 = vrot.lane.b32.xlu1 %v6650_v32, %s7459_s13  ;;  %2473 = vrot.lane.b32.xlu0 %v6650_v32, %s7460_s15  ;;  %s7502_s13 = smov 18   ;;  %s7503_s15 = smov 112  }
0x102c   :  { %2370 = vrot.lane.b32.xlu1 %v6650_v32, %s7461_s10  ;;  %2470 = vrot.lane.b32.xlu0 %v6650_v32, %s7462_s16  ;;  %s7504_s10 = smov 19   ;;  %s7505_s16 = smov 113  }
0x1030   :  { %2367 = vrot.lane.b32.xlu1 %v6650_v32, %s7463_s6  ;;  %2467 = vrot.lane.b32.xlu0 %v6650_v32, %s7501_s8 }
0x1034   :  { %2364 = vrot.lane.b32.xlu1 %v6650_v32, %s7502_s13  ;;  %2464 = vrot.lane.b32.xlu0 %v6650_v32, %s7503_s15  ;;  %s7510_s13 = smov 118   ;;  %s7511_s15 = smov 120  }
0x1038   :  { %2361 = vrot.lane.b32.xlu1 %v6650_v32, %s7504_s10  ;;  %2461 = vrot.lane.b32.xlu0 %v6650_v32, %s7505_s16  ;;  %s7508_s10 = smov 116   ;;  %s7509_s16 = smov 119  }
0x103c   :  { %2455 = vrot.lane.b32.xlu1 %v6650_v32, %s7506_s23  ;;  %2458 = vrot.lane.b32.xlu0 %v6650_v32, %s7507_s4  ;;  %s7512_s23 = smov 13   ;;  %s7513_s4 = smov 15  }
0x1066   :  { %v2450_v46 = vpop.permute.xlu1 %2449  ;;  %v2453_v47 = vpop.permute.xlu0 %2452 }
0x1067   :  { %5199 = vmatprep.subr.mxu1 %v2453_v47 }
0x1068   :  { %5200 = vmatpush3.msra.mxu1 %v2453_v47 }
0x1069   :  { %5201 = vmatprep.subr.mxu1 %v2450_v46 }
0x106a   :  { %v2444_v48 = vpop.permute.xlu1 %2443  ;;  %v2447_v62 = vpop.permute.xlu0 %2446  ;;  %5202 = vmatpush3.msra.mxu1 %v2450_v46 }
0x106b   :  { %5203 = vmatprep.subr.mxu1 %v2447_v62 }
0x106c   :  { %5204 = vmatpush3.msra.mxu1 %v2447_v62 }
0x106d   :  { %5205 = vmatprep.subr.mxu1 %v2444_v48 }
0x106e   :  { %v2438_v49 = vpop.permute.xlu1 %2437  ;;  %v2441_v50 = vpop.permute.xlu0 %2440  ;;  %5206 = vmatpush3.msra.mxu1 %v2444_v48 }
0x106f   :  { %5207 = vmatprep.subr.mxu1 %v2441_v50 }
0x1070   :  { %5208 = vmatpush3.msra.mxu1 %v2441_v50 }
0x1071   :  { %5209 = vmatprep.subr.mxu1 %v2438_v49 }
0x1072   :  { %v2432_v51 = vpop.permute.xlu1 %2431  ;;  %v2435_v52 = vpop.permute.xlu0 %2434  ;;  %5210 = vmatpush3.msra.mxu1 %v2438_v49 }
0x1073   :  { %5211 = vmatprep.subr.mxu1 %v2435_v52 }
0x1074   :  { %5212 = vmatpush3.msra.mxu1 %v2435_v52 }
0x1075   :  { %5213 = vmatprep.subr.mxu1 %v2432_v51 }
0x1076   :  { %v2426_v53 = vpop.permute.xlu1 %2425  ;;  %v2429_v54 = vpop.permute.xlu0 %2428  ;;  %5214 = vmatpush3.msra.mxu1 %v2432_v51 }
0x1077   :  { %5215 = vmatprep.subr.mxu1 %v2429_v54 }
0x1078   :  { %5216 = vmatpush3.msra.mxu1 %v2429_v54 }
0x1079   :  { %5217 = vmatprep.subr.mxu1 %v2426_v53 }
0x107a   :  { %v2420_v55 = vpop.permute.xlu1 %2419  ;;  %v2423_v56 = vpop.permute.xlu0 %2422  ;;  %5218 = vmatpush3.msra.mxu1 %v2426_v53 }
0x107b   :  { %5219 = vmatprep.subr.mxu1 %v2423_v56 }
0x107c   :  { %5220 = vmatpush3.msra.mxu1 %v2423_v56 }
0x107d   :  { %5221 = vmatprep.subr.mxu1 %v2420_v55 }
0x107e   :  { %v2413_v57 = vpop.permute.xlu1 %2412  ;;  %v2416_v58 = vpop.permute.xlu0 %2415  ;;  %5222 = vmatpush3.msra.mxu1 %v2420_v55 }
0x107f   :  { %5223 = vmatprep.subr.mxu1 %v6650_v32 }
0x1080   :  { %5224 = vmatpush3.msra.mxu1 %v6650_v32 }
0x1081   :  { %5225 = vmatprep.subr.mxu1 %v2416_v58 }
0x1082   :  { %v2410_v59 = vpop.permute.xlu1 %2409  ;;  %v2407_v60 = vpop.permute.xlu0 %2406  ;;  %5226 = vmatpush3.msra.mxu1 %v2416_v58 }
0x1083   :  { %5227 = vmatprep.subr.mxu1 %v2413_v57  ;;  %5237 = vmatprep.subr.mxu0 %v2407_v60 }
0x1084   :  { %5228 = vmatpush3.msra.mxu1 %v2413_v57  ;;  %5238 = vmatpush3.msra.mxu0 %v2407_v60 }
0x1085   :  { %5229 = vmatprep.subr.mxu1 %v2410_v59 }
0x1086   :  { %v2401_v2 = vpop.permute.xlu1 %2400  ;;  %v2404_v63 = vpop.permute.xlu0 %2403  ;;  %5230 = vmatpush3.msra.mxu1 %v2410_v59 }
0x1087   :  { %5239 = vmatprep.subr.mxu0 %v2404_v63  ;;  %5275 = vmatprep.subr.mxu1 %v6755_v0 }
0x1088   :  { %5232 = vmatmul.mubr.f32.vlgmr.msra.gmra.mxu1 %v2533_v61  ;;  %5240 = vmatpush3.msra.mxu0 %v2404_v63 }
0x1089   :  { %5276 = vmatpush3.msra.mxu1 %v6755_v0  ;;  %5241 = vmatprep.subr.mxu0 %v2401_v2 }
0x108a   :  { %v2392_v1 = vpop.permute.xlu1 %2391  ;;  %v2398_v3 = vpop.permute.xlu0 %2397  ;;  %5277 = vmatprep.subr.mxu1 %v6755_v0  ;;  %5242 = vmatpush3.msra.mxu0 %v2401_v2 }
0x108b   :  { %5278 = vmatpush3.msra.mxu1 %v6755_v0  ;;  %5243 = vmatprep.subr.mxu0 %v2398_v3 }
0x108c   :  { %5279 = vmatprep.subr.mxu1 %v6755_v0  ;;  %5244 = vmatpush3.msra.mxu0 %v2398_v3 }
0x108d   :  { %5280 = vmatpush3.msra.mxu1 %v6755_v0  ;;  %5234 = vmatprep.mubr.f32.mxu1 %v2534_v4 }
0x108e   :  { %v2386_v6 = vpop.permute.xlu1 %2385  ;;  %v2395_v10 = vpop.permute.xlu0 %2394  ;;  %5281 = vmatprep.subr.mxu1 %v6755_v0  ;;  %5235 = vmatmul.mubr.f32.gmra.mxu1 %v2535_v7 }
0x108f   :  { %5282 = vmatpush3.msra.mxu1 %v6755_v0  ;;  %5245 = vmatprep.subr.mxu0 %v2395_v10 }
0x1090   :  { %5283 = vmatprep.subr.mxu1 %v6512_v15  ;;  %5246 = vmatpush3.msra.mxu0 %v2395_v10  ;;  %v2839_v10 = vld [vmem:[%s7490_s1 + $0x20] sm:$0xff] }
0x1091   :  { %5284 = vmatpush3.msra.mxu1 %v6512_v15  ;;  %5247 = vmatprep.subr.mxu0 %v2392_v1 }
0x1092   :  { %v2383_v19 = vpop.permute.xlu1 %2382  ;;  %v2389_v20 = vpop.permute.xlu0 %2388  ;;  %5702 = vmatprep.subr.msk.mxu1 %vm24_vm3, %v2503_v11  ;;  %5248 = vmatpush3.msra.mxu0 %v2392_v1 }
0x1093   :  { %5703 = vmatpush3.msk.msra.mxu1 %vm24_vm3, %v2503_v11  ;;  %5249 = vmatprep.subr.mxu0 %v2389_v20 }
0x1094   :  { %5704 = vmatprep.subr.msk.mxu1 %vm24_vm3, %v2502_v14  ;;  %5250 = vmatpush3.msra.mxu0 %v2389_v20 }
0x1095   :  { %5705 = vmatpush3.msk.msra.mxu1 %vm24_vm3, %v2502_v14  ;;  %5251 = vmatprep.subr.mxu0 %v2386_v6 }
0x1096   :  { %v2377_v15 = vpop.permute.xlu1 %2376  ;;  %v2380_v23 = vpop.permute.xlu0 %2379  ;;  %5706 = vmatprep.subr.msk.mxu1 %vm24_vm3, %v2501_v17  ;;  %5252 = vmatpush3.msra.mxu0 %v2386_v6 }
0x1097   :  { %5707 = vmatpush3.msk.msra.mxu1 %vm24_vm3, %v2501_v17  ;;  %5253 = vmatprep.subr.mxu0 %v2383_v19  ;;  %v3084_v17 = vld [vmem:[%s7342_s2 + $0x188] sm:$0xff] }
0x1098   :  { %5708 = vmatprep.subr.msk.mxu1 %vm24_vm3, %v2500_v22  ;;  %5254 = vmatpush3.msra.mxu0 %v2383_v19  ;;  %v3064_v19 = vld [vmem:[%s7342_s2 + $0x180] sm:$0xff] }
0x1099   :  { %5709 = vmatpush3.msk.msra.mxu1 %vm24_vm3, %v2500_v22  ;;  %5255 = vmatprep.subr.mxu0 %v2380_v23 }
0x109a   :  { %v2374_v26 = vpop.permute.xlu1 %2373  ;;  %v2474_v8 = vpop.permute.xlu0 %2473  ;;  %5256 = vmatpush3.msra.mxu0 %v2380_v23  ;;  %5307 = vmatprep.mubr.f32.mxu1 %v2722_v24 }
0x109b   :  { %5257 = vmatprep.subr.mxu0 %v2377_v15  ;;  %5293 = vmatprep.subr.mxu1 %v2474_v8 }
0x109c   :  { %5258 = vmatpush3.msra.mxu0 %v2377_v15  ;;  %5294 = vmatpush3.msra.mxu1 %v2474_v8 }
0x109d   :  { %5259 = vmatprep.subr.mxu0 %v2374_v26 }
0x109e   :  { %v2371_v29 = vpop.permute.xlu1 %2370  ;;  %v2471_v31 = vpop.permute.xlu0 %2470  ;;  %5260 = vmatpush3.msra.mxu0 %v2374_v26 }
0x109f   :  { %5261 = vmatprep.subr.mxu0 %v2371_v29  ;;  %5295 = vmatprep.subr.mxu1 %v2471_v31 }
0x10a0   :  { %5262 = vmatpush3.msra.mxu0 %v2371_v29  ;;  %5296 = vmatpush3.msra.mxu1 %v2471_v31 }
0x10a2   :  { %v2368_v33 = vpop.permute.xlu1 %2367  ;;  %v2468_v35 = vpop.permute.xlu0 %2467 }
0x10a3   :  { %5263 = vmatprep.subr.mxu0 %v2368_v33  ;;  %5297 = vmatprep.subr.mxu1 %v2468_v35 }
0x10a4   :  { %5264 = vmatpush3.msra.mxu0 %v2368_v33  ;;  %5298 = vmatpush3.msra.mxu1 %v2468_v35 }
0x10a6   :  { %v2365_v32 = vpop.permute.xlu1 %2364  ;;  %v2465_v36 = vpop.permute.xlu0 %2464 }
0x10a7   :  { %5265 = vmatprep.subr.mxu0 %v2365_v32  ;;  %5299 = vmatprep.subr.mxu1 %v2465_v36 }
0x10a8   :  { %5266 = vmatpush3.msra.mxu0 %v2365_v32  ;;  %5300 = vmatpush3.msra.mxu1 %v2465_v36 }
0x10aa   :  { %v2362_v37 = vpop.permute.xlu1 %2361  ;;  %v2462_v27 = vpop.permute.xlu0 %2461 }
0x10ab   :  { %5267 = vmatprep.subr.mxu0 %v2362_v37  ;;  %5301 = vmatprep.subr.mxu1 %v2462_v27 }
0x10ac   :  { %5268 = vmatpush3.msra.mxu0 %v2362_v37  ;;  %5302 = vmatpush3.msra.mxu1 %v2462_v27 }
0x10ad   :  { %5270 = vmatmul.mubr.f32.vlgmr.msra.gmra.mxu0 %v2513_v38  ;;  %5313 = vmatprep.subr.mxu0 %v6755_v0 }
0x10ae   :  { %v2459_v40 = vpop.permute.xlu0 %2458  ;;  %5272 = vmatprep.mubr.f32.mxu0 %v2514_v39  ;;  %v2456_v42 = vpop.permute.xlu1 %2455 }
0x10af   :  { %5303 = vmatprep.subr.mxu1 %v2459_v40 }
0x10b0   :  { %5304 = vmatpush3.msra.mxu1 %v2459_v40 }
0x10b1   :  { %5273 = vmatmul.mubr.f32.gmra.mxu0 %v2515_v41  ;;  %5305 = vmatprep.subr.mxu1 %v2456_v42 }
0x10b2   :  { %5306 = vmatpush3.msra.mxu1 %v2456_v42  ;;  %5321 = vmatprep.mubr.msk.f32.mxu0 %vm5727_vm0, %v6755_v0 }
0x10b3   :  { %5308 = vmatmul.mubr.f32.vlgmr.msra.gmra.mxu1 %v2723_v43 }
0x10b4   :  { %5310 = vmatprep.mubr.f32.mxu1 %v2724_v44 }
0x10b7   :  { %5311 = vmatmul.mubr.f32.gmra.mxu1 %v2725_v45 }
0x10b8   :  { %5394 = vmatprep.mubr.f32.mxu1 %v3064_v19 }
0x1148   :  { %v5233_v46 = vpop.f32.mrf.mxu1 }
0x114a   :  { %v2618_v47 = vpop.f32.mrf.mxu1 }
0x114e   :  { %v5236_v48 = vpop.f32.mrf.mxu1 }
0x1150   :  { %v2628_v50 = vpop.f32.mrf.mxu1 }
0x116d   :  { %v5271_v62 = vpop.f32.mrf.mxu0 }
0x116e   :  { %v2709_v52 = vadd.f32 %v5271_v62, %v5233_v46 }
0x116f   :  { %v2703_v49 = vpop.f32.mrf.mxu0 }
0x1170   :  { %v2704_v54 = vadd.f32 %v2703_v49, %v2618_v47  ;;  %v3085_v47 = vld [vmem:[%s7342_s2 + $0x1a0] sm:$0xff] }
0x1171   :  { %v5274_v51 = vpop.f32.mrf.mxu0 }
0x1172   :  { %v2719_v58 = vadd.f32 %v5274_v51, %v5236_v48  ;;  %v3086_v51 = vld [vmem:[%s7342_s2 + $0x1b8] sm:$0xff] }
0x1173   :  { %v5309_v53 = vpop.f32.mrf.mxu1  ;;  %v2713_v56 = vpop.f32.mrf.mxu0 }
0x1174   :  { %v2828_v55 = vadd.f32 %v5309_v53, %v2709_v52  ;;  %v2714_v2 = vadd.f32 %v2713_v56, %v2628_v50  ;;  %v3087_v53 = vld [vmem:[%s7342_s2 + $0x1d0] sm:$0xff]  ;;  %v6994_v56 = vld [vmem:[#allocation2 + $0x8] sm:$0xff] }
0x1175   :  { %v2808_v57 = vpop.f32.mrf.mxu1 }
0x1176   :  { %v2832_v59 = vmax.f32 %v2828_v55, 0.0  ;;  %v2827_v60 = vadd.f32 %v2808_v57, %v2704_v54 }
0x1177   :  { %v5312_v61 = vpop.f32.mrf.mxu1 }
0x1178   :  { %v6827_v63 = vsel %vm24_vm3, %v2832_v59, -3e+38  ;;  %v2831_v1 = vmax.f32 %v2827_v60, 0.0  ;;  %v2830_v3 = vadd.f32 %v5312_v61, %v2719_v58 }
0x1179   :  { %3034 = vrot.lane.b32.xlu0 %v6827_v63, %s7471_s25  ;;  %v2818_v4 = vpop.f32.mrf.mxu1 }
0x117a   :  { %v6833_v5 = vsel %vm24_vm3, %v2831_v1, -3e+38  ;;  %v2834_v7 = vmax.f32 %v2830_v3, 0.0  ;;  %v2829_v9 = vadd.f32 %v2818_v4, %v2714_v2 }
0x117b   :  { %3032 = vrot.lane.b32.xlu1 %v6833_v5, %s7471_s25 }
0x117c   :  { %v2833_v11 = vmax.f32 %v2829_v9, 0.0  ;;  %5314 = vmatpush3.msk.msra.mxu0 %vm24_vm3, %v2834_v7  ;;  %v6844_v6 = vsel %vm24_vm3, %v2834_v7, -3e+38  ;;  %v3274_v7 = vld [vmem:[%s7342_s2 + $0x190] sm:$0xff] }
0x117d   :  { %3046 = vrot.lane.b32.xlu0 %v6827_v63, %s7472_s26  ;;  %5315 = vmatprep.subr.mxu0 %v6755_v0 }
0x117e   :  { %5316 = vmatpush3.msk.msra.mxu0 %vm24_vm3, %v2833_v11  ;;  %v6861_v13 = vsel %vm24_vm3, %v2833_v11, -3e+38 }
0x117f   :  { %3038 = vrot.lane.b32.xlu1 %v6844_v6, %s7471_s25  ;;  %5317 = vmatprep.subr.mxu0 %v6755_v0 }
0x1180   :  { %5318 = vmatpush3.msk.msra.mxu0 %vm24_vm3, %v2832_v59 }
0x1181   :  { %3044 = vrot.lane.b32.xlu0 %v6833_v5, %s7472_s26  ;;  %5319 = vmatprep.subr.mxu0 %v6755_v0 }
0x1182   :  { %5320 = vmatpush3.msk.msra.mxu0 %vm24_vm3, %v2831_v1 }
0x1183   :  { %3036 = vrot.lane.b32.xlu1 %v6861_v13, %s7471_s25  ;;  %5322 = vmatmul.mubr.msk.f32.vlgmr.msra.gmra.mxu0 %vm139_vm1, %v2839_v10 }
0x1184   :  { %5356 = vmatprep.mubr.f32.mxu0 %v3084_v17 }
0x1185   :  { %3050 = vrot.lane.b32.xlu0 %v6844_v6, %s7472_s26 }
0x1187   :  { %3048 = vrot.lane.b32.xlu1 %v6861_v13, %s7472_s26 }
0x11eb   :  { %v6956_v20 = vpop.permute.xlu0 %3034 }
0x11ec   :  { %v3041_v59 = vmax.f32 %v6956_v20, %v6827_v63 }
0x11ed   :  { %v6958_v22 = vpop.permute.xlu1 %3032 }
0x11ee   :  { %v3040_v61 = vmax.f32 %v6958_v22, %v6833_v5  ;;  %v3065_v22 = vld [vmem:[%s7342_s2 + $0x198] sm:$0xff] }
0x11ef   :  { %v6960_v15 = vpop.permute.xlu0 %3046 }
0x11f0   :  { %v3053_v2 = vmax.f32 %v3041_v59, %v6960_v15  ;;  %v3066_v15 = vld [vmem:[%s7342_s2 + $0x1b0] sm:$0xff]  ;;  %v3391_v59 = vld [vmem:[%s7490_s1 + $0x28] sm:$0xff] }
0x11f1   :  { %v6962_v23 = vpop.permute.xlu1 %3038 }
0x11f2   :  { %v3043_v52 = vmax.f32 %v6962_v23, %v6844_v6 }
0x11f3   :  { %v6964_v24 = vpop.permute.xlu0 %3044 }
0x11f4   :  { %v3052_v63 = vmax.f32 %v3040_v61, %v6964_v24  ;;  %v3067_v24 = vld [vmem:[%s7342_s2 + $0x1c8] sm:$0xff] }
0x11f5   :  { %v6966_v26 = vpop.permute.xlu1 %3036 }
0x11f6   :  { %v3042_v54 = vmax.f32 %v6966_v26, %v6861_v13 }
0x11f7   :  { %v6968_v8 = vpop.permute.xlu0 %3050 }
0x11f8   :  { %v3055_v55 = vmax.f32 %v3043_v52, %v6968_v8  ;;  %v3275_v8 = vld [vmem:[%s7342_s2 + $0x1a8] sm:$0xff] }
0x11f9   :  { %v6970_v29 = vpop.permute.xlu1 %3048 }
0x11fa   :  { %v3054_v60 = vmax.f32 %v3042_v54, %v6970_v29  ;;  %v3276_v29 = vld [vmem:[%s7342_s2 + $0x1c0] sm:$0xff] }
0x1243   :  { %v6872_v14 = vpop.f32.mrf.mxu0 }
0x1244   :  { %3001 = vrot.lane.b32.xlu1 %v6872_v14, %s7491_s9  ;;  %3004 = vrot.lane.b32.xlu0 %v6872_v14, %s7508_s10 }
0x1245   :  { %v5323_v12 = vpop.f32.mrf.mxu0 }
0x1248   :  { %2995 = vrot.lane.b32.xlu1 %v6872_v14, %s7509_s16  ;;  %2998 = vrot.lane.b32.xlu0 %v6872_v14, %s7510_s13 }
0x124c   :  { %2989 = vrot.lane.b32.xlu1 %v6872_v14, %s7494_s27  ;;  %2992 = vrot.lane.b32.xlu0 %v6872_v14, %s7511_s15 }
0x1250   :  { %2983 = vrot.lane.b32.xlu1 %v6872_v14, %s7496_s28  ;;  %2986 = vrot.lane.b32.xlu0 %v6872_v14, %s7497_s30 }
0x1254   :  { %2977 = vrot.lane.b32.xlu1 %v6872_v14, %s7498_s5  ;;  %2980 = vrot.lane.b32.xlu0 %v6872_v14, %s7499_s14 }
0x1258   :  { %2971 = vrot.lane.b32.xlu1 %v6872_v14, %s7472_s26  ;;  %2974 = vrot.lane.b32.xlu0 %v6872_v14, %s7500_s29 }
0x125c   :  { %2964 = vrot.lane.b32.xlu1 %v6872_v14, %s7486_s0  ;;  %2967 = vrot.lane.b32.xlu0 %v6872_v14, %s7471_s25 }
0x1260   :  { %2961 = vrot.lane.b32.xlu1 %v6872_v14, %s7488_s24  ;;  %2958 = vrot.lane.b32.xlu0 %v6872_v14, %s7484_s3 }
0x1264   :  { %2952 = vrot.lane.b32.xlu1 %v6872_v14, %s7487_s19  ;;  %2955 = vrot.lane.b32.xlu0 %v6872_v14, %s7485_s22 }
0x1268   :  { %2943 = vrot.lane.b32.xlu1 %v6872_v14, %s7451_s12  ;;  %2949 = vrot.lane.b32.xlu0 %v6872_v14, %s7452_s20  ;;  %s7514_s20 = smov 109  }
0x126c   :  { %2937 = vrot.lane.b32.xlu1 %v6872_v14, %s7453_s7  ;;  %2946 = vrot.lane.b32.xlu0 %v6872_v14, %s7454_s18  ;;  %s7515_s7 = smov 16   ;;  %s7516_s18 = smov 110  }
0x1270   :  { %2934 = vrot.lane.b32.xlu1 %v6872_v14, %s7455_s11  ;;  %2940 = vrot.lane.b32.xlu0 %v6872_v14, %s7456_s17  ;;  %s7521_s11 = smov 115   ;;  %s7522_s17 = smov 114  }
0x1274   :  { %2928 = vrot.lane.b32.xlu1 %v6872_v14, %s7457_s21  ;;  %2931 = vrot.lane.b32.xlu0 %v6872_v14, %s7512_s23 }
0x1278   :  { %2925 = vrot.lane.b32.xlu1 %v6872_v14, %s7513_s4  ;;  %3025 = vrot.lane.b32.xlu0 %v6872_v14, %s7514_s20  ;;  %s7517_s4 = smov 18   ;;  %s7518_s20 = smov 112  }
0x127c   :  { %2922 = vrot.lane.b32.xlu1 %v6872_v14, %s7515_s7  ;;  %3022 = vrot.lane.b32.xlu0 %v6872_v14, %s7516_s18  ;;  %s7519_s7 = smov 19   ;;  %s7520_s18 = smov 113  }
0x1280   :  { %2919 = vrot.lane.b32.xlu1 %v6872_v14, %s7463_s6  ;;  %3019 = vrot.lane.b32.xlu0 %v6872_v14, %s7501_s8 }
0x1284   :  { %2916 = vrot.lane.b32.xlu1 %v6872_v14, %s7517_s4  ;;  %3016 = vrot.lane.b32.xlu0 %v6872_v14, %s7518_s20  ;;  %s7540_s4 = sld [smem:[#allocation4_spill]] }
0x1288   :  { %2913 = vrot.lane.b32.xlu1 %v6872_v14, %s7519_s7  ;;  %3013 = vrot.lane.b32.xlu0 %v6872_v14, %s7520_s18 }
0x128c   :  { %3007 = vrot.lane.b32.xlu1 %v6872_v14, %s7521_s11  ;;  %3010 = vrot.lane.b32.xlu0 %v6872_v14, %s7522_s17  ;;  %s7538_s11 = smov 32  }
0x12b6   :  { %v3002_v31 = vpop.permute.xlu1 %3001  ;;  %v3005_v33 = vpop.permute.xlu0 %3004 }
0x12b7   :  { %5324 = vmatprep.subr.mxu0 %v3005_v33 }
0x12b8   :  { %5325 = vmatpush3.msra.mxu0 %v3005_v33 }
0x12b9   :  { %5326 = vmatprep.subr.mxu0 %v3002_v31 }
0x12ba   :  { %v2996_v35 = vpop.permute.xlu1 %2995  ;;  %v2999_v32 = vpop.permute.xlu0 %2998  ;;  %5327 = vmatpush3.msra.mxu0 %v3002_v31  ;;  %v3277_v31 = vld [vmem:[%s7342_s2 + $0x1d8] sm:$0xff] }
0x12bb   :  { %5328 = vmatprep.subr.mxu0 %v2999_v32 }
0x12bc   :  { %5329 = vmatpush3.msra.mxu0 %v2999_v32 }
0x12bd   :  { %5330 = vmatprep.subr.mxu0 %v2996_v35 }
0x12be   :  { %v2990_v36 = vpop.permute.xlu1 %2989  ;;  %v2993_v37 = vpop.permute.xlu0 %2992  ;;  %5331 = vmatpush3.msra.mxu0 %v2996_v35 }
0x12bf   :  { %5332 = vmatprep.subr.mxu0 %v2993_v37 }
0x12c0   :  { %5333 = vmatpush3.msra.mxu0 %v2993_v37 }
0x12c1   :  { %5334 = vmatprep.subr.mxu0 %v2990_v36 }
0x12c2   :  { %v2984_v27 = vpop.permute.xlu1 %2983  ;;  %v2987_v38 = vpop.permute.xlu0 %2986  ;;  %5335 = vmatpush3.msra.mxu0 %v2990_v36 }
0x12c3   :  { %5336 = vmatprep.subr.mxu0 %v2987_v38 }
0x12c4   :  { %5337 = vmatpush3.msra.mxu0 %v2987_v38 }
0x12c5   :  { %5338 = vmatprep.subr.mxu0 %v2984_v27 }
0x12c6   :  { %v2978_v39 = vpop.permute.xlu1 %2977  ;;  %v2981_v40 = vpop.permute.xlu0 %2980  ;;  %5339 = vmatpush3.msra.mxu0 %v2984_v27 }
0x12c7   :  { %5340 = vmatprep.subr.mxu0 %v2981_v40 }
0x12c8   :  { %5341 = vmatpush3.msra.mxu0 %v2981_v40 }
0x12c9   :  { %5342 = vmatprep.subr.mxu0 %v2978_v39 }
0x12ca   :  { %v2972_v41 = vpop.permute.xlu1 %2971  ;;  %v2975_v42 = vpop.permute.xlu0 %2974  ;;  %5343 = vmatpush3.msra.mxu0 %v2978_v39 }
0x12cb   :  { %5344 = vmatprep.subr.mxu0 %v2975_v42 }
0x12cc   :  { %5345 = vmatpush3.msra.mxu0 %v2975_v42 }
0x12cd   :  { %5346 = vmatprep.subr.mxu0 %v2972_v41 }
0x12ce   :  { %v2965_v43 = vpop.permute.xlu1 %2964  ;;  %v2968_v44 = vpop.permute.xlu0 %2967  ;;  %5347 = vmatpush3.msra.mxu0 %v2972_v41 }
0x12cf   :  { %5348 = vmatprep.subr.mxu0 %v6872_v14 }
0x12d0   :  { %5349 = vmatpush3.msra.mxu0 %v6872_v14 }
0x12d1   :  { %5350 = vmatprep.subr.mxu0 %v2968_v44 }
0x12d2   :  { %v2962_v45 = vpop.permute.xlu1 %2961  ;;  %v2959_v46 = vpop.permute.xlu0 %2958  ;;  %5351 = vmatpush3.msra.mxu0 %v2968_v44 }
0x12d3   :  { %5352 = vmatprep.subr.mxu0 %v2965_v43  ;;  %5362 = vmatprep.subr.mxu1 %v2959_v46 }
0x12d4   :  { %5353 = vmatpush3.msra.mxu0 %v2965_v43  ;;  %5363 = vmatpush3.msra.mxu1 %v2959_v46 }
0x12d5   :  { %5354 = vmatprep.subr.mxu0 %v2962_v45 }
0x12d6   :  { %v2953_v48 = vpop.permute.xlu1 %2952  ;;  %v2956_v62 = vpop.permute.xlu0 %2955  ;;  %5355 = vmatpush3.msra.mxu0 %v2962_v45 }
0x12d7   :  { %5364 = vmatprep.subr.mxu1 %v2956_v62  ;;  %5400 = vmatprep.subr.mxu0 %v6755_v0 }
0x12d8   :  { %5357 = vmatmul.mubr.f32.vlgmr.msra.gmra.mxu0 %v3085_v47  ;;  %5365 = vmatpush3.msra.mxu1 %v2956_v62 }
0x12d9   :  { %5401 = vmatpush3.msra.mxu0 %v6755_v0  ;;  %5366 = vmatprep.subr.mxu1 %v2953_v48 }
0x12da   :  { %v2944_v49 = vpop.permute.xlu1 %2943  ;;  %v2950_v50 = vpop.permute.xlu0 %2949  ;;  %5402 = vmatprep.subr.mxu0 %v6755_v0  ;;  %5367 = vmatpush3.msra.mxu1 %v2953_v48 }
0x12db   :  { %5403 = vmatpush3.msra.mxu0 %v6755_v0  ;;  %5368 = vmatprep.subr.mxu1 %v2950_v50 }
0x12dc   :  { %5404 = vmatprep.subr.mxu0 %v6755_v0  ;;  %5369 = vmatpush3.msra.mxu1 %v2950_v50 }
0x12dd   :  { %5405 = vmatpush3.msra.mxu0 %v6755_v0  ;;  %5359 = vmatprep.mubr.f32.mxu0 %v3086_v51 }
0x12de   :  { %v2938_v57 = vpop.permute.xlu1 %2937  ;;  %v2947_v58 = vpop.permute.xlu0 %2946  ;;  %5406 = vmatprep.subr.mxu0 %v6755_v0  ;;  %5360 = vmatmul.mubr.f32.gmra.mxu0 %v3087_v53 }
0x12df   :  { %5407 = vmatpush3.msra.mxu0 %v6755_v0  ;;  %5370 = vmatprep.subr.mxu1 %v2947_v58 }
0x12e0   :  { %5408 = vmatprep.subr.mxu0 %v6994_v56  ;;  %5371 = vmatpush3.msra.mxu1 %v2947_v58 }
0x12e1   :  { %5409 = vmatpush3.msra.mxu0 %v6994_v56  ;;  %5372 = vmatprep.subr.mxu1 %v2944_v49 }
0x12e2   :  { %v2935_v1 = vpop.permute.xlu1 %2934  ;;  %v2941_v3 = vpop.permute.xlu0 %2940  ;;  %5710 = vmatprep.subr.msk.mxu0 %vm24_vm3, %v3055_v55  ;;  %5373 = vmatpush3.msra.mxu1 %v2944_v49 }
0x12e3   :  { %5711 = vmatpush3.msk.msra.mxu0 %vm24_vm3, %v3055_v55  ;;  %5374 = vmatprep.subr.mxu1 %v2941_v3 }
0x12e4   :  { %5712 = vmatprep.subr.msk.mxu0 %vm24_vm3, %v3054_v60  ;;  %5375 = vmatpush3.msra.mxu1 %v2941_v3 }
0x12e5   :  { %5713 = vmatpush3.msk.msra.mxu0 %vm24_vm3, %v3054_v60  ;;  %5376 = vmatprep.subr.mxu1 %v2938_v57 }
0x12e6   :  { %v2929_v4 = vpop.permute.xlu1 %2928  ;;  %v2932_v5 = vpop.permute.xlu0 %2931  ;;  %5714 = vmatprep.subr.msk.mxu0 %vm24_vm3, %v3053_v2  ;;  %5377 = vmatpush3.msra.mxu1 %v2938_v57 }
0x12e7   :  { %5715 = vmatpush3.msk.msra.mxu0 %vm24_vm3, %v3053_v2  ;;  %5378 = vmatprep.subr.mxu1 %v2935_v1 }
0x12e8   :  { %5716 = vmatprep.subr.msk.mxu0 %vm24_vm3, %v3052_v63  ;;  %5379 = vmatpush3.msra.mxu1 %v2935_v1 }
0x12e9   :  { %5717 = vmatpush3.msk.msra.mxu0 %vm24_vm3, %v3052_v63  ;;  %5380 = vmatprep.subr.mxu1 %v2932_v5 }
0x12ea   :  { %v2926_v9 = vpop.permute.xlu1 %2925  ;;  %v3026_v11 = vpop.permute.xlu0 %3025  ;;  %5381 = vmatpush3.msra.mxu1 %v2932_v5  ;;  %5432 = vmatprep.mubr.f32.mxu0 %v3274_v7 }
0x12eb   :  { %5382 = vmatprep.subr.mxu1 %v2929_v4  ;;  %5418 = vmatprep.subr.mxu0 %v3026_v11 }
0x12ec   :  { %5383 = vmatpush3.msra.mxu1 %v2929_v4  ;;  %5419 = vmatpush3.msra.mxu0 %v3026_v11 }
0x12ed   :  { %5384 = vmatprep.subr.mxu1 %v2926_v9 }
0x12ee   :  { %v2923_v6 = vpop.permute.xlu1 %2922  ;;  %v3023_v10 = vpop.permute.xlu0 %3022  ;;  %5385 = vmatpush3.msra.mxu1 %v2926_v9 }
0x12ef   :  { %5386 = vmatprep.subr.mxu1 %v2923_v6  ;;  %5420 = vmatprep.subr.mxu0 %v3023_v10 }
0x12f0   :  { %5387 = vmatpush3.msra.mxu1 %v2923_v6  ;;  %5421 = vmatpush3.msra.mxu0 %v3023_v10 }
0x12f2   :  { %v2920_v13 = vpop.permute.xlu1 %2919  ;;  %v3020_v14 = vpop.permute.xlu0 %3019 }
0x12f3   :  { %5388 = vmatprep.subr.mxu1 %v2920_v13  ;;  %5422 = vmatprep.subr.mxu0 %v3020_v14 }
0x12f4   :  { %5389 = vmatpush3.msra.mxu1 %v2920_v13  ;;  %5423 = vmatpush3.msra.mxu0 %v3020_v14 }
0x12f6   :  { %v2917_v12 = vpop.permute.xlu1 %2916  ;;  %v3017_v17 = vpop.permute.xlu0 %3016 }
0x12f7   :  { %5390 = vmatprep.subr.mxu1 %v2917_v12  ;;  %5424 = vmatprep.subr.mxu0 %v3017_v17 }
0x12f8   :  { %5391 = vmatpush3.msra.mxu1 %v2917_v12  ;;  %5425 = vmatpush3.msra.mxu0 %v3017_v17  ;;  %v5769_v17 = vmov 9  }
0x12f9   :  { %5642 = vset.pattern.permute.xlu1 %v5769_v17 }
0x12fa   :  { %v2914_v19 = vpop.permute.xlu1 %2913  ;;  %v3014_v20 = vpop.permute.xlu0 %3013 }
0x12fb   :  { %5392 = vmatprep.subr.mxu1 %v2914_v19  ;;  %5426 = vmatprep.subr.mxu0 %v3014_v20 }
0x12fc   :  { %5393 = vmatpush3.msra.mxu1 %v2914_v19  ;;  %5427 = vmatpush3.msra.mxu0 %v3014_v20  ;;  %v5770_v19 = vmov 8  }
0x12fd   :  { %5395 = vmatmul.mubr.f32.vlgmr.msra.gmra.mxu1 %v3065_v22  ;;  %5438 = vmatprep.subr.mxu1 %v6755_v0 }
0x12fe   :  { %v3011_v23 = vpop.permute.xlu0 %3010  ;;  %5397 = vmatprep.mubr.f32.mxu1 %v3066_v15  ;;  %v3008_v26 = vpop.permute.xlu1 %3007  ;;  %5641 = vset.pattern.permute.xlu0 %v5770_v19  ;;  %v3636_v15 = vld [vmem:[%s7342_s2 + $0x1e8] sm:$0xff] }
0x12ff   :  { %5428 = vmatprep.subr.mxu0 %v3011_v23 }
0x1300   :  { %5429 = vmatpush3.msra.mxu0 %v3011_v23  ;;  %v3616_v23 = vld [vmem:[%s7342_s2 + $0x1e0] sm:$0xff] }
0x1301   :  { %5398 = vmatmul.mubr.f32.gmra.mxu1 %v3067_v24  ;;  %5430 = vmatprep.subr.mxu0 %v3008_v26  ;;  %v3942_v24 = vld [vmem:[%s7490_s1 + $0x48] sm:$0xff] }
0x1302   :  { %5431 = vmatpush3.msra.mxu0 %v3008_v26  ;;  %5446 = vmatprep.mubr.msk.f32.mxu1 %vm5727_vm0, %v6755_v0  ;;  %v3941_v26 = vld [vmem:[%s7490_s1 + $0x40] sm:$0xff] }
0x1303   :  { %5433 = vmatmul.mubr.f32.vlgmr.msra.gmra.mxu0 %v3275_v8  ;;  %v3940_v8 = vld [vmem:[%s7490_s1 + $0x38] sm:$0xff] }
0x1304   :  { %5435 = vmatprep.mubr.f32.mxu0 %v3276_v29  ;;  %v3939_v29 = vld [vmem:[%s7490_s1 + $0x30] sm:$0xff] }
0x1307   :  { %5436 = vmatmul.mubr.f32.gmra.mxu0 %v3277_v31  ;;  %v5673_v31 = vpop.eup %5672 }
0x1308   :  { %5519 = vmatprep.mubr.f32.mxu0 %v3616_v23 }
0x1398   :  { %v5358_v33 = vpop.f32.mrf.mxu0 }
0x139a   :  { %v3170_v35 = vpop.f32.mrf.mxu0 }
0x139e   :  { %v5361_v32 = vpop.f32.mrf.mxu0 }
0x13a0   :  { %v3180_v27 = vpop.f32.mrf.mxu0 }
0x13bd   :  { %v5396_v36 = vpop.f32.mrf.mxu1 }
0x13be   :  { %v3261_v39 = vadd.f32 %v5396_v36, %v5358_v33 }
0x13bf   :  { %v3255_v37 = vpop.f32.mrf.mxu1 }
0x13c0   :  { %v3256_v41 = vadd.f32 %v3255_v37, %v3170_v35 }
0x13c1   :  { %v5399_v38 = vpop.f32.mrf.mxu1 }
0x13c2   :  { %v3271_v45 = vadd.f32 %v5399_v38, %v5361_v32 }
0x13c3   :  { %v5434_v40 = vpop.f32.mrf.mxu0  ;;  %v3265_v43 = vpop.f32.mrf.mxu1 }
0x13c4   :  { %v3380_v42 = vadd.f32 %v5434_v40, %v3261_v39  ;;  %v3266_v62 = vadd.f32 %v3265_v43, %v3180_v27 }
0x13c5   :  { %v3360_v44 = vpop.f32.mrf.mxu0 }
0x13c6   :  { %v3384_v46 = vmax.f32 %v3380_v42, 0.0  ;;  %v3379_v47 = vadd.f32 %v3360_v44, %v3256_v41 }
0x13c7   :  { %v5437_v48 = vpop.f32.mrf.mxu0 }
0x13c8   :  { %v3581_v49 = vsel %vm24_vm3, %v3384_v46, -3e+38  ;;  %v3383_v50 = vmax.f32 %v3379_v47, 0.0  ;;  %v3382_v51 = vadd.f32 %v5437_v48, %v3271_v45  ;;  %v3637_v48 = vld [vmem:[%s7342_s2 + $0x200] sm:$0xff] }
0x13c9   :  { %3586 = vrot.lane.b32.xlu0 %v3581_v49, %s7471_s25  ;;  %v3370_v52 = vpop.f32.mrf.mxu0 }
0x13ca   :  { %v3580_v53 = vsel %vm24_vm3, %v3383_v50, -3e+38  ;;  %v3386_v54 = vmax.f32 %v3382_v51, 0.0  ;;  %v3381_v55 = vadd.f32 %v3370_v52, %v3266_v62 }
0x13cb   :  { %3584 = vrot.lane.b32.xlu1 %v3580_v53, %s7471_s25 }
0x13cc   :  { %v3385_v57 = vmax.f32 %v3381_v55, 0.0  ;;  %5439 = vmatpush3.msk.msra.mxu1 %vm24_vm3, %v3386_v54  ;;  %v3583_v58 = vsel %vm24_vm3, %v3386_v54, -3e+38  ;;  %v3639_v54 = vld [vmem:[%s7342_s2 + $0x230] sm:$0xff] }
0x13cd   :  { %3598 = vrot.lane.b32.xlu0 %v3581_v49, %s7472_s26  ;;  %5440 = vmatprep.subr.mxu1 %v6755_v0 }
0x13ce   :  { %5441 = vmatpush3.msk.msra.mxu1 %vm24_vm3, %v3385_v57  ;;  %v3582_v60 = vsel %vm24_vm3, %v3385_v57, -3e+38 }
0x13cf   :  { %3590 = vrot.lane.b32.xlu1 %v3583_v58, %s7471_s25  ;;  %5442 = vmatprep.subr.mxu1 %v6755_v0 }
0x13d0   :  { %5443 = vmatpush3.msk.msra.mxu1 %vm24_vm3, %v3384_v46 }
0x13d1   :  { %3596 = vrot.lane.b32.xlu0 %v3580_v53, %s7472_s26  ;;  %5444 = vmatprep.subr.mxu1 %v6755_v0 }
0x13d2   :  { %5445 = vmatpush3.msk.msra.mxu1 %vm24_vm3, %v3383_v50  ;;  %v7193_v50 = vld [vmem:[#allocation2 + $0x120] sm:$0xff] }
0x13d3   :  { %3588 = vrot.lane.b32.xlu1 %v3582_v60, %s7471_s25  ;;  %5447 = vmatmul.mubr.msk.f32.vlgmr.msra.gmra.mxu1 %vm139_vm1, %v3391_v59 }
0x13d4   :  { %5481 = vmatprep.mubr.f32.mxu1 %v3636_v15 }
0x13d5   :  { %3602 = vrot.lane.b32.xlu0 %v3583_v58, %s7472_s26 }
0x13d7   :  { %3600 = vrot.lane.b32.xlu1 %v3582_v60, %s7472_s26 }
0x143b   :  { %v3587_v61 = vpop.permute.xlu0 %3586 }
0x143c   :  { %v3593_v1 = vmax.f32 %v3587_v61, %v3581_v49  ;;  %v3826_v61 = vld [vmem:[%s7342_s2 + $0x1f0] sm:$0xff] }
0x143d   :  { %v3585_v2 = vpop.permute.xlu1 %3584 }
0x143e   :  { %v3592_v4 = vmax.f32 %v3585_v2, %v3580_v53  ;;  %v3638_v53 = vld [vmem:[%s7342_s2 + $0x218] sm:$0xff] }
0x143f   :  { %v3599_v3 = vpop.permute.xlu0 %3598 }
0x1440   :  { %v7078_v63 = vmax.f32 %v3593_v1, %v3599_v3 }
0x1441   :  { %v3591_v0 = vpop.permute.xlu1 %3590 }
0x1442   :  { %v3595_v11 = vmax.f32 %v3591_v0, %v3583_v58 }
0x1443   :  { %v3597_v5 = vpop.permute.xlu0 %3596 }
0x1444   :  { %v7080_v7 = vmax.f32 %v3592_v4, %v3597_v5 }
0x1445   :  { %v3589_v9 = vpop.permute.xlu1 %3588 }
0x1446   :  { %v3594_v10 = vmax.f32 %v3589_v9, %v3582_v60 }
0x1447   :  { %v3603_v6 = vpop.permute.xlu0 %3602 }
0x1448   :  { %v7082_v13 = vmax.f32 %v3595_v11, %v3603_v6  ;;  %v3617_v6 = vld [vmem:[%s7342_s2 + $0x1f8] sm:$0xff] }
0x1449   :  { %v3601_v14 = vpop.permute.xlu1 %3600 }
0x144a   :  { %v7084_v12 = vmax.f32 %v3594_v10, %v3601_v14  ;;  %v3618_v10 = vld [vmem:[%s7342_s2 + $0x210] sm:$0xff] }
0x1493   :  { %v7087_v20 = vpop.f32.mrf.mxu1 }
0x1494   :  { %3553 = vrot.lane.b32.xlu1 %v7087_v20, %s7491_s9  ;;  %3556 = vrot.lane.b32.xlu0 %v7087_v20, %s7508_s10 }
0x1495   :  { %v5448_v22 = vpop.f32.mrf.mxu1 }
0x1496   :  { %v2286_v22 = vsel %vm24_vm3, %v6598_v28, 0.0 }
0x1498   :  { %3547 = vrot.lane.b32.xlu1 %v7087_v20, %s7509_s16  ;;  %3550 = vrot.lane.b32.xlu0 %v7087_v20, %s7510_s13  ;;  %s7536_s16 = smov 115   ;;  %s7537_s13 = smov 114  }
0x149c   :  { %3541 = vrot.lane.b32.xlu1 %v7087_v20, %s7494_s27  ;;  %3544 = vrot.lane.b32.xlu0 %v7087_v20, %s7511_s15 }
0x14a0   :  { %3535 = vrot.lane.b32.xlu1 %v7087_v20, %s7496_s28  ;;  %3538 = vrot.lane.b32.xlu0 %v7087_v20, %s7497_s30  ;;  %s7533_s28 = smov 112   ;;  %s7534_s30 = smov 19  }
0x14a4   :  { %3529 = vrot.lane.b32.xlu1 %v7087_v20, %s7498_s5  ;;  %3532 = vrot.lane.b32.xlu0 %v7087_v20, %s7499_s14  ;;  %s7531_s14 = smov 110   ;;  %s7535_s5 = smov 113  }
0x14a8   :  { %3523 = vrot.lane.b32.xlu1 %v7087_v20, %s7472_s26  ;;  %3526 = vrot.lane.b32.xlu0 %v7087_v20, %s7500_s29  ;;  %s7523_s26 = smov 7   ;;  %s7542_s29 = sld [smem:[#allocation6_spill]] }
0x14ac   :  { %3516 = vrot.lane.b32.xlu1 %v7087_v20, %s7486_s0  ;;  %3519 = vrot.lane.b32.xlu0 %v7087_v20, %s7471_s25  ;;  %s7524_s0 = smov 11   ;;  %s7525_s25 = smov 8  }
0x14b0   :  { %3513 = vrot.lane.b32.xlu1 %v7087_v20, %s7488_s24  ;;  %3510 = vrot.lane.b32.xlu0 %v7087_v20, %s7484_s3  ;;  %s7526_s24 = smov 12   ;;  %s7527_s3 = smov 10  }
0x14b4   :  { %3504 = vrot.lane.b32.xlu1 %v7087_v20, %s7487_s19  ;;  %3507 = vrot.lane.b32.xlu0 %v7087_v20, %s7485_s22  ;;  %s7529_s19 = smov 109   ;;  %s7530_s22 = smov 16  }
0x14b8   :  { %3495 = vrot.lane.b32.xlu1 %v7087_v20, %s7451_s12  ;;  %3501 = vrot.lane.b32.xlu0 %v7087_v20, %s7523_s26  ;;  %s7528_s12 = smov 15  }
0x14bc   :  { %3489 = vrot.lane.b32.xlu1 %v7087_v20, %s7524_s0  ;;  %3498 = vrot.lane.b32.xlu0 %v7087_v20, %s7525_s25 }
0x14c0   :  { %3486 = vrot.lane.b32.xlu1 %v7087_v20, %s7526_s24  ;;  %3492 = vrot.lane.b32.xlu0 %v7087_v20, %s7527_s3  ;;  %s7541_s24 = smov 64  }
0x14c4   :  { %3480 = vrot.lane.b32.xlu1 %v7087_v20, %s7457_s21  ;;  %3483 = vrot.lane.b32.xlu0 %v7087_v20, %s7512_s23  ;;  %s7532_s21 = smov 18  }
0x14c8   :  { %3477 = vrot.lane.b32.xlu1 %v7087_v20, %s7528_s12  ;;  %3577 = vrot.lane.b32.xlu0 %v7087_v20, %s7529_s19 }
0x14cc   :  { %3474 = vrot.lane.b32.xlu1 %v7087_v20, %s7530_s22  ;;  %3574 = vrot.lane.b32.xlu0 %v7087_v20, %s7531_s14 }
0x14d0   :  { %3471 = vrot.lane.b32.xlu1 %v7087_v20, %s7463_s6  ;;  %3571 = vrot.lane.b32.xlu0 %v7087_v20, %s7501_s8  ;;  %s7539_s6 = sld [smem:[#allocation3_spill]] }
0x14d4   :  { %3468 = vrot.lane.b32.xlu1 %v7087_v20, %s7532_s21  ;;  %3568 = vrot.lane.b32.xlu0 %v7087_v20, %s7533_s28 }
0x14d6   :  { %v4077_v25 = vld [vmem:[%s7539_s6 + $0xe0] sm:$0xff] }
0x14d8   :  { %3465 = vrot.lane.b32.xlu1 %v7087_v20, %s7534_s30  ;;  %3565 = vrot.lane.b32.xlu0 %v7087_v20, %s7535_s5 }
0x14dc   :  { %3559 = vrot.lane.b32.xlu1 %v7087_v20, %s7536_s16  ;;  %3562 = vrot.lane.b32.xlu0 %v7087_v20, %s7537_s13 }
0x14e0   :  { %3980 = vperm.xlu1 %5642, %v3942_v24   ;;  %3960 = vperm.xlu0 %5641, %v3942_v24  }
0x14e4   :  { %5643 = vset.pattern.permute.xlu1 %v5770_v19  ;;  %5644 = vset.pattern.permute.xlu0 %v5769_v17 }
0x14e5   :  { %3955 = vperm.xlu1 %5643, %v3941_v26   ;;  %3976 = vperm.xlu0 %5644, %v3941_v26  }
0x14e9   :  { %3950 = vperm.xlu1 %5643, %v3940_v8   ;;  %5646 = vset.pattern.permute.xlu0 %v5770_v19  ;;  %v3827_v19 = vld [vmem:[%s7342_s2 + $0x208] sm:$0xff] }
0x14ea   :  { %3945 = vperm.xlu0 %5646, %v3939_v29  }
0x14ed   :  { %5645 = vset.pattern.permute.xlu1 %v5769_v17 }
0x14ee   :  { %3972 = vperm.xlu1 %5645, %v3940_v8   ;;  %5647 = vset.pattern.permute.xlu0 %v5769_v17  ;;  %v3619_v17 = vld [vmem:[%s7342_s2 + $0x228] sm:$0xff] }
0x14f2   :  { %3968 = vperm.xlu1 %5645, %v3939_v29  }
0x14f6   :  { %523 = vrot.lane.b32.xlu1 %v5673_v31, %s7538_s11 }
0x1506   :  { %v3554_v33 = vpop.permute.xlu1 %3553  ;;  %v3557_v35 = vpop.permute.xlu0 %3556 }
0x1507   :  { %5449 = vmatprep.subr.mxu1 %v3557_v35 }
0x1508   :  { %5450 = vmatpush3.msra.mxu1 %v3557_v35 }
0x1509   :  { %5451 = vmatprep.subr.mxu1 %v3554_v33 }
0x150a   :  { %v3548_v32 = vpop.permute.xlu1 %3547  ;;  %v3551_v36 = vpop.permute.xlu0 %3550  ;;  %5452 = vmatpush3.msra.mxu1 %v3554_v33  ;;  %v2285_v33 = vsel %vm24_vm3, %v6607_v30, 0.0 }
0x150b   :  { %5453 = vmatprep.subr.mxu1 %v3551_v36 }
0x150c   :  { %5454 = vmatpush3.msra.mxu1 %v3551_v36  ;;  %v2284_v36 = vsel %vm24_vm3, %v6587_v16, 0.0 }
0x150d   :  { %5455 = vmatprep.subr.mxu1 %v3548_v32 }
0x150e   :  { %v3542_v37 = vpop.permute.xlu1 %3541  ;;  %v3545_v27 = vpop.permute.xlu0 %3544  ;;  %5456 = vmatpush3.msra.mxu1 %v3548_v32 }
0x150f   :  { %5457 = vmatprep.subr.mxu1 %v3545_v27 }
0x1510   :  { %5458 = vmatpush3.msra.mxu1 %v3545_v27  ;;  %v2283_v27 = vsel %vm24_vm3, %v6589_v21, 0.0  ;;  %v4073_v21 = vld [vmem:[%s7539_s6 + $0xc0] sm:$0xff] }
0x1511   :  { %5459 = vmatprep.subr.mxu1 %v3542_v37 }
0x1512   :  { %v3536_v38 = vpop.permute.xlu1 %3535  ;;  %v3539_v39 = vpop.permute.xlu0 %3538  ;;  %5460 = vmatpush3.msra.mxu1 %v3542_v37 }
0x1513   :  { %5461 = vmatprep.subr.mxu1 %v3539_v39 }
0x1514   :  { %5462 = vmatpush3.msra.mxu1 %v3539_v39 }
0x1515   :  { %5463 = vmatprep.subr.mxu1 %v3536_v38 }
0x1516   :  { %v3530_v40 = vpop.permute.xlu1 %3529  ;;  %v3533_v41 = vpop.permute.xlu0 %3532  ;;  %5464 = vmatpush3.msra.mxu1 %v3536_v38 }
0x1517   :  { %5465 = vmatprep.subr.mxu1 %v3533_v41 }
0x1518   :  { %5466 = vmatpush3.msra.mxu1 %v3533_v41 }
0x1519   :  { %5467 = vmatprep.subr.mxu1 %v3530_v40 }
0x151a   :  { %v3524_v42 = vpop.permute.xlu1 %3523  ;;  %v3527_v43 = vpop.permute.xlu0 %3526  ;;  %5468 = vmatpush3.msra.mxu1 %v3530_v40 }
0x151b   :  { %5469 = vmatprep.subr.mxu1 %v3527_v43 }
0x151c   :  { %5470 = vmatpush3.msra.mxu1 %v3527_v43 }
0x151d   :  { %5471 = vmatprep.subr.mxu1 %v3524_v42 }
0x151e   :  { %v3517_v44 = vpop.permute.xlu1 %3516  ;;  %v3520_v45 = vpop.permute.xlu0 %3519  ;;  %5472 = vmatpush3.msra.mxu1 %v3524_v42 }
0x151f   :  { %5473 = vmatprep.subr.mxu1 %v7087_v20 }
0x1520   :  { %5474 = vmatpush3.msra.mxu1 %v7087_v20  ;;  %v3829_v20 = vld [vmem:[%s7342_s2 + $0x238] sm:$0xff] }
0x1521   :  { %5475 = vmatprep.subr.mxu1 %v3520_v45 }
0x1522   :  { %v3514_v46 = vpop.permute.xlu1 %3513  ;;  %v3511_v47 = vpop.permute.xlu0 %3510  ;;  %5476 = vmatpush3.msra.mxu1 %v3520_v45 }
0x1523   :  { %5477 = vmatprep.subr.mxu1 %v3517_v44  ;;  %5487 = vmatprep.subr.mxu0 %v3511_v47 }
0x1524   :  { %5478 = vmatpush3.msra.mxu1 %v3517_v44  ;;  %5488 = vmatpush3.msra.mxu0 %v3511_v47 }
0x1525   :  { %5479 = vmatprep.subr.mxu1 %v3514_v46 }
0x1526   :  { %v3505_v62 = vpop.permute.xlu1 %3504  ;;  %v3508_v49 = vpop.permute.xlu0 %3507  ;;  %5480 = vmatpush3.msra.mxu1 %v3514_v46 }
0x1527   :  { %5489 = vmatprep.subr.mxu0 %v3508_v49  ;;  %5525 = vmatprep.subr.mxu1 %v7193_v50 }
0x1528   :  { %5482 = vmatmul.mubr.f32.vlgmr.msra.gmra.mxu1 %v3637_v48  ;;  %5490 = vmatpush3.msra.mxu0 %v3508_v49  ;;  %v4072_v48 = vld [vmem:[%s7539_s6 + $0xb8] sm:$0xff] }
0x1529   :  { %5526 = vmatpush3.msra.mxu1 %v7193_v50  ;;  %5491 = vmatprep.subr.mxu0 %v3505_v62 }
0x152a   :  { %v3496_v51 = vpop.permute.xlu1 %3495  ;;  %v3502_v52 = vpop.permute.xlu0 %3501  ;;  %5527 = vmatprep.subr.mxu1 %v7193_v50  ;;  %5492 = vmatpush3.msra.mxu0 %v3505_v62  ;;  %v4071_v62 = vld [vmem:[%s7539_s6 + $0xb0] sm:$0xff] }
0x152b   :  { %5528 = vmatpush3.msra.mxu1 %v7193_v50  ;;  %5493 = vmatprep.subr.mxu0 %v3502_v52 }
0x152c   :  { %5529 = vmatprep.subr.mxu1 %v7193_v50  ;;  %5494 = vmatpush3.msra.mxu0 %v3502_v52 }
0x152d   :  { %5530 = vmatpush3.msra.mxu1 %v7193_v50  ;;  %5484 = vmatprep.mubr.f32.mxu1 %v3638_v53 }
0x152e   :  { %v3490_v55 = vpop.permute.xlu1 %3489  ;;  %v3499_v57 = vpop.permute.xlu0 %3498  ;;  %5531 = vmatprep.subr.mxu1 %v7193_v50  ;;  %5485 = vmatmul.mubr.f32.gmra.mxu1 %v3639_v54 }
0x152f   :  { %5532 = vmatpush3.msra.mxu1 %v7193_v50  ;;  %5495 = vmatprep.subr.mxu0 %v3499_v57 }
0x1530   :  { %5533 = vmatprep.subr.mxu1 %v6994_v56  ;;  %5496 = vmatpush3.msra.mxu0 %v3499_v57 }
0x1531   :  { %5534 = vmatpush3.msra.mxu1 %v6994_v56  ;;  %5497 = vmatprep.subr.mxu0 %v3496_v51 }
0x1532   :  { %v3487_v58 = vpop.permute.xlu1 %3486  ;;  %v3493_v59 = vpop.permute.xlu0 %3492  ;;  %5718 = vmatprep.subr.msk.mxu1 %vm24_vm3, %v7082_v13  ;;  %5498 = vmatpush3.msra.mxu0 %v3496_v51 }
0x1533   :  { %5719 = vmatpush3.msk.msra.mxu1 %vm24_vm3, %v7082_v13  ;;  %5499 = vmatprep.subr.mxu0 %v3493_v59  ;;  %v4244_v13 = vmul.f32 -1.442695, %v5974_v34  ;;  %v3828_v34 = vld [vmem:[%s7342_s2 + $0x220] sm:$0xff] }
0x1534   :  { %5720 = vmatprep.subr.msk.mxu1 %vm24_vm3, %v7084_v12  ;;  %5500 = vmatpush3.msra.mxu0 %v3493_v59 }
0x1535   :  { %5721 = vmatpush3.msk.msra.mxu1 %vm24_vm3, %v7084_v12  ;;  %5501 = vmatprep.subr.mxu0 %v3490_v55  ;;  %5674 = vpow2.f32 %v4244_v13 }
0x1536   :  { %v3481_v56 = vpop.permute.xlu1 %3480  ;;  %v3484_v60 = vpop.permute.xlu0 %3483  ;;  %5722 = vmatprep.subr.msk.mxu1 %vm24_vm3, %v7078_v63  ;;  %5502 = vmatpush3.msra.mxu0 %v3490_v55 }
0x1537   :  { %5723 = vmatpush3.msk.msra.mxu1 %vm24_vm3, %v7078_v63  ;;  %5503 = vmatprep.subr.mxu0 %v3487_v58 }
0x1538   :  { %5724 = vmatprep.subr.msk.mxu1 %vm24_vm3, %v7080_v7  ;;  %5504 = vmatpush3.msra.mxu0 %v3487_v58 }
0x1539   :  { %5725 = vmatpush3.msk.msra.mxu1 %vm24_vm3, %v7080_v7  ;;  %5505 = vmatprep.subr.mxu0 %v3484_v60 }
0x153a   :  { %v3478_v2 = vpop.permute.xlu1 %3477  ;;  %v3578_v1 = vpop.permute.xlu0 %3577  ;;  %5506 = vmatpush3.msra.mxu0 %v3484_v60  ;;  %5557 = vmatprep.mubr.f32.mxu1 %v3826_v61 }
0x153b   :  { %5507 = vmatprep.subr.mxu0 %v3481_v56  ;;  %5543 = vmatprep.subr.mxu1 %v3578_v1 }
0x153c   :  { %5508 = vmatpush3.msra.mxu0 %v3481_v56  ;;  %5544 = vmatpush3.msra.mxu1 %v3578_v1 }
0x153d   :  { %5509 = vmatprep.subr.mxu0 %v3478_v2 }
0x153e   :  { %v3475_v3 = vpop.permute.xlu1 %3474  ;;  %v3575_v63 = vpop.permute.xlu0 %3574  ;;  %5510 = vmatpush3.msra.mxu0 %v3478_v2 }
0x153f   :  { %5511 = vmatprep.subr.mxu0 %v3475_v3  ;;  %5545 = vmatprep.subr.mxu1 %v3575_v63 }
0x1540   :  { %5512 = vmatpush3.msra.mxu0 %v3475_v3  ;;  %5546 = vmatpush3.msra.mxu1 %v3575_v63 }
0x1542   :  { %v3472_v0 = vpop.permute.xlu1 %3471  ;;  %v3572_v4 = vpop.permute.xlu0 %3571 }
0x1543   :  { %5513 = vmatprep.subr.mxu0 %v3472_v0  ;;  %5547 = vmatprep.subr.mxu1 %v3572_v4  ;;  %v5675_v26 = vpop.eup %5674 }
0x1544   :  { %5514 = vmatpush3.msra.mxu0 %v3472_v0  ;;  %5548 = vmatpush3.msra.mxu1 %v3572_v4  ;;  %v517_v29 = vadd.f32 1.0, %v5675_v26  ;;  %v4076_v26 = vld [vmem:[%s7539_s6 + $0xd8] sm:$0xff] }
0x1546   :  { %v3469_v5 = vpop.permute.xlu1 %3468  ;;  %v3569_v7 = vpop.permute.xlu0 %3568  ;;  %5676 = vrcp.f32 %v517_v29 }
0x1547   :  { %5515 = vmatprep.subr.mxu0 %v3469_v5  ;;  %5549 = vmatprep.subr.mxu1 %v3569_v7 }
0x1548   :  { %5516 = vmatpush3.msra.mxu0 %v3469_v5  ;;  %5550 = vmatpush3.msra.mxu1 %v3569_v7 }
0x154a   :  { %v3466_v9 = vpop.permute.xlu1 %3465  ;;  %v3566_v11 = vpop.permute.xlu0 %3565 }
0x154b   :  { %5517 = vmatprep.subr.mxu0 %v3466_v9  ;;  %5551 = vmatprep.subr.mxu1 %v3566_v11 }
0x154c   :  { %5518 = vmatpush3.msra.mxu0 %v3466_v9  ;;  %5552 = vmatpush3.msra.mxu1 %v3566_v11 }
0x154d   :  { %5520 = vmatmul.mubr.f32.vlgmr.msra.gmra.mxu0 %v3617_v6  ;;  %5563 = vmatprep.subr.mxu0 %v7193_v50 }
0x154e   :  { %v3560_v14 = vpop.permute.xlu1 %3559  ;;  %v3563_v12 = vpop.permute.xlu0 %3562  ;;  %5522 = vmatprep.mubr.f32.mxu0 %v3618_v10 }
0x154f   :  { %5553 = vmatprep.subr.mxu1 %v3563_v12 }
0x1550   :  { %5554 = vmatpush3.msra.mxu1 %v3563_v12 }
0x1551   :  { %5523 = vmatmul.mubr.f32.gmra.mxu0 %v3619_v17  ;;  %5555 = vmatprep.subr.mxu1 %v3560_v14 }
0x1552   :  { %5556 = vmatpush3.msra.mxu1 %v3560_v14  ;;  %5571 = vmatprep.mubr.msk.f32.mxu0 %vm5727_vm0, %v7193_v50 }
0x1553   :  { %5558 = vmatmul.mubr.f32.vlgmr.msra.gmra.mxu1 %v3827_v19  ;;  %5585 = vmatprep.subr.mxu1 %v7193_v50  ;;  %v7275_v30 = vpop.eup %5676 }
0x1554   :  { %5560 = vmatprep.mubr.f32.mxu1 %v3828_v34  ;;  %v521_v16 = vmul.f32 %v7275_v30, %v5946_v18  ;;  %5586 = vmatpush3.msra.mxu1 %v4073_v21 }
0x1555   :  { %5587 = vmatprep.subr.mxu1 %v7193_v50 }
0x1556   :  { %5588 = vmatpush3.msra.mxu1 %v4072_v48 }
0x1557   :  { %5561 = vmatmul.mubr.f32.gmra.mxu1 %v3829_v20  ;;  %5589 = vmatprep.subr.mxu1 %v7193_v50 }
0x1558   :  { %5593 = vmatprep.mubr.msk.f32.mxu1 %vm5727_vm0, %v7193_v50  ;;  %5590 = vmatpush3.msra.mxu1 %v4071_v62 }
0x1559   :  { %5591 = vmatprep.subr.mxu1 %v7193_v50 }
0x155b   :  { %v3961_v15 = vpop.permute.xlu0 %3960  ;;  %v3981_v23 = vpop.permute.xlu1 %3980 }
0x155c   :  { %v3966_v24 = vmul.f32 %v3961_v15, %v2286_v22 }
0x155e   :  { %v3986_v8 = vadd.f32 %v3981_v23, %v3966_v24  ;;  %v3999_v23 = vld [vmem:[%s7540_s4 + $0x28] sm:$0xff] }
0x155f   :  { %v4070_v24 = vld [vmem:[%s7539_s6 + $0xa8] sm:$0xff] }
0x1560   :  { %v3956_v31 = vpop.permute.xlu1 %3955  ;;  %v3977_v35 = vpop.permute.xlu0 %3976  ;;  %5592 = vmatpush3.msra.mxu1 %v4070_v24 }
0x1561   :  { %v3965_v32 = vmul.f32 %v3956_v31, %v2285_v33  ;;  %v4074_v33 = vld [vmem:[%s7539_s6 + $0xc8] sm:$0xff] }
0x1563   :  { %v3985_v7 = vadd.f32 %v3977_v35, %v3965_v32 }
0x1564   :  { %v3951_v37 = vpop.permute.xlu1 %3950 }
0x1565   :  { %v3964_v28 = vmul.f32 %v3951_v37, %v2284_v36  ;;  %v3946_v38 = vpop.permute.xlu0 %3945 }
0x1566   :  { %v3963_v39 = vmul.f32 %v3946_v38, %v2283_v27 }
0x1569   :  { %v3973_v40 = vpop.permute.xlu1 %3972 }
0x156a   :  { %v3984_v41 = vadd.f32 %v3973_v40, %v3964_v28 }
0x156d   :  { %v3969_v42 = vpop.permute.xlu1 %3968 }
0x156e   :  { %v3983_v43 = vadd.f32 %v3969_v42, %v3963_v39 }
0x1571   :  { %v524_v44 = vpop.permute.xlu1 %523 }
0x1572   :  { %v526_v45 = vmul.f32 %v7275_v30, %v524_v44 }
0x1574   :  { %528 = vrot.lane.b32.xlu0 %v526_v45, %s7538_s11 }
0x15e6   :  { %v529_v46 = vpop.permute.xlu0 %528 }
0x15e7   :  { %v531_v47 = vadd.f32 %v529_v46, %v521_v16 }
0x15e8   :  { %v5483_v49 = vpop.f32.mrf.mxu1 }
0x15e9   :  { %5678 = vtanh.f32 %v531_v47 }
0x15ea   :  { %v3722_v51 = vpop.f32.mrf.mxu1 }
0x15ee   :  { %v5486_v53 = vpop.f32.mrf.mxu1 }
0x15f0   :  { %v3732_v55 = vpop.f32.mrf.mxu1 }
0x15f6   :  { %v5679_v18 = vpop.eup %5678 }
0x15f7   :  { %534 = vrot.lane.b32.xlu1 %v5679_v18, %s7538_s11 }
0x160d   :  { %v5521_v52 = vpop.f32.mrf.mxu0 }
0x160e   :  { %v3813_v2 = vadd.f32 %v5521_v52, %v5483_v49 }
0x160f   :  { %v3807_v54 = vpop.f32.mrf.mxu0 }
0x1610   :  { %v3808_v9 = vadd.f32 %v3807_v54, %v3722_v51 }
0x1611   :  { %v5524_v57 = vpop.f32.mrf.mxu0 }
0x1612   :  { %v3823_v60 = vadd.f32 %v5524_v57, %v5486_v53 }
0x1613   :  { %v5559_v58 = vpop.f32.mrf.mxu1  ;;  %v3817_v59 = vpop.f32.mrf.mxu0 }
0x1614   :  { %v3818_v1 = vadd.f32 %v3817_v59, %v3732_v55  ;;  %v3932_v0 = vadd.f32 %v5559_v58, %v3813_v2 }
0x1615   :  { %v3912_v56 = vpop.f32.mrf.mxu1 }
0x1616   :  { %v3936_v10 = vmax.f32 %v3932_v0, 0.0  ;;  %v3931_v13 = vadd.f32 %v3912_v56, %v3808_v9 }
0x1617   :  { %v5562_v61 = vpop.f32.mrf.mxu1 }
0x1618   :  { %v3934_v3 = vadd.f32 %v5562_v61, %v3823_v60  ;;  %v3988_v17 = vadd.f32 %v3984_v41, %v3936_v10  ;;  %v3935_v19 = vmax.f32 %v3931_v13, 0.0 }
0x1619   :  { %v3922_v63 = vpop.f32.mrf.mxu1 }
0x161a   :  { %v3938_v4 = vmax.f32 %v3934_v3, 0.0  ;;  %v3933_v5 = vadd.f32 %v3922_v63, %v3818_v1  ;;  %v3992_v20 = vmax.f32 %v3988_v17, 0.0  ;;  %v3987_v22 = vadd.f32 %v3983_v43, %v3935_v19 }
0x161c   :  { %v3990_v11 = vadd.f32 %v3986_v8, %v3938_v4  ;;  %v3937_v6 = vmax.f32 %v3933_v5, 0.0  ;;  %v3991_v15 = vmax.f32 %v3987_v22, 0.0  ;;  %v4075_v8 = vld [vmem:[%s7539_s6 + $0xd0] sm:$0xff] }
0x161e   :  { %v3994_v14 = vmax.f32 %v3990_v11, 0.0  ;;  %v3989_v12 = vadd.f32 %v3985_v7, %v3937_v6 }
0x1620   :  { %5564 = vmatpush3.xpose.msk.msra.mxu0 %vm24_vm3, %v3994_v14  ;;  %v3993_v34 = vmax.f32 %v3989_v12, 0.0 }
0x1621   :  { %5565 = vmatprep.subr.mxu0 %v7193_v50 }
0x1624   :  { %5566 = vmatpush3.xpose.msk.msra.mxu0 %vm24_vm3, %v3993_v34 }
0x1625   :  { %5567 = vmatprep.subr.mxu0 %v7193_v50 }
0x1628   :  { %5568 = vmatpush3.xpose.msk.msra.mxu0 %vm24_vm3, %v3992_v20 }
0x1629   :  { %5569 = vmatprep.subr.mxu0 %v7193_v50 }
0x162c   :  { %5570 = vmatpush3.xpose.msk.msra.mxu0 %vm24_vm3, %v3991_v15 }
0x162d   :  { %5574 = vmatprep.subr.mxu0 %v7193_v50 }
0x162f   :  { %5572 = vmatmul.mubr.f32.vlgmr.msra.gmra.mxu0 %v3999_v23 }
0x1630   :  { %5582 = vmatprep.mubr.msk.f32.mxu0 %vm5727_vm0, %v7193_v50  ;;  %5575 = vmatpush3.msra.mxu0 %v4077_v25 }
0x1631   :  { %5576 = vmatprep.subr.mxu0 %v7193_v50 }
0x1632   :  { %5577 = vmatpush3.msra.mxu0 %v4076_v26 }
0x1633   :  { %5578 = vmatprep.subr.mxu0 %v7193_v50 }
0x1634   :  { %5579 = vmatpush3.msra.mxu0 %v4075_v8 }
0x1635   :  { %5580 = vmatprep.subr.mxu0 %v7193_v50  ;;  %v4281_v50 = vld [vmem:[%s7539_s6 + $0xe8] ss:$0 sm:$0xff] }
0x1636   :  { %5581 = vmatpush3.msra.mxu0 %v4074_v33 }
0x1669   :  { %v535_v29 = vpop.permute.xlu1 %534 }
0x166a   :  { %v537_v31 = vmul.f32 %v7275_v30, %v535_v29 }
0x166c   :  { %4153 = vrot.lane.b32.xlu0 %v537_v31, %s7541_s24 }
0x16de   :  { %v4154_v35 = vpop.permute.xlu0 %4153 }
0x16df   :  { %5594 = vmatmul.mubr.msk.f32.vlgmr.msra.gmra.mxu1 %vm139_vm1, %v4154_v35 }
0x16ef   :  { %v4066_v32 = vpop.f32.mrf.mxu0 }
0x16f0   :  { %5583 = vmatmul.mubr.msk.f32.vlgmr.msra.gmra.mxu0 %vm139_vm1, %v4066_v32 }
0x16f1   :  { %v5573_v36 = vpop.f32.mrf.mxu0 }
0x179f   :  { %v4223_v37 = vpop.f32.mrf.mxu1 }
0x17a1   :  { %v5595_v28 = vpop.f32.mrf.mxu1 }
0x17b0   :  { %v4148_v27 = vpop.f32.mrf.mxu0 }
0x17b1   :  { %v4224_v38 = vadd.f32 %v4223_v37, %v4148_v27 }
0x17b2   :  { %v5584_v39 = vpop.f32.mrf.mxu0 }
0x17b3   :  { %v4231_v40 = vadd.f32 %v4281_v50, %v4224_v38 }
0x17b5   :  { %4232 = vst [vmem:[%s7542_s29] sm:$0xff] %v4231_v40 }

</bundles_post_ra>
